<compile_context>
chip_gen: v7x
topology: tpu7x:2x2x1
jax: 0.10.0
libtpu: 0.0.40
codegen_flags: <defaults>
</compile_context>

<pallas_src>
import functools

import jax
import jax.numpy as jnp
from jax import lax
from jax.experimental import pallas as pl
from jax.experimental.pallas import tpu as pltpu

LANE = 128
MXU_DTYPE = jnp.bfloat16           # set to jnp.float32 for exact f32 matmuls
VMEM_LIMIT = 32 * 1024 * 1024      # safe on v5e/v6e (128 MiB) and v7x (64 MiB)


# ----------------------------- small helpers -------------------------------

def _round_up(x, m):
    return (x + m - 1) // m * m


def _pad2(x, rows, cols):
    r, c = x.shape
    if r == rows and c == cols:
        return x
    return jnp.pad(x, ((0, rows - r), (0, cols - c)))


def _pad_vec(v, n):
    return jnp.pad(v.astype(jnp.float32), (0, n - v.shape[0]))


# ----------------------------- Pallas kernels ------------------------------

def _channel_stats_kernel(x_ref, o_ref):
    """Accumulate per-channel sum (row 0) and sum-of-squares (row 1)."""
    @pl.when(pl.program_id(0) == 0)
    def _():
        o_ref[...] = jnp.zeros_like(o_ref)

    x = x_ref[...]
    s = jnp.sum(x, axis=0, keepdims=True)
    ss = jnp.sum(x * x, axis=0, keepdims=True)
    o_ref[...] += jnp.concatenate([s, ss], axis=0)


def _scale_shift_relu_kernel(x_ref, sc_ref, sh_ref, o_ref):
    y = x_ref[...] * sc_ref[...] + sh_ref[...]
    o_ref[...] = jnp.maximum(y, 0.0).astype(o_ref.dtype)


def _mm_bias_kernel(a_ref, w_ref, b_ref, o_ref, acc_ref):
    k = pl.program_id(2)

    @pl.when(k == 0)
    def _():
        acc_ref[...] = jnp.zeros_like(acc_ref)

    acc_ref[...] += jnp.dot(a_ref[...], w_ref[...],
                            preferred_element_type=jnp.float32)

    @pl.when(k == pl.num_programs(2) - 1)
    def _():
        o_ref[...] = (acc_ref[...] + b_ref[...]).astype(o_ref.dtype)


def _mm_bias_res_kernel(a_ref, w_ref, b_ref, r_ref, o_ref, acc_ref):
    k = pl.program_id(2)

    @pl.when(k == 0)
    def _():
        acc_ref[...] = jnp.zeros_like(acc_ref)

    acc_ref[...] += jnp.dot(a_ref[...], w_ref[...],
                            preferred_element_type=jnp.float32)

    @pl.when(k == pl.num_programs(2) - 1)
    def _():
        o_ref[...] = (acc_ref[...] + b_ref[...] + r_ref[...]).astype(o_ref.dtype)


def _conv3x3_accumulate(hp_ref, w_ref, win_ref, acc_ref, sem, *, tm, halo, wp, cin_p):
    """DMA a (tm + halo)-row window of the padded flat activation and do the
    9 shifted matmuls of a 3x3 stride-1 conv into acc_ref."""
    i = pl.program_id(0)
    row0 = pl.multiple_of(i * tm, 8)
    cp = pltpu.make_async_copy(hp_ref.at[pl.ds(row0, tm + halo), :], win_ref, sem)
    cp.start()
    cp.wait()
    acc_ref[...] = jnp.zeros_like(acc_ref)
    for t in range(9):                      # static unroll: 9 taps (ky, kx)
        off = (t // 3) * wp + (t % 3)       # row shift of tap t in flat layout
        a = win_ref[off:off + tm, :].astype(MXU_DTYPE)
        wt = w_ref[t * cin_p:(t + 1) * cin_p, :]
        acc_ref[...] += jnp.dot(a, wt, preferred_element_type=jnp.float32)


def _conv3x3_kernel(hp_ref, w_ref, b_ref, o_ref, win_ref, acc_ref, sem,
                    *, tm, halo, wp, cin_p):
    _conv3x3_accumulate(hp_ref, w_ref, win_ref, acc_ref, sem,
                        tm=tm, halo=halo, wp=wp, cin_p=cin_p)
    o_ref[...] = (acc_ref[...] + b_ref[...]).astype(o_ref.dtype)


def _conv3x3_res_kernel(hp_ref, w_ref, b_ref, r_ref, o_ref, win_ref, acc_ref, sem,
                        *, tm, halo, wp, cin_p):
    _conv3x3_accumulate(hp_ref, w_ref, win_ref, acc_ref, sem,
                        tm=tm, halo=halo, wp=wp, cin_p=cin_p)
    o_ref[...] = (acc_ref[...] + b_ref[...] + r_ref[...]).astype(o_ref.dtype)


# ----------------------------- Pallas wrappers -----------------------------

def bn_scale_shift(x2d, gamma, beta, eps=1e-5, block_rows=512):
    """Batch-norm (batch statistics) folded into per-channel scale/shift."""
    M, C = x2d.shape
    tm = min(block_rows, _round_up(M, 8))
    Mp = _round_up(M, tm)
    xp = _pad2(x2d, Mp, C)                     # zero rows do not change sums
    sums = pl.pallas_call(
        _channel_stats_kernel,
        out_shape=jax.ShapeDtypeStruct((2, C), jnp.float32),
        grid=(Mp // tm,),
        in_specs=[pl.BlockSpec((tm, C), lambda i: (i, 0))],
        out_specs=pl.BlockSpec((2, C), lambda i: (0, 0)),
        compiler_params=pltpu.CompilerParams(
            dimension_semantics=("arbitrary",), vmem_limit_bytes=VMEM_LIMIT),
    )(xp)
    mean = sums[0] / M
    var = jnp.maximum(sums[1] / M - mean * mean, 0.0)   # biased variance
    scale = gamma * lax.rsqrt(var + eps)
    shift = beta - mean * scale
    return scale.reshape(1, C), shift.reshape(1, C)


def scale_shift_relu(x2d, scale, shift, block_rows=512):
    M, C = x2d.shape
    tm = min(block_rows, _round_up(M, 8))
    Mp = _round_up(M, tm)
    xp = _pad2(x2d, Mp, C)
    out = pl.pallas_call(
        _scale_shift_relu_kernel,
        out_shape=jax.ShapeDtypeStruct((Mp, C), jnp.float32),
        grid=(Mp // tm,),
        in_specs=[pl.BlockSpec((tm, C), lambda i: (i, 0)),
                  pl.BlockSpec((1, C), lambda i: (0, 0)),
                  pl.BlockSpec((1, C), lambda i: (0, 0))],
        out_specs=pl.BlockSpec((tm, C), lambda i: (i, 0)),
        compiler_params=pltpu.CompilerParams(
            dimension_semantics=("parallel",), vmem_limit_bytes=VMEM_LIMIT),
    )(xp, scale, shift)
    return out[:M]


def matmul_bias(a, w, b, residual=None, *, tm=256, tn=256, tk=256):
    """o = a @ w + b (+ residual), tiled with a K accumulator.  Returns f32."""
    M, K = a.shape
    _, Nout = w.shape
    tm = min(tm, _round_up(M, 8))
    tn = min(tn, _round_up(Nout, LANE))
    tk = min(tk, _round_up(K, LANE))
    Mp, Kp, Np = _round_up(M, tm), _round_up(K, tk), _round_up(Nout, tn)
    a_p = _pad2(a, Mp, Kp).astype(MXU_DTYPE)
    w_p = _pad2(w, Kp, Np).astype(MXU_DTYPE)
    b_p = _pad2(b.reshape(1, Nout).astype(jnp.float32), 1, Np)

    in_specs = [pl.BlockSpec((tm, tk), lambda i, j, k: (i, k)),
                pl.BlockSpec((tk, tn), lambda i, j, k: (k, j)),
                pl.BlockSpec((1, tn), lambda i, j, k: (0, j))]
    args = [a_p, w_p, b_p]
    kernel = _mm_bias_kernel
    bytes_accessed = (a_p.size * a_p.dtype.itemsize + w_p.size * w_p.dtype.itemsize
                      + Np * 4 + Mp * Np * 4)
    if residual is not None:
        r_p = _pad2(residual.astype(jnp.float32), Mp, Np)
        in_specs.append(pl.BlockSpec((tm, tn), lambda i, j, k: (i, j)))
        args.append(r_p)
        kernel = _mm_bias_res_kernel
        bytes_accessed += Mp * Np * 4

    out = pl.pallas_call(
        kernel,
        out_shape=jax.ShapeDtypeStruct((Mp, Np), jnp.float32),
        grid=(Mp // tm, Np // tn, Kp // tk),
        in_specs=in_specs,
        out_specs=pl.BlockSpec((tm, tn), lambda i, j, k: (i, j)),
        scratch_shapes=[pltpu.VMEM((tm, tn), jnp.float32)],
        compiler_params=pltpu.CompilerParams(
            dimension_semantics=("parallel", "parallel", "arbitrary"),
            vmem_limit_bytes=VMEM_LIMIT),
        cost_estimate=pl.CostEstimate(flops=2 * Mp * Np * Kp, transcendentals=0,
                                      bytes_accessed=bytes_accessed),
    )(*args)
    return out[:M, :Nout]


def conv3x3_s1(h_nhwc, w_mat, bias, residual_nhwc=None, *, tm=256, tn=256):
    """3x3 conv, stride 1, padding 1, on NHWC input; w_mat is (9*C, Cout),
    tap-major (ky, kx, cin).  Output f32 (N, H, W, Cout), optional fused
    residual add.  Avoids im2col via a shift-and-matmul window kernel."""
    N, H, W, C = h_nhwc.shape
    Kfull, Cout = w_mat.shape
    Hp, Wp = H + 2, W + 2
    M = N * Hp * Wp
    tm = min(tm, _round_up(M, 8))
    tn = min(tn, _round_up(Cout, LANE))
    Mp = _round_up(M, tm)
    Np = _round_up(Cout, tn)
    halo = 2 * Wp + 2
    lead = Wp + 1        # leading zero rows so tap offsets ky*Wp+kx are >= 0

    hp = jnp.pad(h_nhwc, ((0, 0), (1, 1), (1, 1), (0, 0))).reshape(M, C)
    hp_flat = jnp.pad(hp, ((lead, Mp + halo - M - lead), (0, 0)))
    w_p = _pad2(w_mat, Kfull, Np).astype(MXU_DTYPE)
    b_p = _pad2(bias.reshape(1, Cout).astype(jnp.float32), 1, Np)

    in_specs = [pl.BlockSpec(memory_space=pl.ANY),            # window DMA'd manually
                pl.BlockSpec((Kfull, tn), lambda i, j: (0, j)),
                pl.BlockSpec((1, tn), lambda i, j: (0, j))]
    args = [hp_flat, w_p, b_p]
    kernel_fn = _conv3x3_kernel
    if residual_nhwc is not None:
        r = jnp.pad(residual_nhwc.astype(jnp.float32),
                    ((0, 0), (1, 1), (1, 1), (0, 0))).reshape(M, residual_nhwc.shape[-1])
        r = _pad2(r, Mp, Np)
        in_specs.append(pl.BlockSpec((tm, tn), lambda i, j: (i, j)))
        args.append(r)
        kernel_fn = _conv3x3_res_kernel

    kern = functools.partial(kernel_fn, tm=tm, halo=halo, wp=Wp, cin_p=C)
    out = pl.pallas_call(
        kern,
        out_shape=jax.ShapeDtypeStruct((Mp, Np), jnp.float32),
        grid=(Mp // tm, Np // tn),
        in_specs=in_specs,
        out_specs=pl.BlockSpec((tm, tn), lambda i, j: (i, j)),
        scratch_shapes=[pltpu.VMEM((tm + halo, C), jnp.float32),
                        pltpu.VMEM((tm, tn), jnp.float32),
                        pltpu.SemaphoreType.DMA(())],
        compiler_params=pltpu.CompilerParams(
            dimension_semantics=("parallel", "parallel"),
            vmem_limit_bytes=VMEM_LIMIT),
        cost_estimate=pl.CostEstimate(
            flops=2 * Mp * Np * Kfull, transcendentals=0,
            bytes_accessed=hp_flat.size * 4 + w_p.size * w_p.dtype.itemsize + Mp * Np * 4),
    )(*args)
    out = out[:M].reshape(N, Hp, Wp, Np)[:, 1:H + 1, 1:W + 1, :Cout]
    return out


# ----------------------------- JAX glue ------------------------------------

def im2col(x_nhwc, kh, kw, stride, padding):
    """Conv patches for the strided fallback.  Returns ((N*Ho*Wo, kh*kw*C), Ho, Wo)."""
    N, H, W, C = x_nhwc.shape
    xp = jnp.pad(x_nhwc, ((0, 0), (padding, padding), (padding, padding), (0, 0)))
    Ho = (H + 2 * padding - kh) // stride + 1
    Wo = (W + 2 * padding - kw) // stride + 1
    cols = []
    for i in range(kh):
        for j in range(kw):
            cols.append(xp[:, i:i + stride * Ho:stride, j:j + stride * Wo:stride, :])
    patches = jnp.stack(cols, axis=3)           # (N, Ho, Wo, kh*kw, C)
    return patches.reshape(N * Ho * Wo, kh * kw * C), Ho, Wo


def _conv_w_matrix(w_oihw, cin_p, cout_p):
    """PyTorch (Cout, Cin, kh, kw) -> (kh*kw*cin_p, cout_p), channel-padded."""
    cout, cin, kh, kw = w_oihw.shape
    w = jnp.pad(w_oihw.astype(jnp.float32),
                ((0, cout_p - cout), (0, cin_p - cin), (0, 0), (0, 0)))
    return jnp.transpose(w, (2, 3, 1, 0)).reshape(kh * kw * cin_p, cout_p)


# ----------------------------- wide_basic forward --------------------------

def init_wide_basic_params(key, in_planes, planes, stride):
    ks = jax.random.split(key, 8)
    p = {
        "bn1_gamma": 1.0 + 0.1 * jax.random.normal(ks[0], (in_planes,), jnp.float32),
        "bn1_beta": 0.1 * jax.random.normal(ks[1], (in_planes,), jnp.float32),
        "conv1_w": 0.1 * jax.random.normal(ks[2], (planes, in_planes, 3, 3), jnp.float32),
        "conv1_b": 0.1 * jax.random.normal(ks[3], (planes,), jnp.float32),
        "bn2_gamma": 1.0 + 0.1 * jax.random.normal(ks[4], (planes,), jnp.float32),
        "bn2_beta": 0.1 * jax.random.normal(ks[5], (planes,), jnp.float32),
        "conv2_w": 0.1 * jax.random.normal(ks[6], (planes, planes, 3, 3), jnp.float32),
        "conv2_b": 0.1 * jax.random.normal(ks[7], (planes,), jnp.float32),
    }
    if stride != 1 or in_planes != planes:
        ks2 = jax.random.split(ks[0], 2)
        p["short_w"] = 0.1 * jax.random.normal(ks2[0], (planes, in_planes, 1, 1), jnp.float32)
        p["short_b"] = 0.1 * jax.random.normal(ks2[1], (planes,), jnp.float32)
    return p


def wide_basic_forward(x_nchw, params, stride, eps=1e-5):
    N, Cin, H, W = x_nchw.shape
    planes = params["conv1_w"].shape[0]
    cin_p = _round_up(Cin, LANE)
    pln_p = _round_up(planes, LANE)

    x = jnp.transpose(x_nchw, (0, 2, 3, 1)).astype(jnp.float32)      # NCHW -> NHWC
    x = jnp.pad(x, ((0, 0), (0, 0), (0, 0), (0, cin_p - Cin)))       # lane-pad channels

    # ---- out = dropout(conv1(relu(bn1(x)))) --------------------------------
    x2d = x.reshape(N * H * W, cin_p)
    sc1, sh1 = bn_scale_shift(x2d, _pad_vec(params["bn1_gamma"], cin_p),
                              _pad_vec(params["bn1_beta"], cin_p), eps)
    h1 = scale_shift_relu(x2d, sc1, sh1).reshape(N, H, W, cin_p)
    w1 = _conv_w_matrix(params["conv1_w"], cin_p, pln_p)
    b1 = _pad_vec(params["conv1_b"], pln_p)
    out1 = conv3x3_s1(h1, w1, b1)                                    # (N, H, W, pln_p)
    # dropout: identity.  TODO(synk): PRNG-masked dropout for p > 0 in training.

    # ---- relu(bn2(out)) -----------------------------------------------------
    o2d = out1.reshape(N * H * W, pln_p)
    sc2, sh2 = bn_scale_shift(o2d, _pad_vec(params["bn2_gamma"], pln_p),
                              _pad_vec(params["bn2_beta"], pln_p), eps)
    h2 = scale_shift_relu(o2d, sc2, sh2).reshape(N, H, W, pln_p)

    # ---- shortcut(x) --------------------------------------------------------
    if stride != 1 or Cin != planes:
        xs = x[:, ::stride, ::stride, :]
        Ns, Hs, Ws, _ = xs.shape
        ws = _conv_w_matrix(params["short_w"], cin_p, pln_p)
        bs = _pad_vec(params["short_b"], pln_p)
        res = matmul_bias(xs.reshape(Ns * Hs * Ws, cin_p), ws, bs).reshape(Ns, Hs, Ws, pln_p)
    else:
        res = x                                            # identity (cin_p == pln_p)

    # ---- out = conv2(relu(bn2(out))) + shortcut(x) --------------------------
    w2 = _conv_w_matrix(params["conv2_w"], pln_p, pln_p)
    b2 = _pad_vec(params["conv2_b"], pln_p)
    if stride == 1:
        out = conv3x3_s1(h2, w2, b2, residual_nhwc=res)              # fused residual
    else:
        a2, Ho2, Wo2 = im2col(h2, 3, 3, stride, 1)                   # strided fallback
        out2d = matmul_bias(a2, w2, b2, residual=res.reshape(-1, pln_p))
        out = out2d.reshape(N, Ho2, Wo2, pln_p)

    out = out[..., :planes]                                          # drop channel pad
    return jnp.transpose(out, (0, 3, 1, 2))                          # NHWC -> NCHW


# ----------------------------- demo ------------------------------------------

if __name__ == "__main__":
    key = jax.random.PRNGKey(0)
    k_x, k_p = jax.random.split(key)

    in_planes, planes, stride = 4, 8, 2
    x = jax.random.normal(k_x, (2, in_planes, 16, 16), jnp.float32)   # NCHW, like PyTorch
    params = init_wide_basic_params(k_p, in_planes, planes, stride)

    fwd = jax.jit(functools.partial(wide_basic_forward, stride=stride))
    out = fwd(x, params)
    jax.block_until_ready(out)

    assert out.shape == (2, planes, 16 // stride, 16 // stride), out.shape
    print("KERNEL_OK")
</pallas_src>

<mosaic_0001>
module attributes {stable_mosaic.version = 11 : i64} {
  func.func @_channel_stats_kernel(%arg0: i32, %arg1: memref<512x128xf32, #tpu.memory_space<vmem>>, %arg2: memref<2x128xf32, #tpu.memory_space<vmem>>) attributes {dimension_semantics = [#tpu.dimension_semantics<arbitrary>], iteration_bounds = array<i64: 1>, scalar_prefetch = 0 : i64, scratch_operands = 0 : i64, tpu.core_type = #tpu.core_type<tc>, window_params = [{transform_indices = @transform_0, window_bounds = array<i64: 512, 128>}, {pipeline_mode = #tpu.pipeline_mode<synchronous>, transform_indices = @transform_1, window_bounds = array<i64: 2, 128>}]} {
    %c0_i32 = arith.constant 0 : i32
    %0 = arith.cmpi eq, %arg0, %c0_i32 : i32
    %1 = arith.extui %0 : i1 to i32
    %c0_i32_0 = arith.constant 0 : i32
    %2 = arith.cmpi ne, %1, %c0_i32_0 : i32
    scf.if %2 {
      %cst_7 = arith.constant 0.000000e+00 : f32
      %13 = vector.broadcast %cst_7 : f32 to vector<2x128xf32>
      %c0_8 = arith.constant 0 : index
      %c0_9 = arith.constant 0 : index
      %14 = vector.load %arg2[%c0_8, %c0_9] : memref<2x128xf32, #tpu.memory_space<vmem>>, vector<2x128xf32>
      tpu.vector_store %arg2[%c0_8, %c0_9], %13 {strides = array<i32>} : memref<2x128xf32, #tpu.memory_space<vmem>>, vector<2x128xf32>,
    } else {
    }
    %c0 = arith.constant 0 : index
    %c0_1 = arith.constant 0 : index
    %3 = vector.load %arg1[%c0, %c0_1] : memref<512x128xf32, #tpu.memory_space<vmem>>, vector<512x128xf32>
    %cst = arith.constant dense<0.000000e+00> : vector<128xf32>
    %4 = vector.multi_reduction <add>, %3, %cst [0] : vector<512x128xf32> to vector<128xf32>
    %5 = vector.shape_cast %4 : vector<128xf32> to vector<1x128xf32>
    %6 = arith.mulf %3, %3 : vector<512x128xf32>
    %cst_2 = arith.constant dense<0.000000e+00> : vector<128xf32>
    %7 = vector.multi_reduction <add>, %6, %cst_2 [0] : vector<512x128xf32> to vector<128xf32>
    %8 = vector.shape_cast %7 : vector<128xf32> to vector<1x128xf32>
    %c0_3 = arith.constant 0 : index
    %c0_4 = arith.constant 0 : index
    %9 = vector.load %arg2[%c0_3, %c0_4] : memref<2x128xf32, #tpu.memory_space<vmem>>, vector<2x128xf32>
    %10 = tpu.concatenate %5, %8 in 0 : vector<1x128xf32>, vector<1x128xf32> -> vector<2x128xf32>
    %11 = arith.addf %9, %10 : vector<2x128xf32>
    %c0_5 = arith.constant 0 : index
    %c0_6 = arith.constant 0 : index
    %12 = vector.load %arg2[%c0_5, %c0_6] : memref<2x128xf32, #tpu.memory_space<vmem>>, vector<2x128xf32>
    tpu.vector_store %arg2[%c0_5, %c0_6], %11 {strides = array<i32>} : memref<2x128xf32, #tpu.memory_space<vmem>>, vector<2x128xf32>,
    return
  }
  func.func @transform_0(%arg0: i32) -> (i32, i32) {
    %c0_i32 = arith.constant 0 : i32
    %c0_i32_0 = arith.constant 0 : i32
    return %arg0, %c0_i32 : i32, i32
  }
  func.func @transform_1(%arg0: i32) -> (i32, i32) {
    %c0_i32 = arith.constant 0 : i32
    %c0_i32_0 = arith.constant 0 : i32
    %c0_i32_1 = arith.constant 0 : i32
    return %c0_i32, %c0_i32_0 : i32, i32
  }
}

module attributes {stable_mosaic.version = 11 : i64} {
  func.func @_scale_shift_relu_kernel(%arg0: i32, %arg1: memref<512x128xf32, #tpu.memory_space<vmem>>, %arg2: memref<1x128xf32, #tpu.memory_space<vmem>>, %arg3: memref<1x128xf32, #tpu.memory_space<vmem>>, %arg4: memref<512x128xf32, #tpu.memory_space<vmem>>) attributes {dimension_semantics = [#tpu.dimension_semantics<parallel>], iteration_bounds = array<i64: 1>, scalar_prefetch = 0 : i64, scratch_operands = 0 : i64, tpu.core_type = #tpu.core_type<tc>, window_params = [{transform_indices = @transform_0, window_bounds = array<i64: 512, 128>}, {pipeline_mode = #tpu.pipeline_mode<synchronous>, transform_indices = @transform_1, window_bounds = array<i64: 1, 128>}, {pipeline_mode = #tpu.pipeline_mode<synchronous>, transform_indices = @transform_2, window_bounds = array<i64: 1, 128>}, {transform_indices = @transform_3, window_bounds = array<i64: 512, 128>}]} {
    %c0 = arith.constant 0 : index
    %c0_0 = arith.constant 0 : index
    %0 = vector.load %arg1[%c0, %c0_0] : memref<512x128xf32, #tpu.memory_space<vmem>>, vector<512x128xf32>
    %c0_1 = arith.constant 0 : index
    %c0_2 = arith.constant 0 : index
    %1 = vector.load %arg2[%c0_1, %c0_2] : memref<1x128xf32, #tpu.memory_space<vmem>>, vector<1x128xf32>
    %2 = vector.broadcast %1 : vector<1x128xf32> to vector<512x128xf32>
    %3 = arith.mulf %0, %2 : vector<512x128xf32>
    %c0_3 = arith.constant 0 : index
    %c0_4 = arith.constant 0 : index
    %4 = vector.load %arg3[%c0_3, %c0_4] : memref<1x128xf32, #tpu.memory_space<vmem>>, vector<1x128xf32>
    %5 = vector.broadcast %4 : vector<1x128xf32> to vector<512x128xf32>
    %6 = arith.addf %3, %5 : vector<512x128xf32>
    %cst = arith.constant 0.000000e+00 : f32
    %7 = vector.broadcast %cst : f32 to vector<512x128xf32>
    %8 = arith.maximumf %6, %7 : vector<512x128xf32>
    %c0_5 = arith.constant 0 : index
    %c0_6 = arith.constant 0 : index
    %9 = vector.load %arg4[%c0_5, %c0_6] : memref<512x128xf32, #tpu.memory_space<vmem>>, vector<512x128xf32>
    tpu.vector_store %arg4[%c0_5, %c0_6], %8 {strides = array<i32>} : memref<512x128xf32, #tpu.memory_space<vmem>>, vector<512x128xf32>,
    return
  }
  func.func @transform_0(%arg0: i32) -> (i32, i32) {
    %c0_i32 = arith.constant 0 : i32
    %c0_i32_0 = arith.constant 0 : i32
    return %arg0, %c0_i32 : i32, i32
  }
  func.func @transform_1(%arg0: i32) -> (i32, i32) {
    %c0_i32 = arith.constant 0 : i32
    %c0_i32_0 = arith.constant 0 : i32
    %c0_i32_1 = arith.constant 0 : i32
    return %c0_i32, %c0_i32_0 : i32, i32
  }
  func.func @transform_2(%arg0: i32) -> (i32, i32) {
    %c0_i32 = arith.constant 0 : i32
    %c0_i32_0 = arith.constant 0 : i32
    %c0_i32_1 = arith.constant 0 : i32
    return %c0_i32, %c0_i32_0 : i32, i32
  }
  func.func @transform_3(%arg0: i32) -> (i32, i32) {
    %c0_i32 = arith.constant 0 : i32
    %c0_i32_0 = arith.constant 0 : i32
    return %arg0, %c0_i32 : i32, i32
  }
}

module attributes {stable_mosaic.version = 11 : i64} {
  func.func @_conv3x3_kernel(%arg0: i32, %arg1: i32, %arg2: memref<806x128xf32, #tpu.memory_space<any>>, %arg3: memref<1152x128xbf16, #tpu.memory_space<vmem>>, %arg4: memref<1x128xf32, #tpu.memory_space<vmem>>, %arg5: memref<256x128xf32, #tpu.memory_space<vmem>>, %arg6: memref<294x128xf32, #tpu.memory_space<vmem>>, %arg7: memref<256x128xf32, #tpu.memory_space<vmem>>, %arg8: memref<!tpu.dma_semaphore, #tpu.memory_space<semaphore_mem>>) attributes {dimension_semantics = [#tpu.dimension_semantics<parallel>, #tpu.dimension_semantics<parallel>], iteration_bounds = array<i64: 3, 1>, scalar_prefetch = 0 : i64, scratch_operands = 3 : i64, tpu.core_type = #tpu.core_type<tc>, window_params = [{}, {transform_indices = @transform_1, window_bounds = array<i64: 1152, 128>}, {transform_indices = @transform_2, window_bounds = array<i64: 1, 128>}, {transform_indices = @transform_3, window_bounds = array<i64: 256, 128>}]} {
    %c256_i32 = arith.constant 256 : i32
    %0 = arith.muli %arg0, %c256_i32 : i32
    %1 = tpu.assume_multiple %0, 8 : i32
    %c0_i32 = arith.constant 0 : i32
    %2 = tpu.memref_slice %arg2[%1, %c0_i32] : memref<806x128xf32, #tpu.memory_space<any>> -> memref<294x128xf32, #tpu.memory_space<any>>
    tpu.enqueue_dma source(%2 : memref<294x128xf32, #tpu.memory_space<any>>) target(%arg6 : memref<294x128xf32, #tpu.memory_space<vmem>>) target_semaphore(%arg8 : memref<!tpu.dma_semaphore, #tpu.memory_space<semaphore_mem>>)
    %c0_i32_0 = arith.constant 0 : i32
    %3 = tpu.memref_slice %arg2[%1, %c0_i32_0] : memref<806x128xf32, #tpu.memory_space<any>> -> memref<294x128xf32, #tpu.memory_space<any>>
    tpu.wait_dma2 semaphore(%arg8 : memref<!tpu.dma_semaphore, #tpu.memory_space<semaphore_mem>>) src(%3 : memref<294x128xf32, #tpu.memory_space<any>>) dst(%arg6 : memref<294x128xf32, #tpu.memory_space<vmem>>)
    %cst = arith.constant 0.000000e+00 : f32
    %4 = vector.broadcast %cst : f32 to vector<256x128xf32>
    %c0 = arith.constant 0 : index
    %c0_1 = arith.constant 0 : index
    %5 = vector.load %arg7[%c0, %c0_1] : memref<256x128xf32, #tpu.memory_space<vmem>>, vector<256x128xf32>
    tpu.vector_store %arg7[%c0, %c0_1], %4 {strides = array<i32>} : memref<256x128xf32, #tpu.memory_space<vmem>>, vector<256x128xf32>,
    %c0_2 = arith.constant 0 : index
    %c0_3 = arith.constant 0 : index
    %6 = vector.load %arg6[%c0_2, %c0_3] : memref<294x128xf32, #tpu.memory_space<vmem>>, vector<256x128xf32>
    %7 = arith.truncf %6 : vector<256x128xf32> to vector<256x128xbf16>
    %c0_4 = arith.constant 0 : index
    %c0_5 = arith.constant 0 : index
    %8 = vector.load %arg3[%c0_4, %c0_5] : memref<1152x128xbf16, #tpu.memory_space<vmem>>, vector<128x128xbf16>
    %c0_6 = arith.constant 0 : index
    %c0_7 = arith.constant 0 : index
    %9 = vector.load %arg7[%c0_6, %c0_7] : memref<256x128xf32, #tpu.memory_space<vmem>>, vector<256x128xf32>
    %cst_8 = arith.constant dense<0.000000e+00> : vector<256x128xf32>
    %10 = tpu.matmul %7, %8, %cst_8 {dimension_numbers = #tpu.dot_dimension_numbers<[1], [0], [0], [1], [0, 0, 1, 1], [], []>} : vector<256x128xbf16>, vector<128x128xbf16>, vector<256x128xf32> -> vector<256x128xf32>
    %11 = arith.addf %9, %10 : vector<256x128xf32>
    %c0_9 = arith.constant 0 : index
    %c0_10 = arith.constant 0 : index
    %12 = vector.load %arg7[%c0_9, %c0_10] : memref<256x128xf32, #tpu.memory_space<vmem>>, vector<256x128xf32>
    tpu.vector_store %arg7[%c0_9, %c0_10], %11 {strides = array<i32>} : memref<256x128xf32, #tpu.memory_space<vmem>>, vector<256x128xf32>,
    %c1 = arith.constant 1 : index
    %c0_11 = arith.constant 0 : index
    %13 = vector.load %arg6[%c1, %c0_11] : memref<294x128xf32, #tpu.memory_space<vmem>>, vector<256x128xf32>
    %14 = arith.truncf %13 : vector<256x128xf32> to vector<256x128xbf16>
    %c128 = arith.constant 128 : index
    %c0_12 = arith.constant 0 : index
    %15 = vector.load %arg3[%c128, %c0_12] : memref<1152x128xbf16, #tpu.memory_space<vmem>>, vector<128x128xbf16>
    %c0_13 = arith.constant 0 : index
    %c0_14 = arith.constant 0 : index
    %16 = vector.load %arg7[%c0_13, %c0_14] : memref<256x128xf32, #tpu.memory_space<vmem>>, vector<256x128xf32>
    %cst_15 = arith.constant dense<0.000000e+00> : vector<256x128xf32>
    %17 = tpu.matmul %14, %15, %cst_15 {dimension_numbers = #tpu.dot_dimension_numbers<[1], [0], [0], [1], [0, 0, 1, 1], [], []>} : vector<256x128xbf16>, vector<128x128xbf16>, vector<256x128xf32> -> vector<256x128xf32>
    %18 = arith.addf %16, %17 : vector<256x128xf32>
    %c0_16 = arith.constant 0 : index
    %c0_17 = arith.constant 0 : index
    %19 = vector.load %arg7[%c0_16, %c0_17] : memref<256x128xf32, #tpu.memory_space<vmem>>, vector<256x128xf32>
    tpu.vector_store %arg7[%c0_16, %c0_17], %18 {strides = array<i32>} : memref<256x128xf32, #tpu.memory_space<vmem>>, vector<256x128xf32>,
    %c2 = arith.constant 2 : index
    %c0_18 = arith.constant 0 : index
    %20 = vector.load %arg6[%c2, %c0_18] : memref<294x128xf32, #tpu.memory_space<vmem>>, vector<256x128xf32>
    %21 = arith.truncf %20 : vector<256x128xf32> to vector<256x128xbf16>
    %c256 = arith.constant 256 : index
    %c0_19 = arith.constant 0 : index
    %22 = vector.load %arg3[%c256, %c0_19] : memref<1152x128xbf16, #tpu.memory_space<vmem>>, vector<128x128xbf16>
    %c0_20 = arith.constant 0 : index
    %c0_21 = arith.constant 0 : index
    %23 = vector.load %arg7[%c0_20, %c0_21] : memref<256x128xf32, #tpu.memory_space<vmem>>, vector<256x128xf32>
    %cst_22 = arith.constant dense<0.000000e+00> : vector<256x128xf32>
    %24 = tpu.matmul %21, %22, %cst_22 {dimension_numbers = #tpu.dot_dimension_numbers<[1], [0], [0], [1], [0, 0, 1, 1], [], []>} : vector<256x128xbf16>, vector<128x128xbf16>, vector<256x128xf32> -> vector<256x128xf32>
    %25 = arith.addf %23, %24 : vector<256x128xf32>
    %c0_23 = arith.constant 0 : index
    %c0_24 = arith.constant 0 : index
    %26 = vector.load %arg7[%c0_23, %c0_24] : memref<256x128xf32, #tpu.memory_space<vmem>>, vector<256x128xf32>
    tpu.vector_store %arg7[%c0_23, %c0_24], %25 {strides = array<i32>} : memref<256x128xf32, #tpu.memory_space<vmem>>, vector<256x128xf32>,
    %c18 = arith.constant 18 : index
    %c0_25 = arith.constant 0 : index
    %27 = vector.load %arg6[%c18, %c0_25] : memref<294x128xf32, #tpu.memory_space<vmem>>, vector<256x128xf32>
    %28 = arith.truncf %27 : vector<256x128xf32> to vector<256x128xbf16>
    %c384 = arith.constant 384 : index
    %c0_26 = arith.constant 0 : index
    %29 = vector.load %arg3[%c384, %c0_26] : memref<1152x128xbf16, #tpu.memory_space<vmem>>, vector<128x128xbf16>
    %c0_27 = arith.constant 0 : index
    %c0_28 = arith.constant 0 : index
    %30 = vector.load %arg7[%c0_27, %c0_28] : memref<256x128xf32, #tpu.memory_space<vmem>>, vector<256x128xf32>
    %cst_29 = arith.constant dense<0.000000e+00> : vector<256x128xf32>
    %31 = tpu.matmul %28, %29, %cst_29 {dimension_numbers = #tpu.dot_dimension_numbers<[1], [0], [0], [1], [0, 0, 1, 1], [], []>} : vector<256x128xbf16>, vector<128x128xbf16>, vector<256x128xf32> -> vector<256x128xf32>
    %32 = arith.addf %30, %31 : vector<256x128xf32>
    %c0_30 = arith.constant 0 : index
    %c0_31 = arith.constant 0 : index
    %33 = vector.load %arg7[%c0_30, %c0_31] : memref<256x128xf32, #tpu.memory_space<vmem>>, vector<256x128xf32>
    tpu.vector_store %arg7[%c0_30, %c0_31], %32 {strides = array<i32>} : memref<256x128xf32, #tpu.memory_space<vmem>>, vector<256x128xf32>,
    %c19 = arith.constant 19 : index
    %c0_32 = arith.constant 0 : index
    %34 = vector.load %arg6[%c19, %c0_32] : memref<294x128xf32, #tpu.memory_space<vmem>>, vector<256x128xf32>
    %35 = arith.truncf %34 : vector<256x128xf32> to vector<256x128xbf16>
    %c512 = arith.constant 512 : index
    %c0_33 = arith.constant 0 : index
    %36 = vector.load %arg3[%c512, %c0_33] : memref<1152x128xbf16, #tpu.memory_space<vmem>>, vector<128x128xbf16>
    %c0_34 = arith.constant 0 : index
    %c0_35 = arith.constant 0 : index
    %37 = vector.load %arg7[%c0_34, %c0_35] : memref<256x128xf32, #tpu.memory_space<vmem>>, vector<256x128xf32>
    %cst_36 = arith.constant dense<0.000000e+00> : vector<256x128xf32>
    %38 = tpu.matmul %35, %36, %cst_36 {dimension_numbers = #tpu.dot_dimension_numbers<[1], [0], [0], [1], [0, 0, 1, 1], [], []>} : vector<256x128xbf16>, vector<128x128xbf16>, vector<256x128xf32> -> vector<256x128xf32>
    %39 = arith.addf %37, %38 : vector<256x128xf32>
    %c0_37 = arith.constant 0 : index
    %c0_38 = arith.constant 0 : index
    %40 = vector.load %arg7[%c0_37, %c0_38] : memref<256x128xf32, #tpu.memory_space<vmem>>, vector<256x128xf32>
    tpu.vector_store %arg7[%c0_37, %c0_38], %39 {strides = array<i32>} : memref<256x128xf32, #tpu.memory_space<vmem>>, vector<256x128xf32>,
    %c20 = arith.constant 20 : index
    %c0_39 = arith.constant 0 : index
    %41 = vector.load %arg6[%c20, %c0_39] : memref<294x128xf32, #tpu.memory_space<vmem>>, vector<256x128xf32>
    %42 = arith.truncf %41 : vector<256x128xf32> to vector<256x128xbf16>
    %c640 = arith.constant 640 : index
    %c0_40 = arith.constant 0 : index
    %43 = vector.load %arg3[%c640, %c0_40] : memref<1152x128xbf16, #tpu.memory_space<vmem>>, vector<128x128xbf16>
    %c0_41 = arith.constant 0 : index
    %c0_42 = arith.constant 0 : index
    %44 = vector.load %arg7[%c0_41, %c0_42] : memref<256x128xf32, #tpu.memory_space<vmem>>, vector<256x128xf32>
    %cst_43 = arith.constant dense<0.000000e+00> : vector<256x128xf32>
    %45 = tpu.matmul %42, %43, %cst_43 {dimension_numbers = #tpu.dot_dimension_numbers<[1], [0], [0], [1], [0, 0, 1, 1], [], []>} : vector<256x128xbf16>, vector<128x128xbf16>, vector<256x128xf32> -> vector<256x128xf32>
    %46 = arith.addf %44, %45 : vector<256x128xf32>
    %c0_44 = arith.constant 0 : index
    %c0_45 = arith.constant 0 : index
    %47 = vector.load %arg7[%c0_44, %c0_45] : memref<256x128xf32, #tpu.memory_space<vmem>>, vector<256x128xf32>
    tpu.vector_store %arg7[%c0_44, %c0_45], %46 {strides = array<i32>} : memref<256x128xf32, #tpu.memory_space<vmem>>, vector<256x128xf32>,
    %c36 = arith.constant 36 : index
    %c0_46 = arith.constant 0 : index
    %48 = vector.load %arg6[%c36, %c0_46] : memref<294x128xf32, #tpu.memory_space<vmem>>, vector<256x128xf32>
    %49 = arith.truncf %48 : vector<256x128xf32> to vector<256x128xbf16>
    %c768 = arith.constant 768 : index
    %c0_47 = arith.constant 0 : index
    %50 = vector.load %arg3[%c768, %c0_47] : memref<1152x128xbf16, #tpu.memory_space<vmem>>, vector<128x128xbf16>
    %c0_48 = arith.constant 0 : index
    %c0_49 = arith.constant 0 : index
    %51 = vector.load %arg7[%c0_48, %c0_49] : memref<256x128xf32, #tpu.memory_space<vmem>>, vector<256x128xf32>
    %cst_50 = arith.constant dense<0.000000e+00> : vector<256x128xf32>
    %52 = tpu.matmul %49, %50, %cst_50 {dimension_numbers = #tpu.dot_dimension_numbers<[1], [0], [0], [1], [0, 0, 1, 1], [], []>} : vector<256x128xbf16>, vector<128x128xbf16>, vector<256x128xf32> -> vector<256x128xf32>
    %53 = arith.addf %51, %52 : vector<256x128xf32>
    %c0_51 = arith.constant 0 : index
    %c0_52 = arith.constant 0 : index
    %54 = vector.load %arg7[%c0_51, %c0_52] : memref<256x128xf32, #tpu.memory_space<vmem>>, vector<256x128xf32>
    tpu.vector_store %arg7[%c0_51, %c0_52], %53 {strides = array<i32>} : memref<256x128xf32, #tpu.memory_space<vmem>>, vector<256x128xf32>,
    %c37 = arith.constant 37 : index
    %c0_53 = arith.constant 0 : index
    %55 = vector.load %arg6[%c37, %c0_53] : memref<294x128xf32, #tpu.memory_space<vmem>>, vector<256x128xf32>
    %56 = arith.truncf %55 : vector<256x128xf32> to vector<256x128xbf16>
    %c896 = arith.constant 896 : index
    %c0_54 = arith.constant 0 : index
    %57 = vector.load %arg3[%c896, %c0_54] : memref<1152x128xbf16, #tpu.memory_space<vmem>>, vector<128x128xbf16>
    %c0_55 = arith.constant 0 : index
    %c0_56 = arith.constant 0 : index
    %58 = vector.load %arg7[%c0_55, %c0_56] : memref<256x128xf32, #tpu.memory_space<vmem>>, vector<256x128xf32>
    %cst_57 = arith.constant dense<0.000000e+00> : vector<256x128xf32>
    %59 = tpu.matmul %56, %57, %cst_57 {dimension_numbers = #tpu.dot_dimension_numbers<[1], [0], [0], [1], [0, 0, 1, 1], [], []>} : vector<256x128xbf16>, vector<128x128xbf16>, vector<256x128xf32> -> vector<256x128xf32>
    %60 = arith.addf %58, %59 : vector<256x128xf32>
    %c0_58 = arith.constant 0 : index
    %c0_59 = arith.constant 0 : index
    %61 = vector.load %arg7[%c0_58, %c0_59] : memref<256x128xf32, #tpu.memory_space<vmem>>, vector<256x128xf32>
    tpu.vector_store %arg7[%c0_58, %c0_59], %60 {strides = array<i32>} : memref<256x128xf32, #tpu.memory_space<vmem>>, vector<256x128xf32>,
    %c38 = arith.constant 38 : index
    %c0_60 = arith.constant 0 : index
    %62 = vector.load %arg6[%c38, %c0_60] : memref<294x128xf32, #tpu.memory_space<vmem>>, vector<256x128xf32>
    %63 = arith.truncf %62 : vector<256x128xf32> to vector<256x128xbf16>
    %c1024 = arith.constant 1024 : index
    %c0_61 = arith.constant 0 : index
    %64 = vector.load %arg3[%c1024, %c0_61] : memref<1152x128xbf16, #tpu.memory_space<vmem>>, vector<128x128xbf16>
    %c0_62 = arith.constant 0 : index
    %c0_63 = arith.constant 0 : index
    %65 = vector.load %arg7[%c0_62, %c0_63] : memref<256x128xf32, #tpu.memory_space<vmem>>, vector<256x128xf32>
    %cst_64 = arith.constant dense<0.000000e+00> : vector<256x128xf32>
    %66 = tpu.matmul %63, %64, %cst_64 {dimension_numbers = #tpu.dot_dimension_numbers<[1], [0], [0], [1], [0, 0, 1, 1], [], []>} : vector<256x128xbf16>, vector<128x128xbf16>, vector<256x128xf32> -> vector<256x128xf32>
    %67 = arith.addf %65, %66 : vector<256x128xf32>
    %c0_65 = arith.constant 0 : index
    %c0_66 = arith.constant 0 : index
    %68 = vector.load %arg7[%c0_65, %c0_66] : memref<256x128xf32, #tpu.memory_space<vmem>>, vector<256x128xf32>
    tpu.vector_store %arg7[%c0_65, %c0_66], %67 {strides = array<i32>} : memref<256x128xf32, #tpu.memory_space<vmem>>, vector<256x128xf32>,
    %c0_67 = arith.constant 0 : index
    %c0_68 = arith.constant 0 : index
    %69 = vector.load %arg7[%c0_67, %c0_68] : memref<256x128xf32, #tpu.memory_space<vmem>>, vector<256x128xf32>
    %c0_69 = arith.constant 0 : index
    %c0_70 = arith.constant 0 : index
    %70 = vector.load %arg4[%c0_69, %c0_70] : memref<1x128xf32, #tpu.memory_space<vmem>>, vector<1x128xf32>
    %71 = vector.broadcast %70 : vector<1x128xf32> to vector<256x128xf32>
    %72 = arith.addf %69, %71 : vector<256x128xf32>
    %c0_71 = arith.constant 0 : index
    %c0_72 = arith.constant 0 : index
    %73 = vector.load %arg5[%c0_71, %c0_72] : memref<256x128xf32, #tpu.memory_space<vmem>>, vector<256x128xf32>
    tpu.vector_store %arg5[%c0_71, %c0_72], %72 {strides = array<i32>} : memref<256x128xf32, #tpu.memory_space<vmem>>, vector<256x128xf32>,
    return
  }
  func.func @transform_1(%arg0: i32, %arg1: i32) -> (i32, i32) {
    %c0_i32 = arith.constant 0 : i32
    %c0_i32_0 = arith.constant 0 : i32
    return %c0_i32, %arg1 : i32, i32
  }
  func.func @transform_2(%arg0: i32, %arg1: i32) -> (i32, i32) {
    %c0_i32 = arith.constant 0 : i32
    %c0_i32_0 = arith.constant 0 : i32
    return %c0_i32, %arg1 : i32, i32
  }
  func.func @transform_3(%arg0: i32, %arg1: i32) -> (i32, i32) {
    %c0_i32 = arith.constant 0 : i32
    return %arg0, %arg1 : i32, i32
  }
}

module attributes {stable_mosaic.version = 11 : i64} {
  func.func @_mm_bias_kernel(%arg0: i32, %arg1: i32, %arg2: i32, %arg3: memref<128x128xbf16, #tpu.memory_space<vmem>>, %arg4: memref<128x128xbf16, #tpu.memory_space<vmem>>, %arg5: memref<1x128xf32, #tpu.memory_space<vmem>>, %arg6: memref<128x128xf32, #tpu.memory_space<vmem>>, %arg7: memref<128x128xf32, #tpu.memory_space<vmem>>) attributes {dimension_semantics = [#tpu.dimension_semantics<parallel>, #tpu.dimension_semantics<parallel>, #tpu.dimension_semantics<arbitrary>], iteration_bounds = array<i64: 1, 1, 1>, scalar_prefetch = 0 : i64, scratch_operands = 1 : i64, tpu.core_type = #tpu.core_type<tc>, window_params = [{transform_indices = @transform_0, window_bounds = array<i64: 128, 128>}, {transform_indices = @transform_1, window_bounds = array<i64: 128, 128>}, {transform_indices = @transform_2, window_bounds = array<i64: 1, 128>}, {transform_indices = @transform_3, window_bounds = array<i64: 128, 128>}]} {
    %c0_i32 = arith.constant 0 : i32
    %0 = arith.cmpi eq, %arg2, %c0_i32 : i32
    %1 = arith.extui %0 : i1 to i32
    %c0_i32_0 = arith.constant 0 : i32
    %2 = arith.cmpi ne, %1, %c0_i32_0 : i32
    scf.if %2 {
      %cst_10 = arith.constant 0.000000e+00 : f32
      %12 = vector.broadcast %cst_10 : f32 to vector<128x128xf32>
      %c0_11 = arith.constant 0 : index
      %c0_12 = arith.constant 0 : index
      %13 = vector.load %arg7[%c0_11, %c0_12] : memref<128x128xf32, #tpu.memory_space<vmem>>, vector<128x128xf32>
      tpu.vector_store %arg7[%c0_11, %c0_12], %12 {strides = array<i32>} : memref<128x128xf32, #tpu.memory_space<vmem>>, vector<128x128xf32>,
    } else {
    }
    %c0 = arith.constant 0 : index
    %c0_1 = arith.constant 0 : index
    %3 = vector.load %arg7[%c0, %c0_1] : memref<128x128xf32, #tpu.memory_space<vmem>>, vector<128x128xf32>
    %c0_2 = arith.constant 0 : index
    %c0_3 = arith.constant 0 : index
    %4 = vector.load %arg3[%c0_2, %c0_3] : memref<128x128xbf16, #tpu.memory_space<vmem>>, vector<128x128xbf16>
    %c0_4 = arith.constant 0 : index
    %c0_5 = arith.constant 0 : index
    %5 = vector.load %arg4[%c0_4, %c0_5] : memref<128x128xbf16, #tpu.memory_space<vmem>>, vector<128x128xbf16>
    %cst = arith.constant dense<0.000000e+00> : vector<128x128xf32>
    %6 = tpu.matmul %4, %5, %cst {dimension_numbers = #tpu.dot_dimension_numbers<[1], [0], [0], [1], [0, 0, 1, 1], [], []>} : vector<128x128xbf16>, vector<128x128xbf16>, vector<128x128xf32> -> vector<128x128xf32>
    %7 = arith.addf %3, %6 : vector<128x128xf32>
    %c0_6 = arith.constant 0 : index
    %c0_7 = arith.constant 0 : index
    %8 = vector.load %arg7[%c0_6, %c0_7] : memref<128x128xf32, #tpu.memory_space<vmem>>, vector<128x128xf32>
    tpu.vector_store %arg7[%c0_6, %c0_7], %7 {strides = array<i32>} : memref<128x128xf32, #tpu.memory_space<vmem>>, vector<128x128xf32>,
    %c0_i32_8 = arith.constant 0 : i32
    %9 = arith.cmpi eq, %arg2, %c0_i32_8 : i32
    %10 = arith.extui %9 : i1 to i32
    %c0_i32_9 = arith.constant 0 : i32
    %11 = arith.cmpi ne, %10, %c0_i32_9 : i32
    scf.if %11 {
      %c0_10 = arith.constant 0 : index
      %c0_11 = arith.constant 0 : index
      %12 = vector.load %arg7[%c0_10, %c0_11] : memref<128x128xf32, #tpu.memory_space<vmem>>, vector<128x128xf32>
      %c0_12 = arith.constant 0 : index
      %c0_13 = arith.constant 0 : index
      %13 = vector.load %arg5[%c0_12, %c0_13] : memref<1x128xf32, #tpu.memory_space<vmem>>, vector<1x128xf32>
      %14 = vector.broadcast %13 : vector<1x128xf32> to vector<128x128xf32>
      %15 = arith.addf %12, %14 : vector<128x128xf32>
      %c0_14 = arith.constant 0 : index
      %c0_15 = arith.constant 0 : index
      %16 = vector.load %arg6[%c0_14, %c0_15] : memref<128x128xf32, #tpu.memory_space<vmem>>, vector<128x128xf32>
      tpu.vector_store %arg6[%c0_14, %c0_15], %15 {strides = array<i32>} : memref<128x128xf32, #tpu.memory_space<vmem>>, vector<128x128xf32>,
    } else {
    }
    return
  }
  func.func @transform_0(%arg0: i32, %arg1: i32, %arg2: i32) -> (i32, i32) {
    %c0_i32 = arith.constant 0 : i32
    return %arg0, %arg2 : i32, i32
  }
  func.func @transform_1(%arg0: i32, %arg1: i32, %arg2: i32) -> (i32, i32) {
    %c0_i32 = arith.constant 0 : i32
    return %arg2, %arg1 : i32, i32
  }
  func.func @transform_2(%arg0: i32, %arg1: i32, %arg2: i32) -> (i32, i32) {
    %c0_i32 = arith.constant 0 : i32
    %c0_i32_0 = arith.constant 0 : i32
    return %c0_i32, %arg1 : i32, i32
  }
  func.func @transform_3(%arg0: i32, %arg1: i32, %arg2: i32) -> (i32, i32) {
    %c0_i32 = arith.constant 0 : i32
    return %arg0, %arg1 : i32, i32
  }
}

module attributes {stable_mosaic.version = 11 : i64} {
  func.func @_mm_bias_res_kernel(%arg0: i32, %arg1: i32, %arg2: i32, %arg3: memref<128x256xbf16, #tpu.memory_space<vmem>>, %arg4: memref<256x128xbf16, #tpu.memory_space<vmem>>, %arg5: memref<1x128xf32, #tpu.memory_space<vmem>>, %arg6: memref<128x128xf32, #tpu.memory_space<vmem>>, %arg7: memref<128x128xf32, #tpu.memory_space<vmem>>, %arg8: memref<128x128xf32, #tpu.memory_space<vmem>>) attributes {dimension_semantics = [#tpu.dimension_semantics<parallel>, #tpu.dimension_semantics<parallel>, #tpu.dimension_semantics<arbitrary>], iteration_bounds = array<i64: 1, 1, 5>, scalar_prefetch = 0 : i64, scratch_operands = 1 : i64, tpu.core_type = #tpu.core_type<tc>, window_params = [{transform_indices = @transform_0, window_bounds = array<i64: 128, 256>}, {transform_indices = @transform_1, window_bounds = array<i64: 256, 128>}, {transform_indices = @transform_2, window_bounds = array<i64: 1, 128>}, {transform_indices = @transform_3, window_bounds = array<i64: 128, 128>}, {transform_indices = @transform_4, window_bounds = array<i64: 128, 128>}]} {
    %c0_i32 = arith.constant 0 : i32
    %0 = arith.cmpi eq, %arg2, %c0_i32 : i32
    %1 = arith.extui %0 : i1 to i32
    %c0_i32_0 = arith.constant 0 : i32
    %2 = arith.cmpi ne, %1, %c0_i32_0 : i32
    scf.if %2 {
      %cst_9 = arith.constant 0.000000e+00 : f32
      %12 = vector.broadcast %cst_9 : f32 to vector<128x128xf32>
      %c0_10 = arith.constant 0 : index
      %c0_11 = arith.constant 0 : index
      %13 = vector.load %arg8[%c0_10, %c0_11] : memref<128x128xf32, #tpu.memory_space<vmem>>, vector<128x128xf32>
      tpu.vector_store %arg8[%c0_10, %c0_11], %12 {strides = array<i32>} : memref<128x128xf32, #tpu.memory_space<vmem>>, vector<128x128xf32>,
    } else {
    }
    %c0 = arith.constant 0 : index
    %c0_1 = arith.constant 0 : index
    %3 = vector.load %arg8[%c0, %c0_1] : memref<128x128xf32, #tpu.memory_space<vmem>>, vector<128x128xf32>
    %c0_2 = arith.constant 0 : index
    %c0_3 = arith.constant 0 : index
    %4 = vector.load %arg3[%c0_2, %c0_3] : memref<128x256xbf16, #tpu.memory_space<vmem>>, vector<128x256xbf16>
    %c0_4 = arith.constant 0 : index
    %c0_5 = arith.constant 0 : index
    %5 = vector.load %arg4[%c0_4, %c0_5] : memref<256x128xbf16, #tpu.memory_space<vmem>>, vector<256x128xbf16>
    %cst = arith.constant dense<0.000000e+00> : vector<128x128xf32>
    %6 = tpu.matmul %4, %5, %cst {dimension_numbers = #tpu.dot_dimension_numbers<[1], [0], [0], [1], [0, 0, 1, 1], [], []>} : vector<128x256xbf16>, vector<256x128xbf16>, vector<128x128xf32> -> vector<128x128xf32>
    %7 = arith.addf %3, %6 : vector<128x128xf32>
    %c0_6 = arith.constant 0 : index
    %c0_7 = arith.constant 0 : index
    %8 = vector.load %arg8[%c0_6, %c0_7] : memref<128x128xf32, #tpu.memory_space<vmem>>, vector<128x128xf32>
    tpu.vector_store %arg8[%c0_6, %c0_7], %7 {strides = array<i32>} : memref<128x128xf32, #tpu.memory_space<vmem>>, vector<128x128xf32>,
    %c4_i32 = arith.constant 4 : i32
    %9 = arith.cmpi eq, %arg2, %c4_i32 : i32
    %10 = arith.extui %9 : i1 to i32
    %c0_i32_8 = arith.constant 0 : i32
    %11 = arith.cmpi ne, %10, %c0_i32_8 : i32
    scf.if %11 {
      %c0_9 = arith.constant 0 : index
      %c0_10 = arith.constant 0 : index
      %12 = vector.load %arg8[%c0_9, %c0_10] : memref<128x128xf32, #tpu.memory_space<vmem>>, vector<128x128xf32>
      %c0_11 = arith.constant 0 : index
      %c0_12 = arith.constant 0 : index
      %13 = vector.load %arg5[%c0_11, %c0_12] : memref<1x128xf32, #tpu.memory_space<vmem>>, vector<1x128xf32>
      %14 = vector.broadcast %13 : vector<1x128xf32> to vector<128x128xf32>
      %15 = arith.addf %12, %14 : vector<128x128xf32>
      %c0_13 = arith.constant 0 : index
      %c0_14 = arith.constant 0 : index
      %16 = vector.load %arg6[%c0_13, %c0_14] : memref<128x128xf32, #tpu.memory_space<vmem>>, vector<128x128xf32>
      %17 = arith.addf %15, %16 : vector<128x128xf32>
      %c0_15 = arith.constant 0 : index
      %c0_16 = arith.constant 0 : index
      %18 = vector.load %arg7[%c0_15, %c0_16] : memref<128x128xf32, #tpu.memory_space<vmem>>, vector<128x128xf32>
      tpu.vector_store %arg7[%c0_15, %c0_16], %17 {strides = array<i32>} : memref<128x128xf32, #tpu.memory_space<vmem>>, vector<128x128xf32>,
    } else {
    }
    return
  }
  func.func @transform_0(%arg0: i32, %arg1: i32, %arg2: i32) -> (i32, i32) {
    %c0_i32 = arith.constant 0 : i32
    return %arg0, %arg2 : i32, i32
  }
  func.func @transform_1(%arg0: i32, %arg1: i32, %arg2: i32) -> (i32, i32) {
    %c0_i32 = arith.constant 0 : i32
    return %arg2, %arg1 : i32, i32
  }
  func.func @transform_2(%arg0: i32, %arg1: i32, %arg2: i32) -> (i32, i32) {
    %c0_i32 = arith.constant 0 : i32
    %c0_i32_0 = arith.constant 0 : i32
    return %c0_i32, %arg1 : i32, i32
  }
  func.func @transform_3(%arg0: i32, %arg1: i32, %arg2: i32) -> (i32, i32) {
    %c0_i32 = arith.constant 0 : i32
    return %arg0, %arg1 : i32, i32
  }
  func.func @transform_4(%arg0: i32, %arg1: i32, %arg2: i32) -> (i32, i32) {
    %c0_i32 = arith.constant 0 : i32
    return %arg0, %arg1 : i32, i32
  }
}

</mosaic_0001>

<bundles_post_ra>
// kernel: wide_basic_forward.7
= control target key start
LH: loop header
LB: loop body
LE: loop exit
PB: predicated region body
PF: predicated region fallthrough
CT: control target
= control target key end

     0   :  { %v289_v0 = vmov 0.0   ;;  %vm280_vm0 = vcmask 1040384   ;;  %s501_s0 = inlined_call_operand.vmem [shape: f32[512,128], index: 0, kind: input, shape index: {}]   ;;  %s502_s1 = inlined_call_operand.vmem [shape: f32[2,128], index: 1, kind: output, shape index: {}]  }
   0x1   :  { %12 = vst [vmem:[%s502_s1] sm:$0x3] %v289_v0  ;;  %v13_v1 = vld [vmem:[%s501_s0] sm:$0xff]  ;;  %v14_v2 = vld [vmem:[%s501_s0 + $0x8] sm:$0xff]  ;;  %v15_v3 = vld [vmem:[%s501_s0 + $0x10] sm:$0xff] }
   0x2   :  { %v16_v4 = vld [vmem:[%s501_s0 + $0x18] sm:$0xff]  ;;  %v77_v5 = vadd.f32 %v14_v2, %v13_v1  ;;  %v146_v6 = vmul.f32 %v13_v1, %v13_v1  ;;  %v147_v7 = vmul.f32 %v14_v2, %v14_v2  ;;  %v148_v8 = vmul.f32 %v15_v3, %v15_v3  ;;  %v17_v9 = vld [vmem:[%s501_s0 + $0x20] sm:$0xff]  ;;  %v18_v13 = vld [vmem:[%s501_s0 + $0x28] sm:$0xff] }
   0x3   :  { %v149_v11 = vmul.f32 %v16_v4, %v16_v4  ;;  %v150_v15 = vmul.f32 %v17_v9, %v17_v9  ;;  %v19_v17 = vld [vmem:[%s501_s0 + $0x30] sm:$0xff]  ;;  %v151_v19 = vmul.f32 %v18_v13, %v18_v13  ;;  %v20_v21 = vld [vmem:[%s501_s0 + $0x38] sm:$0xff]  ;;  %v21_v25 = vld [vmem:[%s501_s0 + $0x40] sm:$0xff] }
   0x4   :  { %v78_v10 = vadd.f32 %v77_v5, %v15_v3  ;;  %v210_v12 = vadd.f32 %v147_v7, %v146_v6  ;;  %v152_v23 = vmul.f32 %v19_v17, %v19_v17  ;;  %v153_v27 = vmul.f32 %v20_v21, %v20_v21  ;;  %v22_v29 = vld [vmem:[%s501_s0 + $0x48] sm:$0xff]  ;;  %v23_v33 = vld [vmem:[%s501_s0 + $0x50] sm:$0xff]  ;;  %v24_v37 = vld [vmem:[%s501_s0 + $0x58] sm:$0xff] }
   0x5   :  { %v154_v31 = vmul.f32 %v21_v25, %v21_v25  ;;  %v155_v35 = vmul.f32 %v22_v29, %v22_v29  ;;  %v156_v39 = vmul.f32 %v23_v33, %v23_v33  ;;  %v25_v41 = vld [vmem:[%s501_s0 + $0x60] sm:$0xff]  ;;  %v157_v43 = vmul.f32 %v24_v37, %v24_v37  ;;  %v26_v45 = vld [vmem:[%s501_s0 + $0x68] sm:$0xff]  ;;  %v27_v49 = vld [vmem:[%s501_s0 + $0x70] sm:$0xff] }
   0x6   :  { %v79_v14 = vadd.f32 %v78_v10, %v16_v4  ;;  %v211_v16 = vadd.f32 %v210_v12, %v148_v8  ;;  %v158_v47 = vmul.f32 %v25_v41, %v25_v41  ;;  %v159_v51 = vmul.f32 %v26_v45, %v26_v45  ;;  %v28_v53 = vld [vmem:[%s501_s0 + $0x78] sm:$0xff]  ;;  %v29_v57 = vld [vmem:[%s501_s0 + $0x80] sm:$0xff]  ;;  %v30_v61 = vld [vmem:[%s501_s0 + $0x88] sm:$0xff] }
   0x7   :  { %v160_v55 = vmul.f32 %v27_v49, %v27_v49  ;;  %v161_v59 = vmul.f32 %v28_v53, %v28_v53  ;;  %v162_v63 = vmul.f32 %v29_v57, %v29_v57  ;;  %v31_v1 = vld [vmem:[%s501_s0 + $0x90] sm:$0xff]  ;;  %v163_v3 = vmul.f32 %v30_v61, %v30_v61  ;;  %v32_v5 = vld [vmem:[%s501_s0 + $0x98] sm:$0xff] }
   0x8   :  { %v80_v18 = vadd.f32 %v79_v14, %v17_v9  ;;  %v212_v20 = vadd.f32 %v211_v16, %v149_v11  ;;  %v164_v7 = vmul.f32 %v31_v1, %v31_v1  ;;  %v33_v9 = vld [vmem:[%s501_s0 + $0xa0] sm:$0xff]  ;;  %v165_v11 = vmul.f32 %v32_v5, %v32_v5 }
   0xa   :  { %v81_v22 = vadd.f32 %v80_v18, %v18_v13  ;;  %v213_v24 = vadd.f32 %v212_v20, %v150_v15  ;;  %v34_v13 = vld [vmem:[%s501_s0 + $0xa8] sm:$0xff]  ;;  %v166_v15 = vmul.f32 %v33_v9, %v33_v9 }
   0xc   :  { %v82_v26 = vadd.f32 %v81_v22, %v19_v17  ;;  %v214_v28 = vadd.f32 %v213_v24, %v151_v19  ;;  %v35_v17 = vld [vmem:[%s501_s0 + $0xb0] sm:$0xff]  ;;  %v167_v19 = vmul.f32 %v34_v13, %v34_v13 }
   0xe   :  { %v83_v30 = vadd.f32 %v82_v26, %v20_v21  ;;  %v215_v32 = vadd.f32 %v214_v28, %v152_v23  ;;  %v36_v21 = vld [vmem:[%s501_s0 + $0xb8] sm:$0xff]  ;;  %v168_v23 = vmul.f32 %v35_v17, %v35_v17 }
  0x10   :  { %v84_v34 = vadd.f32 %v83_v30, %v21_v25  ;;  %v216_v36 = vadd.f32 %v215_v32, %v153_v27  ;;  %v37_v25 = vld [vmem:[%s501_s0 + $0xc0] sm:$0xff]  ;;  %v169_v27 = vmul.f32 %v36_v21, %v36_v21 }
  0x12   :  { %v85_v38 = vadd.f32 %v84_v34, %v22_v29  ;;  %v217_v40 = vadd.f32 %v216_v36, %v154_v31  ;;  %v38_v29 = vld [vmem:[%s501_s0 + $0xc8] sm:$0xff]  ;;  %v170_v31 = vmul.f32 %v37_v25, %v37_v25 }
  0x14   :  { %v86_v42 = vadd.f32 %v85_v38, %v23_v33  ;;  %v218_v44 = vadd.f32 %v217_v40, %v155_v35  ;;  %v39_v33 = vld [vmem:[%s501_s0 + $0xd0] sm:$0xff]  ;;  %v171_v35 = vmul.f32 %v38_v29, %v38_v29 }
  0x16   :  { %v87_v46 = vadd.f32 %v86_v42, %v24_v37  ;;  %v219_v48 = vadd.f32 %v218_v44, %v156_v39  ;;  %v40_v37 = vld [vmem:[%s501_s0 + $0xd8] sm:$0xff]  ;;  %v172_v39 = vmul.f32 %v39_v33, %v39_v33 }
  0x18   :  { %v88_v50 = vadd.f32 %v87_v46, %v25_v41  ;;  %v220_v52 = vadd.f32 %v219_v48, %v157_v43  ;;  %v41_v41 = vld [vmem:[%s501_s0 + $0xe0] sm:$0xff]  ;;  %v173_v43 = vmul.f32 %v40_v37, %v40_v37 }
  0x1a   :  { %v89_v54 = vadd.f32 %v88_v50, %v26_v45  ;;  %v221_v56 = vadd.f32 %v220_v52, %v158_v47  ;;  %v42_v45 = vld [vmem:[%s501_s0 + $0xe8] sm:$0xff]  ;;  %v174_v47 = vmul.f32 %v41_v41, %v41_v41 }
  0x1c   :  { %v90_v58 = vadd.f32 %v89_v54, %v27_v49  ;;  %v222_v60 = vadd.f32 %v221_v56, %v159_v51  ;;  %v43_v49 = vld [vmem:[%s501_s0 + $0xf0] sm:$0xff]  ;;  %v175_v51 = vmul.f32 %v42_v45, %v42_v45 }
  0x1e   :  { %v91_v62 = vadd.f32 %v90_v58, %v28_v53  ;;  %v223_v0 = vadd.f32 %v222_v60, %v160_v55  ;;  %v44_v53 = vld [vmem:[%s501_s0 + $0xf8] sm:$0xff]  ;;  %v176_v55 = vmul.f32 %v43_v49, %v43_v49 }
  0x20   :  { %v92_v2 = vadd.f32 %v91_v62, %v29_v57  ;;  %v224_v4 = vadd.f32 %v223_v0, %v161_v59  ;;  %v45_v57 = vld [vmem:[%s501_s0 + $0x100] sm:$0xff]  ;;  %v177_v59 = vmul.f32 %v44_v53, %v44_v53 }
  0x22   :  { %v93_v6 = vadd.f32 %v92_v2, %v30_v61  ;;  %v225_v8 = vadd.f32 %v224_v4, %v162_v63  ;;  %v46_v61 = vld [vmem:[%s501_s0 + $0x108] sm:$0xff]  ;;  %v178_v63 = vmul.f32 %v45_v57, %v45_v57 }
  0x24   :  { %v94_v10 = vadd.f32 %v93_v6, %v31_v1  ;;  %v226_v12 = vadd.f32 %v225_v8, %v163_v3  ;;  %v47_v1 = vld [vmem:[%s501_s0 + $0x110] sm:$0xff]  ;;  %v179_v3 = vmul.f32 %v46_v61, %v46_v61 }
  0x26   :  { %v95_v14 = vadd.f32 %v94_v10, %v32_v5  ;;  %v227_v16 = vadd.f32 %v226_v12, %v164_v7  ;;  %v48_v5 = vld [vmem:[%s501_s0 + $0x118] sm:$0xff]  ;;  %v180_v7 = vmul.f32 %v47_v1, %v47_v1 }
  0x28   :  { %v96_v18 = vadd.f32 %v95_v14, %v33_v9  ;;  %v228_v20 = vadd.f32 %v227_v16, %v165_v11  ;;  %v49_v9 = vld [vmem:[%s501_s0 + $0x120] sm:$0xff]  ;;  %v181_v11 = vmul.f32 %v48_v5, %v48_v5 }
  0x2a   :  { %v97_v22 = vadd.f32 %v96_v18, %v34_v13  ;;  %v229_v24 = vadd.f32 %v228_v20, %v166_v15  ;;  %v50_v13 = vld [vmem:[%s501_s0 + $0x128] sm:$0xff]  ;;  %v182_v15 = vmul.f32 %v49_v9, %v49_v9 }
  0x2c   :  { %v98_v26 = vadd.f32 %v97_v22, %v35_v17  ;;  %v230_v28 = vadd.f32 %v229_v24, %v167_v19  ;;  %v51_v17 = vld [vmem:[%s501_s0 + $0x130] sm:$0xff]  ;;  %v183_v19 = vmul.f32 %v50_v13, %v50_v13 }
  0x2e   :  { %v99_v30 = vadd.f32 %v98_v26, %v36_v21  ;;  %v231_v32 = vadd.f32 %v230_v28, %v168_v23  ;;  %v52_v21 = vld [vmem:[%s501_s0 + $0x138] sm:$0xff]  ;;  %v184_v23 = vmul.f32 %v51_v17, %v51_v17 }
  0x30   :  { %v100_v34 = vadd.f32 %v99_v30, %v37_v25  ;;  %v232_v36 = vadd.f32 %v231_v32, %v169_v27  ;;  %v53_v25 = vld [vmem:[%s501_s0 + $0x140] sm:$0xff]  ;;  %v185_v27 = vmul.f32 %v52_v21, %v52_v21 }
  0x32   :  { %v101_v38 = vadd.f32 %v100_v34, %v38_v29  ;;  %v233_v40 = vadd.f32 %v232_v36, %v170_v31  ;;  %v54_v29 = vld [vmem:[%s501_s0 + $0x148] sm:$0xff]  ;;  %v186_v31 = vmul.f32 %v53_v25, %v53_v25 }
  0x34   :  { %v102_v42 = vadd.f32 %v101_v38, %v39_v33  ;;  %v234_v44 = vadd.f32 %v233_v40, %v171_v35  ;;  %v55_v33 = vld [vmem:[%s501_s0 + $0x150] sm:$0xff]  ;;  %v187_v35 = vmul.f32 %v54_v29, %v54_v29 }
  0x36   :  { %v103_v46 = vadd.f32 %v102_v42, %v40_v37  ;;  %v235_v48 = vadd.f32 %v234_v44, %v172_v39  ;;  %v56_v37 = vld [vmem:[%s501_s0 + $0x158] sm:$0xff]  ;;  %v188_v39 = vmul.f32 %v55_v33, %v55_v33 }
  0x38   :  { %v104_v50 = vadd.f32 %v103_v46, %v41_v41  ;;  %v236_v52 = vadd.f32 %v235_v48, %v173_v43  ;;  %v57_v41 = vld [vmem:[%s501_s0 + $0x160] sm:$0xff]  ;;  %v189_v43 = vmul.f32 %v56_v37, %v56_v37 }
  0x3a   :  { %v105_v54 = vadd.f32 %v104_v50, %v42_v45  ;;  %v237_v56 = vadd.f32 %v236_v52, %v174_v47  ;;  %v58_v45 = vld [vmem:[%s501_s0 + $0x168] sm:$0xff]  ;;  %v190_v47 = vmul.f32 %v57_v41, %v57_v41 }
  0x3c   :  { %v106_v58 = vadd.f32 %v105_v54, %v43_v49  ;;  %v238_v60 = vadd.f32 %v237_v56, %v175_v51  ;;  %v59_v49 = vld [vmem:[%s501_s0 + $0x170] sm:$0xff]  ;;  %v191_v51 = vmul.f32 %v58_v45, %v58_v45 }
  0x3e   :  { %v107_v62 = vadd.f32 %v106_v58, %v44_v53  ;;  %v239_v0 = vadd.f32 %v238_v60, %v176_v55  ;;  %v60_v53 = vld [vmem:[%s501_s0 + $0x178] sm:$0xff]  ;;  %v192_v55 = vmul.f32 %v59_v49, %v59_v49 }
  0x40   :  { %v108_v2 = vadd.f32 %v107_v62, %v45_v57  ;;  %v240_v4 = vadd.f32 %v239_v0, %v177_v59  ;;  %v61_v57 = vld [vmem:[%s501_s0 + $0x180] sm:$0xff]  ;;  %v193_v59 = vmul.f32 %v60_v53, %v60_v53 }
  0x42   :  { %v109_v6 = vadd.f32 %v108_v2, %v46_v61  ;;  %v241_v8 = vadd.f32 %v240_v4, %v178_v63  ;;  %v62_v61 = vld [vmem:[%s501_s0 + $0x188] sm:$0xff]  ;;  %v194_v63 = vmul.f32 %v61_v57, %v61_v57 }
  0x44   :  { %v110_v10 = vadd.f32 %v109_v6, %v47_v1  ;;  %v242_v12 = vadd.f32 %v241_v8, %v179_v3  ;;  %v63_v1 = vld [vmem:[%s501_s0 + $0x190] sm:$0xff]  ;;  %v195_v3 = vmul.f32 %v62_v61, %v62_v61 }
  0x46   :  { %v111_v14 = vadd.f32 %v110_v10, %v48_v5  ;;  %v243_v16 = vadd.f32 %v242_v12, %v180_v7  ;;  %v64_v5 = vld [vmem:[%s501_s0 + $0x198] sm:$0xff]  ;;  %v196_v7 = vmul.f32 %v63_v1, %v63_v1 }
  0x48   :  { %v112_v18 = vadd.f32 %v111_v14, %v49_v9  ;;  %v244_v20 = vadd.f32 %v243_v16, %v181_v11  ;;  %v65_v9 = vld [vmem:[%s501_s0 + $0x1a0] sm:$0xff]  ;;  %v197_v11 = vmul.f32 %v64_v5, %v64_v5 }
  0x4a   :  { %v113_v22 = vadd.f32 %v112_v18, %v50_v13  ;;  %v245_v24 = vadd.f32 %v244_v20, %v182_v15  ;;  %v66_v13 = vld [vmem:[%s501_s0 + $0x1a8] sm:$0xff]  ;;  %v198_v15 = vmul.f32 %v65_v9, %v65_v9 }
  0x4c   :  { %v114_v26 = vadd.f32 %v113_v22, %v51_v17  ;;  %v246_v28 = vadd.f32 %v245_v24, %v183_v19  ;;  %v67_v17 = vld [vmem:[%s501_s0 + $0x1b0] sm:$0xff]  ;;  %v199_v19 = vmul.f32 %v66_v13, %v66_v13 }
  0x4e   :  { %v115_v30 = vadd.f32 %v114_v26, %v52_v21  ;;  %v247_v32 = vadd.f32 %v246_v28, %v184_v23  ;;  %v68_v21 = vld [vmem:[%s501_s0 + $0x1b8] sm:$0xff]  ;;  %v200_v23 = vmul.f32 %v67_v17, %v67_v17 }
  0x50   :  { %v116_v34 = vadd.f32 %v115_v30, %v53_v25  ;;  %v248_v36 = vadd.f32 %v247_v32, %v185_v27  ;;  %v69_v25 = vld [vmem:[%s501_s0 + $0x1c0] sm:$0xff]  ;;  %v201_v27 = vmul.f32 %v68_v21, %v68_v21 }
  0x52   :  { %v117_v38 = vadd.f32 %v116_v34, %v54_v29  ;;  %v249_v40 = vadd.f32 %v248_v36, %v186_v31  ;;  %v70_v29 = vld [vmem:[%s501_s0 + $0x1c8] sm:$0xff]  ;;  %v202_v31 = vmul.f32 %v69_v25, %v69_v25 }
  0x54   :  { %v118_v42 = vadd.f32 %v117_v38, %v55_v33  ;;  %v250_v44 = vadd.f32 %v249_v40, %v187_v35  ;;  %v71_v33 = vld [vmem:[%s501_s0 + $0x1d0] sm:$0xff]  ;;  %v203_v35 = vmul.f32 %v70_v29, %v70_v29 }
  0x56   :  { %v119_v46 = vadd.f32 %v118_v42, %v56_v37  ;;  %v251_v48 = vadd.f32 %v250_v44, %v188_v39  ;;  %v72_v37 = vld [vmem:[%s501_s0 + $0x1d8] sm:$0xff]  ;;  %v204_v39 = vmul.f32 %v71_v33, %v71_v33 }
  0x58   :  { %v120_v50 = vadd.f32 %v119_v46, %v57_v41  ;;  %v252_v52 = vadd.f32 %v251_v48, %v189_v43  ;;  %v73_v41 = vld [vmem:[%s501_s0 + $0x1e0] sm:$0xff]  ;;  %v205_v43 = vmul.f32 %v72_v37, %v72_v37 }
  0x5a   :  { %v121_v54 = vadd.f32 %v120_v50, %v58_v45  ;;  %v253_v56 = vadd.f32 %v252_v52, %v190_v47  ;;  %v74_v45 = vld [vmem:[%s501_s0 + $0x1e8] sm:$0xff]  ;;  %v206_v47 = vmul.f32 %v73_v41, %v73_v41 }
  0x5c   :  { %v122_v58 = vadd.f32 %v121_v54, %v59_v49  ;;  %v254_v60 = vadd.f32 %v253_v56, %v191_v51  ;;  %v75_v49 = vld [vmem:[%s501_s0 + $0x1f0] sm:$0xff]  ;;  %v207_v51 = vmul.f32 %v74_v45, %v74_v45 }
  0x5e   :  { %v123_v62 = vadd.f32 %v122_v58, %v60_v53  ;;  %v255_v0 = vadd.f32 %v254_v60, %v192_v55  ;;  %v76_v53 = vld [vmem:[%s501_s0 + $0x1f8] sm:$0xff]  ;;  %v208_v55 = vmul.f32 %v75_v49, %v75_v49 }
  0x5f   :  { %v209_v58 = vmul.f32 %v76_v53, %v76_v53 }
  0x60   :  { %v124_v2 = vadd.f32 %v123_v62, %v61_v57  ;;  %v256_v4 = vadd.f32 %v255_v0, %v193_v59 }
  0x62   :  { %v125_v6 = vadd.f32 %v124_v2, %v62_v61  ;;  %v257_v8 = vadd.f32 %v256_v4, %v194_v63 }
  0x64   :  { %v126_v10 = vadd.f32 %v125_v6, %v63_v1  ;;  %v258_v12 = vadd.f32 %v257_v8, %v195_v3 }
  0x66   :  { %v127_v14 = vadd.f32 %v126_v10, %v64_v5  ;;  %v259_v16 = vadd.f32 %v258_v12, %v196_v7 }
  0x68   :  { %v128_v18 = vadd.f32 %v127_v14, %v65_v9  ;;  %v260_v20 = vadd.f32 %v259_v16, %v197_v11  ;;  %v279_v11 = vld [vmem:[%s502_s1] sm:$0x3] }
  0x6a   :  { %v129_v22 = vadd.f32 %v128_v18, %v66_v13  ;;  %v261_v24 = vadd.f32 %v260_v20, %v198_v15 }
  0x6c   :  { %v130_v26 = vadd.f32 %v129_v22, %v67_v17  ;;  %v262_v28 = vadd.f32 %v261_v24, %v199_v19 }
  0x6e   :  { %v131_v30 = vadd.f32 %v130_v26, %v68_v21  ;;  %v263_v32 = vadd.f32 %v262_v28, %v200_v23 }
  0x70   :  { %v132_v34 = vadd.f32 %v131_v30, %v69_v25  ;;  %v264_v36 = vadd.f32 %v263_v32, %v201_v27 }
  0x72   :  { %v133_v38 = vadd.f32 %v132_v34, %v70_v29  ;;  %v265_v40 = vadd.f32 %v264_v36, %v202_v31 }
  0x74   :  { %v134_v42 = vadd.f32 %v133_v38, %v71_v33  ;;  %v266_v44 = vadd.f32 %v265_v40, %v203_v35 }
  0x76   :  { %v135_v46 = vadd.f32 %v134_v42, %v72_v37  ;;  %v267_v48 = vadd.f32 %v266_v44, %v204_v39 }
  0x78   :  { %v136_v50 = vadd.f32 %v135_v46, %v73_v41  ;;  %v268_v52 = vadd.f32 %v267_v48, %v205_v43 }
  0x7a   :  { %v137_v54 = vadd.f32 %v136_v50, %v74_v45  ;;  %v269_v56 = vadd.f32 %v268_v52, %v206_v47 }
  0x7c   :  { %v138_v57 = vadd.f32 %v137_v54, %v75_v49  ;;  %v270_v59 = vadd.f32 %v269_v56, %v207_v51 }
  0x7e   :  { %v139_v60 = vadd.f32 %v138_v57, %v76_v53  ;;  %v271_v61 = vadd.f32 %v270_v59, %v208_v55 }
  0x80   :  { %v140_v62 = vrot.slane %v139_v60, 4  ;;  %v272_v63 = vadd.f32 %v271_v61, %v209_v58 }
  0x82   :  { %v141_v0 = vadd.f32 %v140_v62, %v139_v60  ;;  %v273_v1 = vrot.slane %v272_v63, 4 }
  0x84   :  { %v142_v2 = vrot.slane %v141_v0, 2  ;;  %v274_v3 = vadd.f32 %v273_v1, %v272_v63 }
  0x86   :  { %v143_v4 = vadd.f32 %v142_v2, %v141_v0  ;;  %v275_v5 = vrot.slane %v274_v3, 2 }
  0x88   :  { %v144_v6 = vrot.slane %v143_v4, 1  ;;  %v276_v7 = vadd.f32 %v275_v5, %v274_v3 }
  0x8a   :  { %v145_v8 = vadd.f32 %v144_v6, %v143_v4  ;;  %v277_v9 = vrot.slane %v276_v7, 1 }
  0x8c   :  { %v278_v10 = vadd.f32 %v277_v9, %v276_v7 }
  0x8e   :  { %v281_v12 = vsel %vm280_vm0, %v145_v8, %v278_v10 }
  0x8f   :  { %v282_v13 = vadd.f32 %v281_v12, %v279_v11 }
  0x91   :  { %283 = vst [vmem:[%s502_s1] sm:$0x3] %v282_v13 }

// kernel: wide_basic_forward.8
= control target key start
LH: loop header
LB: loop body
LE: loop exit
PB: predicated region body
PF: predicated region fallthrough
CT: control target
= control target key end

     0   :  { %s896_s0 = inlined_call_operand.vmem [shape: f32[512,128], index: 0, kind: input, shape index: {}]   ;;  %s897_s1 = inlined_call_operand.vmem [shape: f32[1,128], index: 1, kind: input, shape index: {}]   ;;  %s898_s2 = inlined_call_operand.vmem [shape: f32[1,128], index: 2, kind: input, shape index: {}]   ;;  %s899_s3 = inlined_call_operand.vmem [shape: f32[512,128], index: 3, kind: output, shape index: {}]  }
   0x1   :  { %v14_v0 = vld [vmem:[%s896_s0] sm:$0xff]  ;;  %v15_v4 = vld [vmem:[%s896_s0 + $0x8] sm:$0xff]  ;;  %v16_v5 = vld [vmem:[%s896_s0 + $0x10] sm:$0xff] }
   0x2   :  { %v380_v1 = vld [vmem:[%s897_s1] ss:$0 sm:$0xff]  ;;  %v17_v6 = vld [vmem:[%s896_s0 + $0x18] sm:$0xff]  ;;  %v19_v11 = vld [vmem:[%s896_s0 + $0x28] sm:$0xff] }
   0x3   :  { %v385_v2 = vld [vmem:[%s898_s2] ss:$0 sm:$0xff]  ;;  %v85_v3 = vmul.f32 %v380_v1, %v14_v0  ;;  %v86_v7 = vmul.f32 %v380_v1, %v15_v4  ;;  %v87_v8 = vmul.f32 %v380_v1, %v16_v5  ;;  %v88_v9 = vmul.f32 %v380_v1, %v17_v6  ;;  %v20_v12 = vld [vmem:[%s896_s0 + $0x30] sm:$0xff]  ;;  %v21_v17 = vld [vmem:[%s896_s0 + $0x38] sm:$0xff] }
   0x4   :  { %v18_v10 = vld [vmem:[%s896_s0 + $0x20] sm:$0xff]  ;;  %v90_v15 = vmul.f32 %v380_v1, %v19_v11  ;;  %v91_v16 = vmul.f32 %v380_v1, %v20_v12  ;;  %v92_v21 = vmul.f32 %v380_v1, %v21_v17  ;;  %v23_v27 = vld [vmem:[%s896_s0 + $0x48] sm:$0xff]  ;;  %v24_v28 = vld [vmem:[%s896_s0 + $0x50] sm:$0xff] }
   0x5   :  { %v156_v13 = vadd.f32 %v385_v2, %v85_v3  ;;  %v89_v14 = vmul.f32 %v380_v1, %v18_v10  ;;  %v157_v18 = vadd.f32 %v385_v2, %v86_v7  ;;  %v158_v19 = vadd.f32 %v385_v2, %v87_v8  ;;  %v22_v22 = vld [vmem:[%s896_s0 + $0x40] sm:$0xff]  ;;  %v25_v29 = vld [vmem:[%s896_s0 + $0x58] sm:$0xff]  ;;  %v27_v35 = vld [vmem:[%s896_s0 + $0x68] sm:$0xff] }
   0x6   :  { %v159_v20 = vadd.f32 %v385_v2, %v88_v9  ;;  %v161_v25 = vadd.f32 %v385_v2, %v90_v15  ;;  %v162_v26 = vadd.f32 %v385_v2, %v91_v16  ;;  %v163_v33 = vadd.f32 %v385_v2, %v92_v21  ;;  %v26_v34 = vld [vmem:[%s896_s0 + $0x60] sm:$0xff]  ;;  %v28_v36 = vld [vmem:[%s896_s0 + $0x70] sm:$0xff]  ;;  %v29_v41 = vld [vmem:[%s896_s0 + $0x78] sm:$0xff] }
   0x7   :  { %v220_v23 = vmax.f32 %v156_v13, 0.0  ;;  %v160_v24 = vadd.f32 %v385_v2, %v89_v14  ;;  %v221_v30 = vmax.f32 %v157_v18, 0.0  ;;  %v222_v31 = vmax.f32 %v158_v19, 0.0  ;;  %v30_v54 = vld [vmem:[%s896_s0 + $0x80] sm:$0xff]  ;;  %v31_v59 = vld [vmem:[%s896_s0 + $0x88] sm:$0xff]  ;;  %v32_v60 = vld [vmem:[%s896_s0 + $0x90] sm:$0xff] }
   0x8   :  { %v223_v32 = vmax.f32 %v159_v20, 0.0  ;;  %v225_v38 = vmax.f32 %v161_v25, 0.0  ;;  %v226_v39 = vmax.f32 %v162_v26, 0.0  ;;  %v93_v40 = vmul.f32 %v380_v1, %v22_v22  ;;  %v33_v61 = vld [vmem:[%s896_s0 + $0x98] sm:$0xff]  ;;  %v34_v4 = vld [vmem:[%s896_s0 + $0xa0] sm:$0xff]  ;;  %v35_v5 = vld [vmem:[%s896_s0 + $0xa8] sm:$0xff] }
   0x9   :  { %284 = vst [vmem:[%s899_s3] sm:$0xff] %v220_v23  ;;  %v224_v37 = vmax.f32 %v160_v24, 0.0  ;;  %285 = vst [vmem:[%s899_s3 + $0x8] sm:$0xff] %v221_v30  ;;  %v227_v42 = vmax.f32 %v163_v33, 0.0  ;;  %v94_v43 = vmul.f32 %v380_v1, %v23_v27  ;;  %v95_v44 = vmul.f32 %v380_v1, %v24_v28  ;;  %v36_v6 = vld [vmem:[%s896_s0 + $0xb0] sm:$0xff]  ;;  %v37_v11 = vld [vmem:[%s896_s0 + $0xb8] sm:$0xff] }
   0xa   :  { %286 = vst [vmem:[%s899_s3 + $0x10] sm:$0xff] %v222_v31  ;;  %287 = vst [vmem:[%s899_s3 + $0x18] sm:$0xff] %v223_v32  ;;  %v96_v45 = vmul.f32 %v380_v1, %v25_v29  ;;  %v164_v46 = vadd.f32 %v385_v2, %v93_v40  ;;  %v97_v47 = vmul.f32 %v380_v1, %v26_v34  ;;  %v38_v24 = vld [vmem:[%s896_s0 + $0xc0] sm:$0xff]  ;;  %v39_v29 = vld [vmem:[%s896_s0 + $0xc8] sm:$0xff] }
   0xb   :  { %288 = vst [vmem:[%s899_s3 + $0x20] sm:$0xff] %v224_v37  ;;  %289 = vst [vmem:[%s899_s3 + $0x28] sm:$0xff] %v225_v38  ;;  %v98_v48 = vmul.f32 %v380_v1, %v27_v35  ;;  %v99_v49 = vmul.f32 %v380_v1, %v28_v36  ;;  %v165_v50 = vadd.f32 %v385_v2, %v94_v43  ;;  %v40_v30 = vld [vmem:[%s896_s0 + $0xd0] sm:$0xff]  ;;  %v41_v31 = vld [vmem:[%s896_s0 + $0xd8] sm:$0xff] }
   0xc   :  { %290 = vst [vmem:[%s899_s3 + $0x30] sm:$0xff] %v226_v39  ;;  %291 = vst [vmem:[%s899_s3 + $0x38] sm:$0xff] %v227_v42  ;;  %v166_v51 = vadd.f32 %v385_v2, %v95_v44  ;;  %v167_v52 = vadd.f32 %v385_v2, %v96_v45  ;;  %v100_v53 = vmul.f32 %v380_v1, %v29_v41  ;;  %v228_v55 = vmax.f32 %v164_v46, 0.0  ;;  %v42_v36 = vld [vmem:[%s896_s0 + $0xe0] sm:$0xff]  ;;  %v43_v37 = vld [vmem:[%s896_s0 + $0xe8] sm:$0xff] }
   0xd   :  { %v168_v56 = vadd.f32 %v385_v2, %v97_v47  ;;  %v169_v57 = vadd.f32 %v385_v2, %v98_v48  ;;  %v170_v58 = vadd.f32 %v385_v2, %v99_v49  ;;  %v229_v62 = vmax.f32 %v165_v50, 0.0  ;;  %v44_v38 = vld [vmem:[%s896_s0 + $0xf0] sm:$0xff]  ;;  %v45_v43 = vld [vmem:[%s896_s0 + $0xf8] sm:$0xff] }
   0xe   :  { %v230_v63 = vmax.f32 %v166_v51, 0.0  ;;  %v231_v0 = vmax.f32 %v167_v52, 0.0  ;;  %v171_v3 = vadd.f32 %v385_v2, %v100_v53  ;;  %292 = vst [vmem:[%s899_s3 + $0x40] sm:$0xff] %v228_v55  ;;  %v101_v10 = vmul.f32 %v380_v1, %v30_v54 }
   0xf   :  { %v232_v7 = vmax.f32 %v168_v56, 0.0  ;;  %v233_v8 = vmax.f32 %v169_v57, 0.0  ;;  %v234_v9 = vmax.f32 %v170_v58, 0.0  ;;  %293 = vst [vmem:[%s899_s3 + $0x48] sm:$0xff] %v229_v62  ;;  %v102_v13 = vmul.f32 %v380_v1, %v31_v59  ;;  %v46_v56 = vld [vmem:[%s896_s0 + $0x100] sm:$0xff]  ;;  %v48_v62 = vld [vmem:[%s896_s0 + $0x110] sm:$0xff] }
  0x10   :  { %294 = vst [vmem:[%s899_s3 + $0x50] sm:$0xff] %v230_v63  ;;  %295 = vst [vmem:[%s899_s3 + $0x58] sm:$0xff] %v231_v0  ;;  %v235_v12 = vmax.f32 %v171_v3, 0.0  ;;  %v103_v14 = vmul.f32 %v380_v1, %v32_v60  ;;  %v104_v15 = vmul.f32 %v380_v1, %v33_v61  ;;  %v172_v16 = vadd.f32 %v385_v2, %v101_v10  ;;  %v47_v61 = vld [vmem:[%s896_s0 + $0x108] sm:$0xff]  ;;  %v49_v63 = vld [vmem:[%s896_s0 + $0x118] sm:$0xff] }
  0x11   :  { %296 = vst [vmem:[%s899_s3 + $0x60] sm:$0xff] %v232_v7  ;;  %297 = vst [vmem:[%s899_s3 + $0x68] sm:$0xff] %v233_v8  ;;  %v105_v17 = vmul.f32 %v380_v1, %v34_v4  ;;  %v106_v18 = vmul.f32 %v380_v1, %v35_v5  ;;  %v107_v19 = vmul.f32 %v380_v1, %v36_v6  ;;  %v50_v6 = vld [vmem:[%s896_s0 + $0x120] sm:$0xff]  ;;  %v51_v7 = vld [vmem:[%s896_s0 + $0x128] sm:$0xff] }
  0x12   :  { %298 = vst [vmem:[%s899_s3 + $0x70] sm:$0xff] %v234_v9  ;;  %299 = vst [vmem:[%s899_s3 + $0x78] sm:$0xff] %v235_v12  ;;  %v173_v20 = vadd.f32 %v385_v2, %v102_v13  ;;  %v174_v21 = vadd.f32 %v385_v2, %v103_v14  ;;  %v175_v22 = vadd.f32 %v385_v2, %v104_v15  ;;  %v236_v25 = vmax.f32 %v172_v16, 0.0  ;;  %v52_v8 = vld [vmem:[%s896_s0 + $0x130] sm:$0xff]  ;;  %v53_v13 = vld [vmem:[%s896_s0 + $0x138] sm:$0xff] }
  0x13   :  { %v108_v23 = vmul.f32 %v380_v1, %v37_v11  ;;  %v176_v26 = vadd.f32 %v385_v2, %v105_v17  ;;  %v177_v27 = vadd.f32 %v385_v2, %v106_v18  ;;  %v178_v28 = vadd.f32 %v385_v2, %v107_v19 }
  0x14   :  { %v237_v32 = vmax.f32 %v173_v20, 0.0  ;;  %v238_v33 = vmax.f32 %v174_v21, 0.0  ;;  %v239_v34 = vmax.f32 %v175_v22, 0.0  ;;  %300 = vst [vmem:[%s899_s3 + $0x80] sm:$0xff] %v236_v25  ;;  %v109_v42 = vmul.f32 %v380_v1, %v38_v24 }
  0x15   :  { %v179_v35 = vadd.f32 %v385_v2, %v108_v23  ;;  %v240_v39 = vmax.f32 %v176_v26, 0.0  ;;  %v241_v40 = vmax.f32 %v177_v27, 0.0  ;;  %v242_v41 = vmax.f32 %v178_v28, 0.0  ;;  %v54_v26 = vld [vmem:[%s896_s0 + $0x140] sm:$0xff] }
  0x16   :  { %301 = vst [vmem:[%s899_s3 + $0x88] sm:$0xff] %v237_v32  ;;  %302 = vst [vmem:[%s899_s3 + $0x90] sm:$0xff] %v238_v33  ;;  %v110_v45 = vmul.f32 %v380_v1, %v39_v29  ;;  %v111_v46 = vmul.f32 %v380_v1, %v40_v30  ;;  %v112_v47 = vmul.f32 %v380_v1, %v41_v31  ;;  %v55_v31 = vld [vmem:[%s896_s0 + $0x148] sm:$0xff]  ;;  %v56_v32 = vld [vmem:[%s896_s0 + $0x150] sm:$0xff] }
  0x17   :  { %303 = vst [vmem:[%s899_s3 + $0x98] sm:$0xff] %v239_v34  ;;  %v243_v44 = vmax.f32 %v179_v35, 0.0  ;;  %304 = vst [vmem:[%s899_s3 + $0xa0] sm:$0xff] %v240_v39  ;;  %v180_v48 = vadd.f32 %v385_v2, %v109_v42  ;;  %v113_v49 = vmul.f32 %v380_v1, %v42_v36  ;;  %v114_v50 = vmul.f32 %v380_v1, %v43_v37  ;;  %v57_v33 = vld [vmem:[%s896_s0 + $0x158] sm:$0xff]  ;;  %v59_v39 = vld [vmem:[%s896_s0 + $0x168] sm:$0xff] }
  0x18   :  { %305 = vst [vmem:[%s899_s3 + $0xa8] sm:$0xff] %v241_v40  ;;  %306 = vst [vmem:[%s899_s3 + $0xb0] sm:$0xff] %v242_v41  ;;  %v115_v51 = vmul.f32 %v380_v1, %v44_v38  ;;  %v181_v52 = vadd.f32 %v385_v2, %v110_v45  ;;  %v182_v53 = vadd.f32 %v385_v2, %v111_v46  ;;  %v58_v38 = vld [vmem:[%s896_s0 + $0x160] sm:$0xff]  ;;  %v60_v40 = vld [vmem:[%s896_s0 + $0x170] sm:$0xff] }
  0x19   :  { %307 = vst [vmem:[%s899_s3 + $0xb8] sm:$0xff] %v243_v44  ;;  %v183_v54 = vadd.f32 %v385_v2, %v112_v47  ;;  %v116_v55 = vmul.f32 %v380_v1, %v45_v43  ;;  %v244_v57 = vmax.f32 %v180_v48, 0.0  ;;  %v184_v58 = vadd.f32 %v385_v2, %v113_v49  ;;  %v61_v45 = vld [vmem:[%s896_s0 + $0x178] sm:$0xff] }
  0x1a   :  { %v185_v59 = vadd.f32 %v385_v2, %v114_v50  ;;  %v186_v60 = vadd.f32 %v385_v2, %v115_v51  ;;  %v245_v0 = vmax.f32 %v181_v52, 0.0  ;;  %v246_v3 = vmax.f32 %v182_v53, 0.0 }
  0x1b   :  { %v247_v4 = vmax.f32 %v183_v54, 0.0  ;;  %v187_v5 = vadd.f32 %v385_v2, %v116_v55  ;;  %308 = vst [vmem:[%s899_s3 + $0xc0] sm:$0xff] %v244_v57  ;;  %v248_v9 = vmax.f32 %v184_v58, 0.0  ;;  %v117_v12 = vmul.f32 %v380_v1, %v46_v56  ;;  %v62_v58 = vld [vmem:[%s896_s0 + $0x180] sm:$0xff] }
  0x1c   :  { %v249_v10 = vmax.f32 %v185_v59, 0.0  ;;  %v250_v11 = vmax.f32 %v186_v60, 0.0  ;;  %309 = vst [vmem:[%s899_s3 + $0xc8] sm:$0xff] %v245_v0  ;;  %310 = vst [vmem:[%s899_s3 + $0xd0] sm:$0xff] %v246_v3  ;;  %v118_v15 = vmul.f32 %v380_v1, %v47_v61  ;;  %v119_v16 = vmul.f32 %v380_v1, %v48_v62  ;;  %v64_v0 = vld [vmem:[%s896_s0 + $0x190] sm:$0xff]  ;;  %v65_v3 = vld [vmem:[%s896_s0 + $0x198] sm:$0xff] }
  0x1d   :  { %311 = vst [vmem:[%s899_s3 + $0xd8] sm:$0xff] %v247_v4  ;;  %v251_v14 = vmax.f32 %v187_v5, 0.0  ;;  %v120_v17 = vmul.f32 %v380_v1, %v49_v63  ;;  %312 = vst [vmem:[%s899_s3 + $0xe0] sm:$0xff] %v248_v9  ;;  %v188_v18 = vadd.f32 %v385_v2, %v117_v12  ;;  %v121_v19 = vmul.f32 %v380_v1, %v50_v6  ;;  %v63_v63 = vld [vmem:[%s896_s0 + $0x188] sm:$0xff] }
  0x1e   :  { %313 = vst [vmem:[%s899_s3 + $0xe8] sm:$0xff] %v249_v10  ;;  %314 = vst [vmem:[%s899_s3 + $0xf0] sm:$0xff] %v250_v11  ;;  %v122_v20 = vmul.f32 %v380_v1, %v51_v7  ;;  %v123_v21 = vmul.f32 %v380_v1, %v52_v8  ;;  %v189_v22 = vadd.f32 %v385_v2, %v118_v15  ;;  %v66_v8 = vld [vmem:[%s896_s0 + $0x1a0] sm:$0xff]  ;;  %v67_v9 = vld [vmem:[%s896_s0 + $0x1a8] sm:$0xff] }
  0x1f   :  { %315 = vst [vmem:[%s899_s3 + $0xf8] sm:$0xff] %v251_v14  ;;  %v190_v23 = vadd.f32 %v385_v2, %v119_v16  ;;  %v191_v24 = vadd.f32 %v385_v2, %v120_v17  ;;  %v124_v25 = vmul.f32 %v380_v1, %v53_v13  ;;  %v252_v27 = vmax.f32 %v188_v18, 0.0  ;;  %v68_v10 = vld [vmem:[%s896_s0 + $0x1b0] sm:$0xff]  ;;  %v69_v15 = vld [vmem:[%s896_s0 + $0x1b8] sm:$0xff] }
  0x20   :  { %v192_v28 = vadd.f32 %v385_v2, %v121_v19  ;;  %v193_v29 = vadd.f32 %v385_v2, %v122_v20  ;;  %v194_v30 = vadd.f32 %v385_v2, %v123_v21  ;;  %v253_v34 = vmax.f32 %v189_v22, 0.0 }
  0x21   :  { %v254_v35 = vmax.f32 %v190_v23, 0.0  ;;  %v255_v36 = vmax.f32 %v191_v24, 0.0  ;;  %v195_v37 = vadd.f32 %v385_v2, %v124_v25  ;;  %316 = vst [vmem:[%s899_s3 + $0x100] sm:$0xff] %v252_v27  ;;  %v125_v44 = vmul.f32 %v380_v1, %v54_v26 }
  0x22   :  { %v256_v41 = vmax.f32 %v192_v28, 0.0  ;;  %v257_v42 = vmax.f32 %v193_v29, 0.0  ;;  %v258_v43 = vmax.f32 %v194_v30, 0.0  ;;  %317 = vst [vmem:[%s899_s3 + $0x108] sm:$0xff] %v253_v34  ;;  %v126_v47 = vmul.f32 %v380_v1, %v55_v31  ;;  %v70_v28 = vld [vmem:[%s896_s0 + $0x1c0] sm:$0xff]  ;;  %v72_v34 = vld [vmem:[%s896_s0 + $0x1d0] sm:$0xff] }
  0x23   :  { %318 = vst [vmem:[%s899_s3 + $0x110] sm:$0xff] %v254_v35  ;;  %319 = vst [vmem:[%s899_s3 + $0x118] sm:$0xff] %v255_v36  ;;  %v259_v46 = vmax.f32 %v195_v37, 0.0  ;;  %v127_v48 = vmul.f32 %v380_v1, %v56_v32  ;;  %v128_v49 = vmul.f32 %v380_v1, %v57_v33  ;;  %v196_v50 = vadd.f32 %v385_v2, %v125_v44  ;;  %v71_v33 = vld [vmem:[%s896_s0 + $0x1c8] sm:$0xff]  ;;  %v73_v35 = vld [vmem:[%s896_s0 + $0x1d8] sm:$0xff] }
  0x24   :  { %320 = vst [vmem:[%s899_s3 + $0x120] sm:$0xff] %v256_v41  ;;  %321 = vst [vmem:[%s899_s3 + $0x128] sm:$0xff] %v257_v42  ;;  %v129_v51 = vmul.f32 %v380_v1, %v58_v38  ;;  %v130_v52 = vmul.f32 %v380_v1, %v59_v39  ;;  %v131_v53 = vmul.f32 %v380_v1, %v60_v40  ;;  %v74_v40 = vld [vmem:[%s896_s0 + $0x1e0] sm:$0xff]  ;;  %v75_v41 = vld [vmem:[%s896_s0 + $0x1e8] sm:$0xff] }
  0x25   :  { %322 = vst [vmem:[%s899_s3 + $0x130] sm:$0xff] %v258_v43  ;;  %323 = vst [vmem:[%s899_s3 + $0x138] sm:$0xff] %v259_v46  ;;  %v197_v54 = vadd.f32 %v385_v2, %v126_v47  ;;  %v198_v55 = vadd.f32 %v385_v2, %v127_v48  ;;  %v199_v56 = vadd.f32 %v385_v2, %v128_v49  ;;  %v260_v59 = vmax.f32 %v196_v50, 0.0  ;;  %v76_v42 = vld [vmem:[%s896_s0 + $0x1f0] sm:$0xff]  ;;  %v77_v47 = vld [vmem:[%s896_s0 + $0x1f8] sm:$0xff] }
  0x26   :  { %v132_v57 = vmul.f32 %v380_v1, %v61_v45  ;;  %v200_v60 = vadd.f32 %v385_v2, %v129_v51  ;;  %v201_v61 = vadd.f32 %v385_v2, %v130_v52  ;;  %v202_v62 = vadd.f32 %v385_v2, %v131_v53 }
  0x27   :  { %v261_v4 = vmax.f32 %v197_v54, 0.0  ;;  %v262_v5 = vmax.f32 %v198_v55, 0.0  ;;  %v263_v6 = vmax.f32 %v199_v56, 0.0  ;;  %324 = vst [vmem:[%s899_s3 + $0x140] sm:$0xff] %v260_v59  ;;  %v133_v14 = vmul.f32 %v380_v1, %v62_v58 }
  0x28   :  { %v203_v7 = vadd.f32 %v385_v2, %v132_v57  ;;  %v264_v11 = vmax.f32 %v200_v60, 0.0  ;;  %v265_v12 = vmax.f32 %v201_v61, 0.0  ;;  %v266_v13 = vmax.f32 %v202_v62, 0.0 }
  0x29   :  { %325 = vst [vmem:[%s899_s3 + $0x148] sm:$0xff] %v261_v4  ;;  %326 = vst [vmem:[%s899_s3 + $0x150] sm:$0xff] %v262_v5  ;;  %v134_v17 = vmul.f32 %v380_v1, %v63_v63  ;;  %v135_v18 = vmul.f32 %v380_v1, %v64_v0  ;;  %v136_v19 = vmul.f32 %v380_v1, %v65_v3 }
  0x2a   :  { %327 = vst [vmem:[%s899_s3 + $0x158] sm:$0xff] %v263_v6  ;;  %v267_v16 = vmax.f32 %v203_v7, 0.0  ;;  %328 = vst [vmem:[%s899_s3 + $0x160] sm:$0xff] %v264_v11  ;;  %v204_v20 = vadd.f32 %v385_v2, %v133_v14  ;;  %v137_v21 = vmul.f32 %v380_v1, %v66_v8  ;;  %v138_v22 = vmul.f32 %v380_v1, %v67_v9 }
  0x2b   :  { %329 = vst [vmem:[%s899_s3 + $0x168] sm:$0xff] %v265_v12  ;;  %330 = vst [vmem:[%s899_s3 + $0x170] sm:$0xff] %v266_v13  ;;  %v139_v23 = vmul.f32 %v380_v1, %v68_v10  ;;  %v205_v24 = vadd.f32 %v385_v2, %v134_v17  ;;  %v206_v25 = vadd.f32 %v385_v2, %v135_v18 }
  0x2c   :  { %331 = vst [vmem:[%s899_s3 + $0x178] sm:$0xff] %v267_v16  ;;  %v207_v26 = vadd.f32 %v385_v2, %v136_v19  ;;  %v140_v27 = vmul.f32 %v380_v1, %v69_v15  ;;  %v268_v29 = vmax.f32 %v204_v20, 0.0  ;;  %v208_v30 = vadd.f32 %v385_v2, %v137_v21 }
  0x2d   :  { %v209_v31 = vadd.f32 %v385_v2, %v138_v22  ;;  %v210_v32 = vadd.f32 %v385_v2, %v139_v23  ;;  %v269_v36 = vmax.f32 %v205_v24, 0.0  ;;  %v270_v37 = vmax.f32 %v206_v25, 0.0 }
  0x2e   :  { %v271_v38 = vmax.f32 %v207_v26, 0.0  ;;  %v211_v39 = vadd.f32 %v385_v2, %v140_v27  ;;  %332 = vst [vmem:[%s899_s3 + $0x180] sm:$0xff] %v268_v29  ;;  %v272_v43 = vmax.f32 %v208_v30, 0.0  ;;  %v141_v46 = vmul.f32 %v380_v1, %v70_v28 }
  0x2f   :  { %v273_v44 = vmax.f32 %v209_v31, 0.0  ;;  %v274_v45 = vmax.f32 %v210_v32, 0.0  ;;  %333 = vst [vmem:[%s899_s3 + $0x188] sm:$0xff] %v269_v36  ;;  %334 = vst [vmem:[%s899_s3 + $0x190] sm:$0xff] %v270_v37  ;;  %v142_v49 = vmul.f32 %v380_v1, %v71_v33  ;;  %v143_v50 = vmul.f32 %v380_v1, %v72_v34 }
  0x30   :  { %335 = vst [vmem:[%s899_s3 + $0x198] sm:$0xff] %v271_v38  ;;  %v275_v48 = vmax.f32 %v211_v39, 0.0  ;;  %v144_v51 = vmul.f32 %v380_v1, %v73_v35  ;;  %336 = vst [vmem:[%s899_s3 + $0x1a0] sm:$0xff] %v272_v43  ;;  %v212_v52 = vadd.f32 %v385_v2, %v141_v46  ;;  %v145_v53 = vmul.f32 %v380_v1, %v74_v40 }
  0x31   :  { %337 = vst [vmem:[%s899_s3 + $0x1a8] sm:$0xff] %v273_v44  ;;  %338 = vst [vmem:[%s899_s3 + $0x1b0] sm:$0xff] %v274_v45  ;;  %v146_v54 = vmul.f32 %v380_v1, %v75_v41  ;;  %v147_v55 = vmul.f32 %v380_v1, %v76_v42  ;;  %v213_v56 = vadd.f32 %v385_v2, %v142_v49 }
  0x32   :  { %339 = vst [vmem:[%s899_s3 + $0x1b8] sm:$0xff] %v275_v48  ;;  %v214_v57 = vadd.f32 %v385_v2, %v143_v50  ;;  %v215_v58 = vadd.f32 %v385_v2, %v144_v51  ;;  %v148_v59 = vmul.f32 %v380_v1, %v77_v47  ;;  %v276_v60 = vmax.f32 %v212_v52, 0.0 }
  0x33   :  { %v216_v61 = vadd.f32 %v385_v2, %v145_v53  ;;  %v217_v62 = vadd.f32 %v385_v2, %v146_v54  ;;  %v218_v63 = vadd.f32 %v385_v2, %v147_v55  ;;  %v277_v0 = vmax.f32 %v213_v56, 0.0 }
  0x34   :  { %v278_v3 = vmax.f32 %v214_v57, 0.0  ;;  %v279_v4 = vmax.f32 %v215_v58, 0.0  ;;  %v219_v5 = vadd.f32 %v385_v2, %v148_v59  ;;  %340 = vst [vmem:[%s899_s3 + $0x1c0] sm:$0xff] %v276_v60 }
  0x35   :  { %v280_v6 = vmax.f32 %v216_v61, 0.0  ;;  %v281_v7 = vmax.f32 %v217_v62, 0.0  ;;  %v282_v8 = vmax.f32 %v218_v63, 0.0  ;;  %341 = vst [vmem:[%s899_s3 + $0x1c8] sm:$0xff] %v277_v0 }
  0x36   :  { %342 = vst [vmem:[%s899_s3 + $0x1d0] sm:$0xff] %v278_v3  ;;  %343 = vst [vmem:[%s899_s3 + $0x1d8] sm:$0xff] %v279_v4  ;;  %v283_v1 = vmax.f32 %v219_v5, 0.0 }
  0x37   :  { %344 = vst [vmem:[%s899_s3 + $0x1e0] sm:$0xff] %v280_v6  ;;  %345 = vst [vmem:[%s899_s3 + $0x1e8] sm:$0xff] %v281_v7 }
  0x38   :  { %346 = vst [vmem:[%s899_s3 + $0x1f0] sm:$0xff] %v282_v8  ;;  %347 = vst [vmem:[%s899_s3 + $0x1f8] sm:$0xff] %v283_v1 }

// kernel: wide_basic_forward.12
= control target key start
LH: loop header
LB: loop body
LE: loop exit
PB: predicated region body
PF: predicated region fallthrough
CT: control target
= control target key end

     0   :  { %s586_s1 = inlined_call_operand.vmem [shape: bf16[128,128], index: 1, kind: input, shape index: {}]   ;;  %s587_s0 = inlined_call_operand.vmem [shape: bf16[128,128], index: 0, kind: input, shape index: {}]   ;;  %s588_s2 = inlined_call_operand.vmem [shape: f32[1,128], index: 2, kind: input, shape index: {}]   ;;  %s589_s3 = inlined_call_operand.vmem [shape: f32[128,128], index: 3, kind: output, shape index: {}]  }
   0x1   :  { %v451_v0 = vld [vmem:[%s586_s1] sm:$0xff]   ;;  %v452_v1 = vld [vmem:[%s586_s1 + $0x8] sm:$0xff]   ;;  %v453_v2 = vld [vmem:[%s586_s1 + $0x10] sm:$0xff]  }
   0x2   :  { %403 = vmatprep.subr.bf16.mxu0 %v451_v0  ;;  %435 = vmatprep.subr.bf16.mxu1 %v451_v0  ;;  %v454_v3 = vld [vmem:[%s586_s1 + $0x18] sm:$0xff]   ;;  %v459_v4 = vld [vmem:[%s587_s0] sm:$0xff]   ;;  %v456_v7 = vld [vmem:[%s586_s1 + $0x28] sm:$0xff]  }
   0x3   :  { %404 = vmatpush3.bf16.msra.mxu0 %v451_v0  ;;  %443 = vmatpush3.bf16.msra.mxu1 %v451_v0  ;;  %v460_v5 = vld [vmem:[%s587_s0 + $0x20] sm:$0xff]   ;;  %v457_v8 = vld [vmem:[%s586_s1 + $0x30] sm:$0xff]   ;;  %v458_v9 = vld [vmem:[%s586_s1 + $0x38] sm:$0xff]  }
   0x4   :  { %405 = vmatprep.subr.bf16.mxu0 %v452_v1  ;;  %436 = vmatprep.subr.bf16.mxu1 %v452_v1  ;;  %v455_v6 = vld [vmem:[%s586_s1 + $0x20] sm:$0xff]   ;;  %v461_v10 = vld [vmem:[%s587_s0 + $0x8] sm:$0xff]   ;;  %v463_v12 = vld [vmem:[%s587_s0 + $0x10] sm:$0xff]  }
   0x5   :  { %419 = vmatprep.mubr.bf16.mxu0 %v459_v4  ;;  %427 = vmatprep.mubr.bf16.mxu1 %v460_v5  ;;  %v462_v11 = vld [vmem:[%s587_s0 + $0x28] sm:$0xff]   ;;  %v464_v13 = vld [vmem:[%s587_s0 + $0x30] sm:$0xff]   ;;  %v465_v14 = vld [vmem:[%s587_s0 + $0x18] sm:$0xff]  }
   0x6   :  { %v466_v15 = vld [vmem:[%s587_s0 + $0x38] sm:$0xff]   ;;  %v386_v16 = vld [vmem:[%s588_s2] ss:$0 sm:$0xff] }
   0x7   :  { %406 = vmatpush3.bf16.msra.mxu0 %v452_v1  ;;  %444 = vmatpush3.bf16.msra.mxu1 %v452_v1 }
   0x8   :  { %407 = vmatprep.subr.bf16.mxu0 %v453_v2  ;;  %437 = vmatprep.subr.bf16.mxu1 %v453_v2 }
   0xb   :  { %408 = vmatpush3.bf16.msra.mxu0 %v453_v2  ;;  %445 = vmatpush3.bf16.msra.mxu1 %v453_v2 }
   0xc   :  { %409 = vmatprep.subr.bf16.mxu0 %v454_v3  ;;  %438 = vmatprep.subr.bf16.mxu1 %v454_v3 }
   0xf   :  { %410 = vmatpush3.bf16.msra.mxu0 %v454_v3  ;;  %446 = vmatpush3.bf16.msra.mxu1 %v454_v3 }
  0x10   :  { %411 = vmatprep.subr.bf16.mxu0 %v455_v6  ;;  %439 = vmatprep.subr.bf16.mxu1 %v455_v6 }
  0x13   :  { %412 = vmatpush3.bf16.msra.mxu0 %v455_v6  ;;  %447 = vmatpush3.bf16.msra.mxu1 %v455_v6 }
  0x14   :  { %413 = vmatprep.subr.bf16.mxu0 %v456_v7  ;;  %440 = vmatprep.subr.bf16.mxu1 %v456_v7 }
  0x17   :  { %414 = vmatpush3.bf16.msra.mxu0 %v456_v7  ;;  %448 = vmatpush3.bf16.msra.mxu1 %v456_v7 }
  0x18   :  { %415 = vmatprep.subr.bf16.mxu0 %v457_v8  ;;  %441 = vmatprep.subr.bf16.mxu1 %v457_v8 }
  0x1b   :  { %416 = vmatpush3.bf16.msra.mxu0 %v457_v8  ;;  %449 = vmatpush3.bf16.msra.mxu1 %v457_v8 }
  0x1c   :  { %417 = vmatprep.subr.bf16.mxu0 %v458_v9  ;;  %442 = vmatprep.subr.bf16.mxu1 %v458_v9 }
  0x1f   :  { %418 = vmatpush3.bf16.msra.mxu0 %v458_v9  ;;  %450 = vmatpush3.bf16.msra.mxu1 %v458_v9 }
  0x22   :  { %420 = vmatmul.mubr.bf16.vlgmr.msra.gmra.mrb[0].mxu0 %v461_v10  ;;  %428 = vmatmul.mubr.bf16.vlgmr.msra.gmra.mrb[0].mxu1 %v462_v11 }
  0x23   :  { %423 = vmatprep.mubr.bf16.mxu0 %v463_v12  ;;  %431 = vmatprep.mubr.bf16.mxu1 %v464_v13 }
  0x2a   :  { %424 = vmatmul.mubr.bf16.gmra.mrb[4].mxu0 %v465_v14  ;;  %432 = vmatmul.mubr.bf16.gmra.mrb[4].mxu1 %v466_v15 }
  0xf5   :  { %v421_v17 = vpop.f32.mrb[0].mxu0  ;;  %v429_v18 = vpop.f32.mrb[0].mxu1 }
  0xf6   :  { %v336_v19 = vadd.f32 %v421_v17, %v386_v16  ;;  %v344_v20 = vadd.f32 %v429_v18, %v386_v16  ;;  %v213_v21 = vpop.f32.mrb[1].mxu0  ;;  %v245_v22 = vpop.f32.mrb[1].mxu1 }
  0xf7   :  { %v334_v23 = vadd.f32 %v386_v16, %v213_v21  ;;  %v342_v24 = vadd.f32 %v386_v16, %v245_v22  ;;  %v422_v25 = vpop.f32.mrb[2].mxu0  ;;  %v430_v26 = vpop.f32.mrb[2].mxu1 }
  0xf8   :  { %352 = vst [vmem:[%s589_s3 + $0x10] sm:$0xff] %v336_v19  ;;  %360 = vst [vmem:[%s589_s3 + $0x50] sm:$0xff] %v344_v20  ;;  %v337_v27 = vadd.f32 %v422_v25, %v386_v16  ;;  %v345_v28 = vadd.f32 %v430_v26, %v386_v16  ;;  %v216_v29 = vpop.f32.mrb[3].mxu0  ;;  %v248_v30 = vpop.f32.mrb[3].mxu1 }
  0xf9   :  { %350 = vst [vmem:[%s589_s3] sm:$0xff] %v334_v23  ;;  %358 = vst [vmem:[%s589_s3 + $0x40] sm:$0xff] %v342_v24  ;;  %v335_v31 = vadd.f32 %v386_v16, %v216_v29  ;;  %v343_v32 = vadd.f32 %v386_v16, %v248_v30 }
  0xfa   :  { %353 = vst [vmem:[%s589_s3 + $0x18] sm:$0xff] %v337_v27  ;;  %361 = vst [vmem:[%s589_s3 + $0x58] sm:$0xff] %v345_v28 }
  0xfb   :  { %351 = vst [vmem:[%s589_s3 + $0x8] sm:$0xff] %v335_v31  ;;  %359 = vst [vmem:[%s589_s3 + $0x48] sm:$0xff] %v343_v32 }
  0xfd   :  { %v425_v33 = vpop.f32.mrb[4].mxu0  ;;  %v433_v34 = vpop.f32.mrb[4].mxu1 }
  0xfe   :  { %v340_v35 = vadd.f32 %v425_v33, %v386_v16  ;;  %v348_v36 = vadd.f32 %v433_v34, %v386_v16  ;;  %v229_v37 = vpop.f32.mrb[5].mxu0  ;;  %v261_v38 = vpop.f32.mrb[5].mxu1 }
  0xff   :  { %v338_v39 = vadd.f32 %v386_v16, %v229_v37  ;;  %v346_v40 = vadd.f32 %v386_v16, %v261_v38  ;;  %v426_v41 = vpop.f32.mrb[6].mxu0  ;;  %v434_v42 = vpop.f32.mrb[6].mxu1 }
 0x100   :  { %356 = vst [vmem:[%s589_s3 + $0x30] sm:$0xff] %v340_v35  ;;  %364 = vst [vmem:[%s589_s3 + $0x70] sm:$0xff] %v348_v36  ;;  %v341_v43 = vadd.f32 %v426_v41, %v386_v16  ;;  %v349_v44 = vadd.f32 %v434_v42, %v386_v16  ;;  %v232_v45 = vpop.f32.mrb[7].mxu0  ;;  %v264_v46 = vpop.f32.mrb[7].mxu1 }
 0x101   :  { %354 = vst [vmem:[%s589_s3 + $0x20] sm:$0xff] %v338_v39  ;;  %362 = vst [vmem:[%s589_s3 + $0x60] sm:$0xff] %v346_v40  ;;  %v339_v47 = vadd.f32 %v386_v16, %v232_v45  ;;  %v347_v48 = vadd.f32 %v386_v16, %v264_v46 }
 0x102   :  { %357 = vst [vmem:[%s589_s3 + $0x38] sm:$0xff] %v341_v43  ;;  %365 = vst [vmem:[%s589_s3 + $0x78] sm:$0xff] %v349_v44 }
 0x103   :  { %355 = vst [vmem:[%s589_s3 + $0x28] sm:$0xff] %v339_v47  ;;  %363 = vst [vmem:[%s589_s3 + $0x68] sm:$0xff] %v347_v48 }

// kernel: wide_basic_forward.9
= control target key start
LH: loop header
LB: loop body
LE: loop exit
PB: predicated region body
PF: predicated region fallthrough
CT: control target
= control target key end

     0   :  { %s5031_s12 = smov 0   ;;  %s5033_s13 = smov 0   ;;  %s5554_s0 = inlined_call_operand.vmem [shape: f32[806,128], index: 0, kind: input, shape index: {}]   ;;  %s5555_s1 = inlined_call_operand.vmem [shape: bf16[1152,128], index: 1, kind: input, shape index: {}]   ;;  %s5556_s2 = inlined_call_operand.vmem [shape: f32[1,128], index: 2, kind: input, shape index: {}]   ;;  %s5557_s3 = inlined_call_operand.vmem [shape: f32[768,128], index: 3, kind: output, shape index: {}]  }
   0x1   :  { %s5035_s14 = smov 0  }
   0x2 LB: > { %s25_s15 = sadd.s32 1, %s5005_s13  ;;  %p3880_p0 = scmp.ge.s32.totalorder %s5009_s14, 1  ;;  %s5009_s14 = sphi %s5035_s14, %s13_s14   ;;  %s5005_s13 = sphi %s5033_s13, %s5559_s13   ;;  %s5001_s12 = sphi %s5031_s12, %s5558_s12  }
   0x3   : > { %p27_p1 = scmp.ge.s32.totalorder %s25_s15, 3  ;;  %p134_p2 = scmp.lt.s32.totalorder %s5009_s14, 4 }
   0x5   : > { %s5561_s15 = smov (%p27_p1, %s25_s15), 0  ;;  %p135_p3 = pnand %p3880_p0, %p134_p2 }
   0x6   : > { %s3881_s16 = sshll.u32 (!%p135_p3), %s5001_s12, 5  ;;  %s3883_s17 = sshll.u32 (!%p135_p3), %s5001_s12, 8 }
   0x7   : > { %138 = sbr.rel (%p135_p3) target bundleno = 565 (0x235), region = 28  ;;  %p169_p4 = scmp.lt.s32.totalorder (!%p135_p3), %s3881_s16, 95 }
   0x8   : > { %s5052_s20 = scalar_lea.vmem (!%p135_p3), %s5554_s0, %s3883_s17 }
   0x9   : > { %v217_v0 = vld [vmem:[%s5052_s20] sm:$0xff] (!%p135_p3)  ;;  %v219_v1 = vld [vmem:[%s5052_s20 + $0x8] sm:$0xff] (!%p135_p3)  ;;  %v221_v2 = vld [vmem:[%s5052_s20 + $0x10] sm:$0xff] (!%p135_p3) }
   0xa   : > { %218 = vst [vmem:[#allocation2] sm:$0xff] (!%p135_p3), %v217_v0  ;;  %220 = vst [vmem:[#allocation2 + $0x8] sm:$0xff] (!%p135_p3), %v219_v1  ;;  %v223_v3 = vld [vmem:[%s5052_s20 + $0x18] sm:$0xff] (!%p135_p3)  ;;  %v225_v4 = vld [vmem:[%s5052_s20 + $0x20] sm:$0xff] (!%p135_p3) }
   0xb   : > { %222 = vst [vmem:[#allocation2 + $0x10] sm:$0xff] (!%p135_p3), %v221_v2  ;;  %v227_v5 = vld [vmem:[%s5052_s20 + $0x28] sm:$0xff] (!%p135_p3)  ;;  %224 = vst [vmem:[#allocation2 + $0x18] sm:$0xff] (!%p135_p3), %v223_v3  ;;  %v229_v6 = vld [vmem:[%s5052_s20 + $0x30] sm:$0xff] (!%p135_p3) }
   0xc   : > { %226 = vst [vmem:[#allocation2 + $0x20] sm:$0xff] (!%p135_p3), %v225_v4  ;;  %228 = vst [vmem:[#allocation2 + $0x28] sm:$0xff] (!%p135_p3), %v227_v5  ;;  %v231_v7 = vld [vmem:[%s5052_s20 + $0x38] sm:$0xff] (!%p135_p3)  ;;  %v233_v8 = vld [vmem:[%s5052_s20 + $0x40] sm:$0xff] (!%p135_p3) }
   0xd   : > { %230 = vst [vmem:[#allocation2 + $0x30] sm:$0xff] (!%p135_p3), %v229_v6  ;;  %232 = vst [vmem:[#allocation2 + $0x38] sm:$0xff] (!%p135_p3), %v231_v7  ;;  %v235_v9 = vld [vmem:[%s5052_s20 + $0x48] sm:$0xff] (!%p135_p3)  ;;  %v237_v10 = vld [vmem:[%s5052_s20 + $0x50] sm:$0xff] (!%p135_p3) }
   0xe   : > { %s5563_s16 = smov (!%p169_p4, %s3881_s16), 95  ;;  %234 = vst [vmem:[#allocation2 + $0x40] sm:$0xff] %v233_v8  ;;  %v239_v11 = vld [vmem:[%s5052_s20 + $0x58] sm:$0xff]  ;;  %236 = vst [vmem:[#allocation2 + $0x48] sm:$0xff] %v235_v9  ;;  %v241_v12 = vld [vmem:[%s5052_s20 + $0x60] sm:$0xff] }
   0xf   : > { %s3882_s21 = sshll.u32 %s5563_s16, 3  ;;  %238 = vst [vmem:[#allocation2 + $0x50] sm:$0xff] %v237_v10  ;;  %240 = vst [vmem:[#allocation2 + $0x58] sm:$0xff] %v239_v11  ;;  %v243_v13 = vld [vmem:[%s5052_s20 + $0x68] sm:$0xff]  ;;  %v245_v14 = vld [vmem:[%s5052_s20 + $0x70] sm:$0xff] }
  0x10   : > { %s5069_s24 = scalar_lea.vmem %s5557_s3, %s3882_s21  ;;  %242 = vst [vmem:[#allocation2 + $0x60] sm:$0xff] %v241_v12  ;;  %244 = vst [vmem:[#allocation2 + $0x68] sm:$0xff] %v243_v13  ;;  %v247_v15 = vld [vmem:[%s5052_s20 + $0x78] sm:$0xff]  ;;  %v249_v16 = vld [vmem:[%s5052_s20 + $0x80] sm:$0xff] }
  0x11   : > { %246 = vst [vmem:[#allocation2 + $0x70] sm:$0xff] %v245_v14  ;;  %v251_v17 = vld [vmem:[%s5052_s20 + $0x88] sm:$0xff]  ;;  %248 = vst [vmem:[#allocation2 + $0x78] sm:$0xff] %v247_v15  ;;  %v253_v18 = vld [vmem:[%s5052_s20 + $0x90] sm:$0xff] }
  0x12   : > { %250 = vst [vmem:[#allocation2 + $0x80] sm:$0xff] %v249_v16  ;;  %252 = vst [vmem:[#allocation2 + $0x88] sm:$0xff] %v251_v17  ;;  %v255_v19 = vld [vmem:[%s5052_s20 + $0x98] sm:$0xff]  ;;  %v257_v20 = vld [vmem:[%s5052_s20 + $0xa0] sm:$0xff] }
  0x13   : > { %254 = vst [vmem:[#allocation2 + $0x90] sm:$0xff] %v253_v18  ;;  %256 = vst [vmem:[#allocation2 + $0x98] sm:$0xff] %v255_v19  ;;  %v259_v21 = vld [vmem:[%s5052_s20 + $0xa8] sm:$0xff]  ;;  %v261_v22 = vld [vmem:[%s5052_s20 + $0xb0] sm:$0xff] }
  0x14   : > { %258 = vst [vmem:[#allocation2 + $0xa0] sm:$0xff] %v257_v20  ;;  %v263_v23 = vld [vmem:[%s5052_s20 + $0xb8] sm:$0xff]  ;;  %260 = vst [vmem:[#allocation2 + $0xa8] sm:$0xff] %v259_v21  ;;  %v265_v24 = vld [vmem:[%s5052_s20 + $0xc0] sm:$0xff] }
  0x15   : > { %262 = vst [vmem:[#allocation2 + $0xb0] sm:$0xff] %v261_v22  ;;  %264 = vst [vmem:[#allocation2 + $0xb8] sm:$0xff] %v263_v23  ;;  %v267_v25 = vld [vmem:[%s5052_s20 + $0xc8] sm:$0xff]  ;;  %v269_v26 = vld [vmem:[%s5052_s20 + $0xd0] sm:$0xff] }
  0x16   : > { %266 = vst [vmem:[#allocation2 + $0xc0] sm:$0xff] %v265_v24  ;;  %268 = vst [vmem:[#allocation2 + $0xc8] sm:$0xff] %v267_v25  ;;  %v271_v27 = vld [vmem:[%s5052_s20 + $0xd8] sm:$0xff]  ;;  %v273_v28 = vld [vmem:[%s5052_s20 + $0xe0] sm:$0xff] }
  0x17   : > { %270 = vst [vmem:[#allocation2 + $0xd0] sm:$0xff] %v269_v26  ;;  %v275_v29 = vld [vmem:[%s5052_s20 + $0xe8] sm:$0xff]  ;;  %272 = vst [vmem:[#allocation2 + $0xd8] sm:$0xff] %v271_v27  ;;  %v277_v30 = vld [vmem:[%s5052_s20 + $0xf0] sm:$0xff] }
  0x18   : > { %274 = vst [vmem:[#allocation2 + $0xe0] sm:$0xff] %v273_v28  ;;  %276 = vst [vmem:[#allocation2 + $0xe8] sm:$0xff] %v275_v29  ;;  %v279_v31 = vld [vmem:[%s5052_s20 + $0xf8] sm:$0xff]  ;;  %v281_v32 = vld [vmem:[%s5052_s20 + $0x100] sm:$0xff] }
  0x19   : > { %278 = vst [vmem:[#allocation2 + $0xf0] sm:$0xff] %v277_v30  ;;  %280 = vst [vmem:[#allocation2 + $0xf8] sm:$0xff] %v279_v31  ;;  %v283_v33 = vld [vmem:[%s5052_s20 + $0x108] sm:$0xff]  ;;  %v285_v34 = vld [vmem:[%s5052_s20 + $0x110] sm:$0xff] }
  0x1a   : > { %282 = vst [vmem:[#allocation2 + $0x100] sm:$0xff] %v281_v32  ;;  %v287_v35 = vld [vmem:[%s5052_s20 + $0x118] sm:$0xff]  ;;  %284 = vst [vmem:[#allocation2 + $0x108] sm:$0xff] %v283_v33  ;;  %v3884_v36 = vld [vmem:[%s5052_s20 + $0x120] sm:$0x3f] }
  0x1b   : > { %286 = vst [vmem:[#allocation2 + $0x110] sm:$0xff] %v285_v34  ;;  %288 = vst [vmem:[#allocation2 + $0x118] sm:$0xff] %v287_v35 }
  0x1c   : > { %299 = vst [vmem:[#allocation2 + $0x120] sm:$0x3f] %v3884_v36 }
  0x1d   : > { %303 = vsyncadd [#allocation4], 4704 }
  0x1e   : > { %4997 = dma.done.wait [#allocation4], 4704 }
  0x1f   : > { %4998 = vsyncadd [#allocation4], 4294962592  ;;  %v4905_v37 = vld [vmem:[%s5555_s1] sm:$0xff]   ;;  %v4907_v39 = vld [vmem:[%s5555_s1 + $0x8] sm:$0xff]  }
  0x20   : > { %v4906_v38 = vld [vmem:[%s5555_s1 + $0x100] sm:$0xff]   ;;  %4177 = vmatprep.subr.bf16.mxu1 %v4905_v37  ;;  %v4908_v40 = vld [vmem:[%s5555_s1 + $0x108] sm:$0xff]   ;;  %v4909_v41 = vld [vmem:[%s5555_s1 + $0x10] sm:$0xff]  }
  0x21   : > { %4369 = vmatprep.subr.bf16.mxu0 %v4906_v38  ;;  %4178 = vmatpush3.bf16.msra.mxu1 %v4905_v37  ;;  %v4910_v42 = vld [vmem:[%s5555_s1 + $0x110] sm:$0xff]   ;;  %v4911_v43 = vld [vmem:[%s5555_s1 + $0x18] sm:$0xff]   ;;  %v4913_v45 = vld [vmem:[%s5555_s1 + $0x20] sm:$0xff]  }
  0x22   : > { %4370 = vmatpush3.bf16.msra.mxu0 %v4906_v38  ;;  %4179 = vmatprep.subr.bf16.mxu1 %v4907_v39  ;;  %v4912_v44 = vld [vmem:[%s5555_s1 + $0x118] sm:$0xff]   ;;  %v4914_v46 = vld [vmem:[%s5555_s1 + $0x120] sm:$0xff]   ;;  %v4915_v47 = vld [vmem:[%s5555_s1 + $0x28] sm:$0xff]  }
  0x23   : > { %4371 = vmatprep.subr.bf16.mxu0 %v4908_v40  ;;  %v339_v48 = vld [vmem:[#allocation2] sm:$0xff]  ;;  %v340_v49 = vld [vmem:[#allocation2 + $0x8] sm:$0xff]  ;;  %v1815_v50 = vld [vmem:[#allocation2 + $0x13] sm:$0xff] }
  0x24   : > { %v4916_v51 = vld [vmem:[%s5555_s1 + $0x128] sm:$0xff]   ;;  %v371_v52 = vpack.c.bf16 %v340_v49, %v339_v48  ;;  %v1816_v53 = vld [vmem:[#allocation2 + $0x1b] sm:$0xff]  ;;  %v4917_v55 = vld [vmem:[%s5555_s1 + $0x30] sm:$0xff]  }
  0x25   : > { %4180 = vmatpush3.bf16.msra.mxu1 %v4907_v39  ;;  %v1847_v54 = vpack.c.bf16 %v1816_v53, %v1815_v50  ;;  %v4918_v56 = vld [vmem:[%s5555_s1 + $0x130] sm:$0xff]   ;;  %v4919_v57 = vld [vmem:[%s5555_s1 + $0x38] sm:$0xff]   ;;  %v4921_v61 = vld [vmem:[%s5555_s1 + $0x40] sm:$0xff]  }
  0x26   : > { %4372 = vmatpush3.bf16.msra.mxu0 %v4908_v40  ;;  %4181 = vmatprep.subr.bf16.mxu1 %v4909_v41  ;;  %v4920_v58 = vld [vmem:[%s5555_s1 + $0x138] sm:$0xff]   ;;  %v341_v59 = vld [vmem:[#allocation2 + $0x10] sm:$0xff]  ;;  %v1817_v62 = vld [vmem:[#allocation2 + $0x23] sm:$0xff] }
  0x27   : > { %4373 = vmatprep.subr.bf16.mxu0 %v4910_v42  ;;  %4193 = vmatprep.mubr.bf16.mxu1 %v371_v52  ;;  %v342_v60 = vld [vmem:[#allocation2 + $0x18] sm:$0xff]  ;;  %v1818_v63 = vld [vmem:[#allocation2 + $0x2b] sm:$0xff]  ;;  %v4922_v0 = vld [vmem:[%s5555_s1 + $0x140] sm:$0xff]  }
  0x28   : > { %4385 = vmatprep.mubr.bf16.mxu0 %v1847_v54  ;;  %v343_v1 = vld [vmem:[#allocation2 + $0x20] sm:$0xff]  ;;  %v344_v2 = vld [vmem:[#allocation2 + $0x28] sm:$0xff]  ;;  %v372_v3 = vpack.c.bf16 %v342_v60, %v341_v59  ;;  %v1819_v4 = vld [vmem:[#allocation2 + $0x33] sm:$0xff]  ;;  %v1848_v6 = vpack.c.bf16 %v1818_v63, %v1817_v62 }
  0x29   : > { %4182 = vmatpush3.bf16.msra.mxu1 %v4909_v41  ;;  %v1820_v5 = vld [vmem:[#allocation2 + $0x3b] sm:$0xff]  ;;  %v4923_v7 = vld [vmem:[%s5555_s1 + $0x148] sm:$0xff]   ;;  %v373_v8 = vpack.c.bf16 %v344_v2, %v343_v1  ;;  %v345_v10 = vld [vmem:[#allocation2 + $0x30] sm:$0xff] }
  0x2a   : > { %4374 = vmatpush3.bf16.msra.mxu0 %v4910_v42  ;;  %4183 = vmatprep.subr.bf16.mxu1 %v4911_v43  ;;  %v1849_v9 = vpack.c.bf16 %v1820_v5, %v1819_v4  ;;  %v346_v11 = vld [vmem:[#allocation2 + $0x38] sm:$0xff]  ;;  %v4924_v12 = vld [vmem:[%s5555_s1 + $0x48] sm:$0xff]   ;;  %v347_v15 = vld [vmem:[#allocation2 + $0x40] sm:$0xff] }
  0x2b   : > { %4375 = vmatprep.subr.bf16.mxu0 %v4912_v44  ;;  %v1821_v13 = vld [vmem:[#allocation2 + $0x43] sm:$0xff]  ;;  %v1822_v14 = vld [vmem:[#allocation2 + $0x4b] sm:$0xff]  ;;  %v1823_v18 = vld [vmem:[#allocation2 + $0x53] sm:$0xff]  ;;  %v374_v21 = vpack.c.bf16 %v346_v11, %v345_v10 }
  0x2c   : > { %v4925_v16 = vld [vmem:[%s5555_s1 + $0x150] sm:$0xff]   ;;  %v348_v17 = vld [vmem:[#allocation2 + $0x48] sm:$0xff]  ;;  %v1824_v20 = vld [vmem:[#allocation2 + $0x5b] sm:$0xff]  ;;  %v1850_v22 = vpack.c.bf16 %v1822_v14, %v1821_v13 }
  0x2d   : > { %4184 = vmatpush3.bf16.msra.mxu1 %v4911_v43  ;;  %v4927_v19 = vld [vmem:[%s5555_s1 + $0x50] sm:$0xff]   ;;  %v375_v23 = vpack.c.bf16 %v348_v17, %v347_v15  ;;  %v4926_v24 = vld [vmem:[%s5555_s1 + $0x158] sm:$0xff]   ;;  %v1851_v25 = vpack.c.bf16 %v1824_v20, %v1823_v18  ;;  %v1825_v29 = vld [vmem:[#allocation2 + $0x63] sm:$0xff] }
  0x2e   : > { %4376 = vmatpush3.bf16.msra.mxu0 %v4912_v44  ;;  %4185 = vmatprep.subr.bf16.mxu1 %v4913_v45  ;;  %v349_v26 = vld [vmem:[#allocation2 + $0x50] sm:$0xff]  ;;  %v350_v27 = vld [vmem:[#allocation2 + $0x58] sm:$0xff]  ;;  %v4928_v31 = vld [vmem:[%s5555_s1 + $0x160] sm:$0xff]  }
  0x2f   : > { %4377 = vmatprep.subr.bf16.mxu0 %v4914_v46  ;;  %v4930_v28 = vld [vmem:[%s5555_s1 + $0x58] sm:$0xff]   ;;  %v1826_v30 = vld [vmem:[#allocation2 + $0x6b] sm:$0xff]  ;;  %v351_v32 = vld [vmem:[#allocation2 + $0x60] sm:$0xff]  ;;  %v376_v36 = vpack.c.bf16 %v350_v27, %v349_v26 }
  0x30   : > { %v352_v33 = vld [vmem:[#allocation2 + $0x68] sm:$0xff]  ;;  %v1827_v34 = vld [vmem:[#allocation2 + $0x73] sm:$0xff]  ;;  %v1828_v35 = vld [vmem:[#allocation2 + $0x7b] sm:$0xff]  ;;  %v1852_v38 = vpack.c.bf16 %v1826_v30, %v1825_v29 }
  0x31   : > { %4186 = vmatpush3.bf16.msra.mxu1 %v4913_v45  ;;  %v4933_v37 = vld [vmem:[%s5555_s1 + $0x60] sm:$0xff]   ;;  %v377_v39 = vpack.c.bf16 %v352_v33, %v351_v32  ;;  %v1853_v40 = vpack.c.bf16 %v1828_v35, %v1827_v34  ;;  %v4929_v41 = vld [vmem:[%s5555_s1 + $0x168] sm:$0xff]   ;;  %v353_v42 = vld [vmem:[#allocation2 + $0x70] sm:$0xff] }
  0x32   : > { %4378 = vmatpush3.bf16.msra.mxu0 %v4914_v46  ;;  %4187 = vmatprep.subr.bf16.mxu1 %v4915_v47  ;;  %v354_v43 = vld [vmem:[#allocation2 + $0x78] sm:$0xff]  ;;  %v4935_v44 = vld [vmem:[%s5555_s1 + $0x68] sm:$0xff]   ;;  %v4931_v49 = vld [vmem:[%s5555_s1 + $0x170] sm:$0xff]  }
  0x33   : > { %4379 = vmatprep.subr.bf16.mxu0 %v4916_v51  ;;  %v1829_v45 = vld [vmem:[#allocation2 + $0x83] sm:$0xff]  ;;  %v1830_v46 = vld [vmem:[#allocation2 + $0x8b] sm:$0xff]  ;;  %v2184_v50 = vld [vmem:[#allocation2 + $0x14] sm:$0xff]  ;;  %v378_v52 = vpack.c.bf16 %v354_v43, %v353_v42 }
  0x34   : > { %v356_v48 = vld [vmem:[#allocation2 + $0x88] sm:$0xff]  ;;  %v4937_v53 = vld [vmem:[%s5555_s1 + $0x70] sm:$0xff]   ;;  %v1854_v54 = vpack.c.bf16 %v1830_v46, %v1829_v45  ;;  %v358_v59 = vld [vmem:[#allocation2 + $0x98] sm:$0xff] }
  0x35   : > { %4188 = vmatpush3.bf16.msra.mxu1 %v4915_v47  ;;  %v355_v47 = vld [vmem:[#allocation2 + $0x80] sm:$0xff]  ;;  %v4939_v62 = vld [vmem:[%s5555_s1 + $0x78] sm:$0xff]   ;;  %v360_v1 = vld [vmem:[#allocation2 + $0xa8] sm:$0xff] }
  0x36   : > { %4380 = vmatpush3.bf16.msra.mxu0 %v4916_v51  ;;  %4189 = vmatprep.subr.bf16.mxu1 %v4917_v55  ;;  %v2185_v51 = vld [vmem:[#allocation2 + $0x1c] sm:$0xff]  ;;  %v2186_v60 = vld [vmem:[#allocation2 + $0x24] sm:$0xff]  ;;  %v2188_v2 = vld [vmem:[#allocation2 + $0x34] sm:$0xff] }
  0x37   : > { %4381 = vmatprep.subr.bf16.mxu0 %v4918_v56  ;;  %v4934_v63 = vld [vmem:[%s5555_s1 + $0x180] sm:$0xff]   ;;  %v361_v10 = vld [vmem:[#allocation2 + $0xb0] sm:$0xff]  ;;  %v362_v11 = vld [vmem:[#allocation2 + $0xb8] sm:$0xff] }
  0x38   : > { %v5198_v5 = vld [vmem:[%s5555_s1 + $0x80] sm:$0xff]   ;;  %v2191_v13 = vld [vmem:[#allocation2 + $0x4c] sm:$0xff]  ;;  %v2196_v30 = vld [vmem:[#allocation2 + $0x74] sm:$0xff] }
  0x39   : > { %4190 = vmatpush3.bf16.msra.mxu1 %v4917_v55  ;;  %v379_v55 = vpack.c.bf16 %v356_v48, %v355_v47  ;;  %v363_v14 = vld [vmem:[#allocation2 + $0xc0] sm:$0xff]  ;;  %v364_v15 = vld [vmem:[#allocation2 + $0xc8] sm:$0xff]  ;;  %v4938_v18 = vld [vmem:[%s5555_s1 + $0x190] sm:$0xff]  }
  0x3a   : > { %4382 = vmatpush3.bf16.msra.mxu0 %v4918_v56  ;;  %4191 = vmatprep.subr.bf16.mxu1 %v4919_v57  ;;  %v2216_v56 = vpack.c.bf16 %v2185_v51, %v2184_v50  ;;  %v2193_v17 = vld [vmem:[#allocation2 + $0x5c] sm:$0xff]  ;;  %v2194_v26 = vld [vmem:[#allocation2 + $0x64] sm:$0xff]  ;;  %v2195_v27 = vld [vmem:[#allocation2 + $0x6c] sm:$0xff] }
  0x3b   : > { %4383 = vmatprep.subr.bf16.mxu0 %v4920_v58  ;;  %v368_v29 = vld [vmem:[#allocation2 + $0xe8] sm:$0xff]  ;;  %v4942_v32 = vld [vmem:[%s5555_s1 + $0x1a0] sm:$0xff]   ;;  %v5225_v34 = vpack.c.bf16 %v2195_v27, %v2194_v26  ;;  %v4946_v46 = vld [vmem:[%s5555_s1 + $0x1b0] sm:$0xff]  }
  0x3c   : > { %v708_v42 = vld [vmem:[#allocation2 + $0x1] sm:$0xff]  ;;  %v709_v43 = vld [vmem:[#allocation2 + $0x9] sm:$0xff]  ;;  %v710_v51 = vld [vmem:[#allocation2 + $0x11] sm:$0xff] }
  0x3d   : > { %4192 = vmatpush3.bf16.msra.mxu1 %v4919_v57  ;;  %v4932_v57 = vld [vmem:[%s5555_s1 + $0x178] sm:$0xff]  }
  0x3e   : > { %4384 = vmatpush3.bf16.msra.mxu0 %v4920_v58  ;;  %4225 = vmatprep.subr.bf16.mxu1 %v4921_v61  ;;  %v357_v58 = vld [vmem:[#allocation2 + $0x90] sm:$0xff]  ;;  %v2201_v45 = vld [vmem:[#allocation2 + $0x9c] sm:$0xff] }
  0x3f   : > { %4417 = vmatprep.subr.bf16.mxu0 %v4922_v0  ;;  %v380_v4 = vpack.c.bf16 %v358_v59, %v357_v58  ;;  %v2204_v58 = vld [vmem:[#allocation2 + $0xb4] sm:$0xff]  ;;  %v2205_v59 = vld [vmem:[#allocation2 + $0xbc] sm:$0xff] }
  0x40   : > { %4194 = vmatmul.mubr.bf16.vlgmr.msra.gmra.mrb[0].mxu1 %v372_v3  ;;  %v2189_v3 = vld [vmem:[#allocation2 + $0x3c] sm:$0xff]  ;;  %v2212_v26 = vld [vmem:[#allocation2 + $0xf4] sm:$0xff] }
  0x41   : > { %4386 = vmatmul.mubr.bf16.vlgmr.msra.gmra.mrb[0].mxu0 %v1848_v6  ;;  %4226 = vmatpush3.bf16.msra.mxu1 %v4921_v61  ;;  %v2187_v61 = vld [vmem:[#allocation2 + $0x2c] sm:$0xff]  ;;  %v2213_v27 = vld [vmem:[#allocation2 + $0xfc] sm:$0xff] }
  0x42   : > { %4418 = vmatpush3.bf16.msra.mxu0 %v4922_v0  ;;  %4197 = vmatprep.mubr.bf16.mxu1 %v373_v8  ;;  %v359_v0 = vld [vmem:[#allocation2 + $0xa0] sm:$0xff]  ;;  %v5200_v6 = vpack.c.bf16 %v2187_v61, %v2186_v60  ;;  %v5202_v8 = vpack.c.bf16 %v2189_v3, %v2188_v2  ;;  %v4943_v2 = vld [vmem:[%s5555_s1 + $0x88] sm:$0xff]  }
  0x43   : > { %4419 = vmatprep.subr.bf16.mxu0 %v4923_v7  ;;  %4389 = vmatprep.mubr.bf16.mxu0 %v1849_v9  ;;  %v4936_v9 = vld [vmem:[%s5555_s1 + $0x188] sm:$0xff]   ;;  %v5249_v60 = vld [vmem:[%s5555_s1 + $0x1c0] sm:$0xff]  }
  0x44   : > { %4227 = vmatprep.subr.bf16.mxu1 %v4924_v12  ;;  %v715_v3 = vld [vmem:[#allocation2 + $0x39] sm:$0xff] }
  0x45   : > { %4228 = vmatpush3.bf16.msra.mxu1 %v4924_v12  ;;  %v2190_v12 = vld [vmem:[#allocation2 + $0x44] sm:$0xff] }
  0x46   : > { %4420 = vmatpush3.bf16.msra.mxu0 %v4923_v7  ;;  %4229 = vmatprep.subr.bf16.mxu1 %v4927_v19  ;;  %v381_v7 = vpack.c.bf16 %v360_v1, %v359_v0  ;;  %v5213_v20 = vpack.c.bf16 %v2191_v13, %v2190_v12  ;;  %v5253_v0 = vpack.c.bf16 %v2205_v59, %v2204_v58  ;;  %v714_v1 = vld [vmem:[#allocation2 + $0x31] sm:$0xff]  ;;  %v2209_v13 = vld [vmem:[#allocation2 + $0xdc] sm:$0xff]  ;;  %v733_v59 = vld [vmem:[#allocation2 + $0xc9] sm:$0xff] }
  0x47   : > { %4421 = vmatprep.subr.bf16.mxu0 %v4925_v16  ;;  %v2208_v12 = vld [vmem:[#allocation2 + $0xd4] sm:$0xff]  ;;  %v732_v58 = vld [vmem:[#allocation2 + $0xc1] sm:$0xff] }
  0x48   : > { %4198 = vmatmul.mubr.bf16.gmra.mrb[4].mxu1 %v374_v21  ;;  %v383_v21 = vpack.c.bf16 %v364_v15, %v363_v14  ;;  %v743_v14 = vpack.c.bf16 %v715_v3, %v714_v1  ;;  %v752_v1 = vpack.c.bf16 %v733_v59, %v732_v58  ;;  %v737_v3 = vld [vmem:[#allocation2 + $0xe9] sm:$0xff] }
  0x49   : > { %4390 = vmatmul.mubr.bf16.gmra.mrb[4].mxu0 %v1850_v22  ;;  %4201 = vmatprep.mubr.bf16.mxu1 %v375_v23  ;;  %v365_v23 = vld [vmem:[#allocation2 + $0xd0] sm:$0xff]  ;;  %v1097_v58 = vld [vmem:[#allocation2 + $0xa2] sm:$0xff] }
  0x4a   : > { %4422 = vmatpush3.bf16.msra.mxu0 %v4925_v16  ;;  %4393 = vmatprep.mubr.bf16.mxu0 %v1851_v25  ;;  %v2192_v16 = vld [vmem:[#allocation2 + $0x54] sm:$0xff]  ;;  %v1098_v59 = vld [vmem:[#allocation2 + $0xaa] sm:$0xff] }
  0x4b   : > { %4423 = vmatprep.subr.bf16.mxu0 %v4926_v24  ;;  %4230 = vmatpush3.bf16.msra.mxu1 %v4927_v19  ;;  %v382_v19 = vpack.c.bf16 %v362_v11, %v361_v10  ;;  %v5215_v22 = vpack.c.bf16 %v2193_v17, %v2192_v16  ;;  %v366_v25 = vld [vmem:[#allocation2 + $0xd8] sm:$0xff]  ;;  %v717_v10 = vld [vmem:[#allocation2 + $0x49] sm:$0xff] }
  0x4c   : > { %4231 = vmatprep.subr.bf16.mxu1 %v4930_v28  ;;  %v384_v33 = vpack.c.bf16 %v366_v25, %v365_v23  ;;  %v4945_v11 = vld [vmem:[%s5555_s1 + $0x90] sm:$0xff]   ;;  %v4947_v17 = vld [vmem:[%s5555_s1 + $0x98] sm:$0xff]  }
  0x4d   : > { %v2211_v23 = vld [vmem:[#allocation2 + $0xec] sm:$0xff] }
  0x4e   : > { %4424 = vmatpush3.bf16.msra.mxu0 %v4926_v24  ;;  %v4940_v24 = vld [vmem:[%s5555_s1 + $0x198] sm:$0xff]   ;;  %v721_v25 = vld [vmem:[#allocation2 + $0x69] sm:$0xff] }
  0x4f   : > { %4425 = vmatprep.subr.bf16.mxu0 %v4928_v31  ;;  %4232 = vmatpush3.bf16.msra.mxu1 %v4930_v28  ;;  %v367_v28 = vld [vmem:[#allocation2 + $0xe0] sm:$0xff] }
  0x50   : > { %4202 = vmatmul.mubr.bf16.gmra.mrb[8].mxu1 %v376_v36  ;;  %4233 = vmatprep.subr.bf16.mxu1 %v4933_v37  ;;  %v385_v35 = vpack.c.bf16 %v368_v29, %v367_v28  ;;  %v4949_v28 = vld [vmem:[%s5555_s1 + $0xa0] sm:$0xff]  }
  0x51   : > { %4394 = vmatmul.mubr.bf16.gmra.mrb[8].mxu0 %v1852_v38  ;;  %4205 = vmatprep.mubr.bf16.mxu1 %v377_v39  ;;  %v370_v38 = vld [vmem:[#allocation2 + $0xf8] sm:$0xff]  ;;  %v4944_v39 = vld [vmem:[%s5555_s1 + $0x1a8] sm:$0xff]  }
  0x52   : > { %4426 = vmatpush3.bf16.msra.mxu0 %v4928_v31  ;;  %4397 = vmatprep.mubr.bf16.mxu0 %v1853_v40  ;;  %v2197_v31 = vld [vmem:[#allocation2 + $0x7c] sm:$0xff]  ;;  %v2198_v40 = vld [vmem:[#allocation2 + $0x84] sm:$0xff] }
  0x53   : > { %4427 = vmatprep.subr.bf16.mxu0 %v4929_v41  ;;  %4234 = vmatpush3.bf16.msra.mxu1 %v4933_v37  ;;  %v5227_v36 = vpack.c.bf16 %v2197_v31, %v2196_v30  ;;  %v369_v37 = vld [vmem:[#allocation2 + $0xf0] sm:$0xff] }
  0x54   : > { %4235 = vmatprep.subr.bf16.mxu1 %v4935_v44  ;;  %v386_v47 = vpack.c.bf16 %v370_v38, %v369_v37  ;;  %v723_v37 = vld [vmem:[#allocation2 + $0x79] sm:$0xff]  ;;  %v2214_v38 = vld [vmem:[#allocation2 + $0x104] sm:$0xff] }
  0x56   : > { %4428 = vmatpush3.bf16.msra.mxu0 %v4929_v41  ;;  %v2199_v41 = vld [vmem:[#allocation2 + $0x8c] sm:$0xff] }
  0x57   : > { %4429 = vmatprep.subr.bf16.mxu0 %v4931_v49  ;;  %4236 = vmatpush3.bf16.msra.mxu1 %v4935_v44  ;;  %v2200_v44 = vld [vmem:[#allocation2 + $0x94] sm:$0xff]  ;;  %v5237_v48 = vpack.c.bf16 %v2199_v41, %v2198_v40  ;;  %v724_v40 = vld [vmem:[#allocation2 + $0x81] sm:$0xff]  ;;  %v725_v41 = vld [vmem:[#allocation2 + $0x89] sm:$0xff] }
  0x58   : > { %4206 = vmatmul.mubr.bf16.gmra.mrb[12].mxu1 %v378_v52  ;;  %4237 = vmatprep.subr.bf16.mxu1 %v4937_v53  ;;  %v5239_v50 = vpack.c.bf16 %v2201_v45, %v2200_v44  ;;  %v4948_v52 = vld [vmem:[%s5555_s1 + $0x1b8] sm:$0xff]   ;;  %v748_v45 = vpack.c.bf16 %v725_v41, %v724_v40 }
  0x59   : > { %4398 = vmatmul.mubr.bf16.gmra.mrb[12].mxu0 %v1854_v54  ;;  %4209 = vmatprep.mubr.bf16.mxu1 %v379_v55  ;;  %v2202_v54 = vld [vmem:[#allocation2 + $0xa4] sm:$0xff]  ;;  %v2203_v55 = vld [vmem:[#allocation2 + $0xac] sm:$0xff]  ;;  %v1092_v41 = vld [vmem:[#allocation2 + $0x7a] sm:$0xff] }
  0x5a   : > { %4430 = vmatpush3.bf16.msra.mxu0 %v4931_v49  ;;  %4433 = vmatprep.mubr.bf16.mxu0 %v2216_v56  ;;  %v740_v49 = vpack.c.bf16 %v709_v43, %v708_v42  ;;  %v712_v56 = vld [vmem:[#allocation2 + $0x21] sm:$0xff]  ;;  %v4953_v42 = vld [vmem:[%s5555_s1 + $0xb0] sm:$0xff]  }
  0x5b   : > { %4431 = vmatprep.subr.bf16.mxu0 %v4932_v57  ;;  %4238 = vmatpush3.bf16.msra.mxu1 %v4937_v53  ;;  %v711_v53 = vld [vmem:[#allocation2 + $0x19] sm:$0xff] }
  0x5c   : > { %4239 = vmatprep.subr.bf16.mxu1 %v4939_v62  ;;  %v741_v61 = vpack.c.bf16 %v711_v53, %v710_v51  ;;  %v728_v51 = vld [vmem:[#allocation2 + $0xa1] sm:$0xff] }
  0x5d   : > { %v5299_v53 = vld [vmem:[%s5555_s1 + $0xc0] sm:$0xff]  }
  0x5e   : > { %4432 = vmatpush3.bf16.msra.mxu0 %v4932_v57  ;;  %v713_v57 = vld [vmem:[#allocation2 + $0x29] sm:$0xff] }
  0x5f   : > { %4465 = vmatprep.subr.bf16.mxu0 %v4934_v63  ;;  %4240 = vmatpush3.bf16.msra.mxu1 %v4939_v62  ;;  %v5251_v62 = vpack.c.bf16 %v2203_v55, %v2202_v54 }
  0x60   : > { %4210 = vmatmul.mubr.bf16.gmra.mrb[16].mxu1 %v380_v4  ;;  %4273 = vmatprep.subr.bf16.mxu1 %v5198_v5  ;;  %v2206_v4 = vld [vmem:[#allocation2 + $0xc4] sm:$0xff] }
  0x61   : > { %4434 = vmatmul.mubr.bf16.vlgmr.msra.gmra.mrb[0].mxu0 %v5200_v6  ;;  %4213 = vmatprep.mubr.bf16.mxu1 %v381_v7  ;;  %v2207_v7 = vld [vmem:[#allocation2 + $0xcc] sm:$0xff] }
  0x62   : > { %4466 = vmatpush3.bf16.msra.mxu0 %v4934_v63  ;;  %4437 = vmatprep.mubr.bf16.mxu0 %v5202_v8  ;;  %v742_v63 = vpack.c.bf16 %v713_v57, %v712_v56  ;;  %v5265_v15 = vpack.c.bf16 %v2207_v7, %v2206_v4  ;;  %v4952_v56 = vld [vmem:[%s5555_s1 + $0x1c8] sm:$0xff]   ;;  %v731_v57 = vld [vmem:[#allocation2 + $0xb9] sm:$0xff] }
  0x63   : > { %4467 = vmatprep.subr.bf16.mxu0 %v4936_v9  ;;  %v4958_v4 = vld [vmem:[%s5555_s1 + $0x1e0] sm:$0xff]  }
  0x66   : > { %4468 = vmatpush3.bf16.msra.mxu0 %v4936_v9  ;;  %v716_v9 = vld [vmem:[#allocation2 + $0x41] sm:$0xff] }
  0x67   : > { %4469 = vmatprep.subr.bf16.mxu0 %v4938_v18  ;;  %v744_v16 = vpack.c.bf16 %v717_v10, %v716_v9  ;;  %v739_v10 = vld [vmem:[#allocation2 + $0xf9] sm:$0xff] }
  0x68   : > { %4214 = vmatmul.mubr.bf16.gmra.mrb[20].mxu1 %v382_v19  ;;  %v719_v19 = vld [vmem:[#allocation2 + $0x59] sm:$0xff] }
  0x69   : > { %4438 = vmatmul.mubr.bf16.gmra.mrb[4].mxu0 %v5213_v20  ;;  %4217 = vmatprep.mubr.bf16.mxu1 %v383_v21  ;;  %v2210_v21 = vld [vmem:[#allocation2 + $0xe4] sm:$0xff] }
  0x6a   : > { %4441 = vmatprep.mubr.bf16.mxu0 %v5215_v22  ;;  %4470 = vmatpush3.bf16.msra.mxu0 %v4938_v18  ;;  %v718_v18 = vld [vmem:[#allocation2 + $0x51] sm:$0xff]  ;;  %v5277_v30 = vpack.c.bf16 %v2211_v23, %v2210_v21  ;;  %v5335_v21 = vld [vmem:[%s5555_s1 + $0x200] sm:$0xff]  }
  0x6b   : > { %4471 = vmatprep.subr.bf16.mxu0 %v4940_v24  ;;  %v745_v29 = vpack.c.bf16 %v719_v19, %v718_v18  ;;  %v1081_v18 = vld [vmem:[#allocation2 + $0x22] sm:$0xff]  ;;  %v1082_v19 = vld [vmem:[#allocation2 + $0x2a] sm:$0xff] }
  0x6e   : > { %4472 = vmatpush3.bf16.msra.mxu0 %v4940_v24  ;;  %v720_v24 = vld [vmem:[#allocation2 + $0x61] sm:$0xff] }
  0x6f   : > { %4473 = vmatprep.subr.bf16.mxu0 %v4942_v32  ;;  %v746_v31 = vpack.c.bf16 %v721_v25, %v720_v24  ;;  %v5339_v24 = vpack.c.bf16 %v1082_v19, %v1081_v18  ;;  %v1084_v25 = vld [vmem:[#allocation2 + $0x3a] sm:$0xff]  ;;  %v1103_v18 = vld [vmem:[#allocation2 + $0xd2] sm:$0xff] }
  0x70   : > { %4218 = vmatmul.mubr.bf16.gmra.mrb[24].mxu1 %v384_v33  ;;  %v722_v33 = vld [vmem:[#allocation2 + $0x71] sm:$0xff]  ;;  %v1104_v19 = vld [vmem:[#allocation2 + $0xda] sm:$0xff] }
  0x71   : > { %4442 = vmatmul.mubr.bf16.gmra.mrb[8].mxu0 %v5225_v34  ;;  %4221 = vmatprep.mubr.bf16.mxu1 %v385_v35  ;;  %v4951_v35 = vld [vmem:[%s5555_s1 + $0xa8] sm:$0xff]   ;;  %v747_v43 = vpack.c.bf16 %v723_v37, %v722_v33  ;;  %v1088_v33 = vld [vmem:[#allocation2 + $0x5a] sm:$0xff] }
  0x72   : > { %4445 = vmatprep.mubr.bf16.mxu0 %v5227_v36  ;;  %4474 = vmatpush3.bf16.msra.mxu0 %v4942_v32  ;;  %v5279_v32 = vpack.c.bf16 %v2213_v27, %v2212_v26  ;;  %v1085_v26 = vld [vmem:[#allocation2 + $0x42] sm:$0xff]  ;;  %v1086_v27 = vld [vmem:[#allocation2 + $0x4a] sm:$0xff] }
  0x73   : > { %4475 = vmatprep.subr.bf16.mxu0 %v4944_v39  ;;  %v1090_v37 = vld [vmem:[#allocation2 + $0x6a] sm:$0xff] }
  0x76   : > { %4476 = vmatpush3.bf16.msra.mxu0 %v4944_v39  ;;  %v2215_v39 = vld [vmem:[#allocation2 + $0x10c] sm:$0xff] }
  0x77   : > { %4477 = vmatprep.subr.bf16.mxu0 %v4946_v46  ;;  %v5289_v44 = vpack.c.bf16 %v2215_v39, %v2214_v38  ;;  %v4965_v38 = vld [vmem:[%s5555_s1 + $0xe0] sm:$0xff]  }
  0x78   : > { %4222 = vmatmul.mubr.bf16.gmra.mrb[28].mxu1 %v386_v47  ;;  %v726_v47 = vld [vmem:[#allocation2 + $0x91] sm:$0xff] }
  0x79   : > { %4446 = vmatmul.mubr.bf16.gmra.mrb[12].mxu0 %v5237_v48  ;;  %4241 = vmatprep.mubr.bf16.mxu1 %v740_v49  ;;  %v727_v49 = vld [vmem:[#allocation2 + $0x99] sm:$0xff] }
  0x7a   : > { %4449 = vmatprep.mubr.bf16.mxu0 %v5239_v50  ;;  %4478 = vmatpush3.bf16.msra.mxu0 %v4946_v46  ;;  %v4955_v46 = vld [vmem:[%s5555_s1 + $0xb8] sm:$0xff]   ;;  %v749_v54 = vpack.c.bf16 %v727_v49, %v726_v47  ;;  %v2922_v47 = vld [vmem:[#allocation2 + $0x25] sm:$0xff]  ;;  %v2923_v49 = vld [vmem:[#allocation2 + $0x2d] sm:$0xff] }
  0x7b   : > { %4479 = vmatprep.subr.bf16.mxu0 %v4948_v52 }
  0x7e   : > { %4480 = vmatpush3.bf16.msra.mxu0 %v4948_v52  ;;  %v729_v52 = vld [vmem:[#allocation2 + $0xa9] sm:$0xff] }
  0x7f   : > { %4513 = vmatprep.subr.bf16.mxu0 %v5249_v60  ;;  %v750_v55 = vpack.c.bf16 %v729_v52, %v728_v51  ;;  %v4969_v51 = vld [vmem:[%s5555_s1 + $0xf0] sm:$0xff]  }
  0x80   : > { %4242 = vmatmul.mubr.bf16.vlgmr.msra.gmra.mrb[0].mxu1 %v741_v61  ;;  %v4954_v61 = vld [vmem:[%s5555_s1 + $0x1d0] sm:$0xff]  }
  0x81   : > { %4450 = vmatmul.mubr.bf16.gmra.mrb[16].mxu0 %v5251_v62  ;;  %4274 = vmatpush3.bf16.msra.mxu1 %v5198_v5  ;;  %v5267_v5 = vpack.c.bf16 %v2209_v13, %v2208_v12  ;;  %v1078_v12 = vld [vmem:[#allocation2 + $0xa] sm:$0xff] }
  0x82   : > { %4245 = vmatprep.mubr.bf16.mxu1 %v742_v63  ;;  %4453 = vmatprep.mubr.bf16.mxu0 %v5253_v0  ;;  %v4962_v13 = vld [vmem:[%s5555_s1 + $0x1f0] sm:$0xff]  }
  0x83   : > { %4275 = vmatprep.subr.bf16.mxu1 %v4943_v2 }
  0x85   : > { %4276 = vmatpush3.bf16.msra.mxu1 %v4943_v2  ;;  %v736_v2 = vld [vmem:[#allocation2 + $0xe1] sm:$0xff] }
  0x86   : > { %4277 = vmatprep.subr.bf16.mxu1 %v4945_v11  ;;  %v754_v9 = vpack.c.bf16 %v737_v3, %v736_v2  ;;  %v4968_v2 = vld [vmem:[%s5555_s1 + $0x208] sm:$0xff]   ;;  %v5400_v3 = vld [vmem:[%s5555_s1 + $0x100] sm:$0xff]  }
  0x88   : > { %4246 = vmatmul.mubr.bf16.gmra.mrb[4].mxu1 %v743_v14 }
  0x89   : > { %4454 = vmatmul.mubr.bf16.gmra.mrb[20].mxu0 %v5265_v15  ;;  %4249 = vmatprep.mubr.bf16.mxu1 %v744_v16 }
  0x8a   : > { %4457 = vmatprep.mubr.bf16.mxu0 %v5267_v5  ;;  %4278 = vmatpush3.bf16.msra.mxu1 %v4945_v11  ;;  %v1077_v11 = vld [vmem:[#allocation2 + $0x2] sm:$0xff] }
  0x8b   : > { %4279 = vmatprep.subr.bf16.mxu1 %v4947_v17  ;;  %v1109_v16 = vpack.c.bf16 %v1078_v12, %v1077_v11  ;;  %v2930_v11 = vld [vmem:[#allocation2 + $0x65] sm:$0xff]  ;;  %v2931_v12 = vld [vmem:[#allocation2 + $0x6d] sm:$0xff] }
  0x8e   : > { %4280 = vmatpush3.bf16.msra.mxu1 %v4947_v17  ;;  %v1080_v17 = vld [vmem:[#allocation2 + $0x1a] sm:$0xff] }
  0x8f   : > { %4281 = vmatprep.subr.bf16.mxu1 %v4949_v28 }
  0x90   : > { %4250 = vmatmul.mubr.bf16.gmra.mrb[8].mxu1 %v745_v29 }
  0x91   : > { %4458 = vmatmul.mubr.bf16.gmra.mrb[24].mxu0 %v5277_v30  ;;  %4253 = vmatprep.mubr.bf16.mxu1 %v746_v31  ;;  %v5355_v31 = vpack.c.bf16 %v1086_v27, %v1085_v26  ;;  %v2934_v26 = vld [vmem:[#allocation2 + $0x85] sm:$0xff]  ;;  %v2935_v27 = vld [vmem:[#allocation2 + $0x8d] sm:$0xff] }
  0x92   : > { %4461 = vmatprep.mubr.bf16.mxu0 %v5279_v32  ;;  %4282 = vmatpush3.bf16.msra.mxu1 %v4949_v28  ;;  %v4961_v28 = vld [vmem:[%s5555_s1 + $0xd0] sm:$0xff]  }
  0x93   : > { %4283 = vmatprep.subr.bf16.mxu1 %v4951_v35 }
  0x96   : > { %4284 = vmatpush3.bf16.msra.mxu1 %v4951_v35  ;;  %v1089_v35 = vld [vmem:[#allocation2 + $0x62] sm:$0xff] }
  0x97   : > { %4285 = vmatprep.subr.bf16.mxu1 %v4953_v42  ;;  %v5369_v40 = vpack.c.bf16 %v1090_v37, %v1089_v35  ;;  %v2960_v35 = vpack.c.bf16 %v2935_v27, %v2934_v26  ;;  %v4974_v37 = vld [vmem:[%s5555_s1 + $0x228] sm:$0xff]   ;;  %v3301_v27 = vld [vmem:[#allocation2 + $0x76] sm:$0xff] }
  0x98   : > { %4254 = vmatmul.mubr.bf16.gmra.mrb[12].mxu1 %v747_v43  ;;  %v2584_v43 = vld [vmem:[#allocation2 + $0x11c] sm:$0xff] }
  0x99   : > { %4462 = vmatmul.mubr.bf16.gmra.mrb[28].mxu0 %v5289_v44  ;;  %4257 = vmatprep.mubr.bf16.mxu1 %v748_v45  ;;  %v1093_v45 = vld [vmem:[#allocation2 + $0x82] sm:$0xff] }
  0x9a   : > { %4481 = vmatprep.mubr.bf16.mxu0 %v5200_v6  ;;  %4286 = vmatpush3.bf16.msra.mxu1 %v4953_v42  ;;  %v730_v6 = vld [vmem:[#allocation2 + $0xb1] sm:$0xff] }
  0x9b   : > { %4287 = vmatprep.subr.bf16.mxu1 %v4955_v46  ;;  %v751_v63 = vpack.c.bf16 %v731_v57, %v730_v6  ;;  %v2583_v42 = vld [vmem:[#allocation2 + $0x114] sm:$0xff]  ;;  %v2925_v57 = vld [vmem:[#allocation2 + $0x3d] sm:$0xff] }
  0x9c   : > { %v2924_v6 = vld [vmem:[#allocation2 + $0x35] sm:$0xff] }
  0x9e   : > { %4288 = vmatpush3.bf16.msra.mxu1 %v4955_v46  ;;  %v1094_v46 = vld [vmem:[#allocation2 + $0x8a] sm:$0xff] }
  0x9f   : > { %4321 = vmatprep.subr.bf16.mxu1 %v5299_v53 }
  0xa0   : > { %4258 = vmatmul.mubr.bf16.gmra.mrb[16].mxu1 %v749_v54  ;;  %v2954_v54 = vpack.c.bf16 %v2923_v49, %v2922_v47 }
  0xa1   : > { %4482 = vmatmul.mubr.bf16.vlgmr.msra.gmra.mrb[0].mxu0 %v5202_v8  ;;  %4261 = vmatprep.mubr.bf16.mxu1 %v750_v55  ;;  %v4956_v8 = vld [vmem:[%s5555_s1 + $0x1d8] sm:$0xff]  }
  0xa2   : > { %4514 = vmatpush3.bf16.msra.mxu0 %v5249_v60  ;;  %4485 = vmatprep.mubr.bf16.mxu0 %v5213_v20  ;;  %v734_v20 = vld [vmem:[#allocation2 + $0xd1] sm:$0xff]  ;;  %v735_v60 = vld [vmem:[#allocation2 + $0xd9] sm:$0xff] }
  0xa3   : > { %4515 = vmatprep.subr.bf16.mxu0 %v4952_v56  ;;  %v753_v7 = vpack.c.bf16 %v735_v60, %v734_v20  ;;  %v1095_v55 = vld [vmem:[#allocation2 + $0x92] sm:$0xff]  ;;  %v5392_v20 = vpack.c.bf16 %v1098_v59, %v1097_v58  ;;  %v4978_v58 = vld [vmem:[%s5555_s1 + $0x108] sm:$0xff]  }
  0xa4   : > { %v2946_v59 = vld [vmem:[#allocation2 + $0xe5] sm:$0xff] }
  0xa6   : > { %4516 = vmatpush3.bf16.msra.mxu0 %v4952_v56  ;;  %v1096_v56 = vld [vmem:[#allocation2 + $0x9a] sm:$0xff] }
  0xa7   : > { %4517 = vmatprep.subr.bf16.mxu0 %v4954_v61 }
  0xa8   : > { %4262 = vmatmul.mubr.bf16.gmra.mrb[20].mxu1 %v751_v63  ;;  %v2927_v63 = vld [vmem:[#allocation2 + $0x4d] sm:$0xff] }
  0xa9   : > { %4486 = vmatmul.mubr.bf16.gmra.mrb[4].mxu0 %v5215_v22  ;;  %4265 = vmatprep.mubr.bf16.mxu1 %v752_v1  ;;  %v4960_v22 = vld [vmem:[%s5555_s1 + $0x1e8] sm:$0xff]   ;;  %v5390_v1 = vpack.c.bf16 %v1096_v56, %v1095_v55 }
  0xaa   : > { %4489 = vmatprep.mubr.bf16.mxu0 %v5225_v34  ;;  %4518 = vmatpush3.bf16.msra.mxu0 %v4954_v61  ;;  %v738_v34 = vld [vmem:[#allocation2 + $0xf1] sm:$0xff]  ;;  %v2926_v61 = vld [vmem:[#allocation2 + $0x45] sm:$0xff] }
  0xab   : > { %4519 = vmatprep.subr.bf16.mxu0 %v4956_v8  ;;  %v755_v14 = vpack.c.bf16 %v739_v10, %v738_v34  ;;  %v2956_v60 = vpack.c.bf16 %v2927_v63, %v2926_v61  ;;  %v1101_v34 = vld [vmem:[#allocation2 + $0xc2] sm:$0xff]  ;;  %v1102_v10 = vld [vmem:[#allocation2 + $0xca] sm:$0xff] }
  0xac   : > { %v2943_v55 = vld [vmem:[#allocation2 + $0xcd] sm:$0xff] }
  0xad   : > { %v2947_v61 = vld [vmem:[#allocation2 + $0xed] sm:$0xff] }
  0xae   : > { %4520 = vmatpush3.bf16.msra.mxu0 %v4956_v8  ;;  %v2955_v8 = vpack.c.bf16 %v2925_v57, %v2924_v6  ;;  %v2944_v57 = vld [vmem:[#allocation2 + $0xd5] sm:$0xff] }
  0xaf   : > { %4521 = vmatprep.subr.bf16.mxu0 %v4958_v4 }
  0xb0   : > { %4266 = vmatmul.mubr.bf16.gmra.mrb[24].mxu1 %v753_v7  ;;  %v1100_v7 = vld [vmem:[#allocation2 + $0xba] sm:$0xff] }
  0xb1   : > { %4490 = vmatmul.mubr.bf16.gmra.mrb[8].mxu0 %v5227_v36  ;;  %4269 = vmatprep.mubr.bf16.mxu1 %v754_v9  ;;  %v4964_v36 = vld [vmem:[%s5555_s1 + $0x1f8] sm:$0xff]  }
  0xb2   : > { %4493 = vmatprep.mubr.bf16.mxu0 %v5237_v48  ;;  %4522 = vmatpush3.bf16.msra.mxu0 %v4958_v4  ;;  %v1079_v48 = vld [vmem:[#allocation2 + $0x12] sm:$0xff] }
  0xb3   : > { %4523 = vmatprep.subr.bf16.mxu0 %v4960_v22  ;;  %v5337_v23 = vpack.c.bf16 %v1080_v17, %v1079_v48  ;;  %v1099_v4 = vld [vmem:[#allocation2 + $0xb2] sm:$0xff]  ;;  %v2958_v48 = vpack.c.bf16 %v2931_v12, %v2930_v11  ;;  %v4982_v11 = vld [vmem:[%s5555_s1 + $0x128] sm:$0xff]  }
  0xb4   : > { %v2928_v9 = vld [vmem:[#allocation2 + $0x55] sm:$0xff] }
  0xb5   : > { %v4972_v17 = vld [vmem:[%s5555_s1 + $0x218] sm:$0xff]  }
  0xb6   : > { %4524 = vmatpush3.bf16.msra.mxu0 %v4960_v22  ;;  %v2929_v22 = vld [vmem:[#allocation2 + $0x5d] sm:$0xff] }
  0xb7   : > { %4525 = vmatprep.subr.bf16.mxu0 %v4962_v13 }
  0xb8   : > { %4270 = vmatmul.mubr.bf16.gmra.mrb[28].mxu1 %v755_v14  ;;  %v5409_v14 = vpack.c.bf16 %v1100_v7, %v1099_v4  ;;  %v4980_v4 = vld [vmem:[%s5555_s1 + $0x118] sm:$0xff]  }
  0xb9   : > { %4494 = vmatmul.mubr.bf16.gmra.mrb[12].mxu0 %v5239_v50  ;;  %4289 = vmatprep.mubr.bf16.mxu1 %v1109_v16  ;;  %v4959_v50 = vld [vmem:[%s5555_s1 + $0xc8] sm:$0xff]   ;;  %v2957_v16 = vpack.c.bf16 %v2929_v22, %v2928_v9  ;;  %v2953_v22 = vld [vmem:[#allocation2 + $0x11d] sm:$0xff] }
  0xba   : > { %4497 = vmatprep.mubr.bf16.mxu0 %v5251_v62  ;;  %4526 = vmatpush3.bf16.msra.mxu0 %v4962_v13  ;;  %v1083_v62 = vld [vmem:[#allocation2 + $0x32] sm:$0xff] }
  0xbb   : > { %4527 = vmatprep.subr.bf16.mxu0 %v4964_v36  ;;  %v5353_v29 = vpack.c.bf16 %v1084_v25, %v1083_v62  ;;  %v4970_v13 = vld [vmem:[%s5555_s1 + $0x210] sm:$0xff]   ;;  %v1105_v62 = vld [vmem:[#allocation2 + $0xe2] sm:$0xff] }
  0xbc   : > { %v1106_v25 = vld [vmem:[#allocation2 + $0xea] sm:$0xff] }
  0xbe   : > { %4528 = vmatpush3.bf16.msra.mxu0 %v4964_v36  ;;  %v5411_v36 = vpack.c.bf16 %v1102_v10, %v1101_v34  ;;  %v3291_v34 = vld [vmem:[#allocation2 + $0x26] sm:$0xff]  ;;  %v3292_v10 = vld [vmem:[#allocation2 + $0x2e] sm:$0xff] }
  0xbf   : > { %4561 = vmatprep.subr.bf16.mxu0 %v5335_v21 }
  0xc0   : > { %4290 = vmatmul.mubr.bf16.vlgmr.msra.gmra.mrb[0].mxu1 %v5337_v23 }
  0xc1   : > { %4498 = vmatmul.mubr.bf16.gmra.mrb[16].mxu0 %v5253_v0  ;;  %4322 = vmatpush3.bf16.msra.mxu1 %v5299_v53  ;;  %v4963_v0 = vld [vmem:[%s5555_s1 + $0xd8] sm:$0xff]   ;;  %v5383_v53 = vpack.c.bf16 %v1094_v46, %v1093_v45  ;;  %v4975_v45 = vld [vmem:[%s5555_s1 + $0x230] sm:$0xff]  }
  0xc2   : > { %4293 = vmatprep.mubr.bf16.mxu1 %v5339_v24  ;;  %4501 = vmatprep.mubr.bf16.mxu0 %v5265_v15  ;;  %v1087_v15 = vld [vmem:[#allocation2 + $0x52] sm:$0xff] }
  0xc3   : > { %4323 = vmatprep.subr.bf16.mxu1 %v4959_v50  ;;  %v5367_v39 = vpack.c.bf16 %v1088_v33, %v1087_v15  ;;  %v5423_v33 = vpack.c.bf16 %v1106_v25, %v1105_v62  ;;  %v3300_v62 = vld [vmem:[#allocation2 + $0x6e] sm:$0xff] }
  0xc5   : > { %4324 = vmatpush3.bf16.msra.mxu1 %v4959_v50  ;;  %v2933_v50 = vld [vmem:[#allocation2 + $0x7d] sm:$0xff] }
  0xc6   : > { %4325 = vmatprep.subr.bf16.mxu1 %v4961_v28 }
  0xc8   : > { %4294 = vmatmul.mubr.bf16.gmra.mrb[4].mxu1 %v5353_v29 }
  0xc9   : > { %4502 = vmatmul.mubr.bf16.gmra.mrb[20].mxu0 %v5267_v5  ;;  %4297 = vmatprep.mubr.bf16.mxu1 %v5355_v31  ;;  %v4967_v5 = vld [vmem:[%s5555_s1 + $0xe8] sm:$0xff]  }
  0xca   : > { %4505 = vmatprep.mubr.bf16.mxu0 %v5277_v30  ;;  %4326 = vmatpush3.bf16.msra.mxu1 %v4961_v28  ;;  %v1091_v30 = vld [vmem:[#allocation2 + $0x72] sm:$0xff]  ;;  %v4973_v28 = vld [vmem:[%s5555_s1 + $0x220] sm:$0xff]  }
  0xcb   : > { %4327 = vmatprep.subr.bf16.mxu1 %v4963_v0  ;;  %v5381_v52 = vpack.c.bf16 %v1092_v41, %v1091_v30  ;;  %v2936_v30 = vld [vmem:[#allocation2 + $0x95] sm:$0xff]  ;;  %v2937_v41 = vld [vmem:[#allocation2 + $0x9d] sm:$0xff] }
  0xcc   : > { %v2961_v47 = vpack.c.bf16 %v2937_v41, %v2936_v30  ;;  %v1831_v30 = vld [vmem:[#allocation2 + $0x93] sm:$0xff]  ;;  %v1832_v41 = vld [vmem:[#allocation2 + $0x9b] sm:$0xff] }
  0xce   : > { %4328 = vmatpush3.bf16.msra.mxu1 %v4963_v0  ;;  %v5421_v0 = vpack.c.bf16 %v1104_v19, %v1103_v18  ;;  %v4984_v18 = vld [vmem:[%s5555_s1 + $0x138] sm:$0xff]  }
  0xcf   : > { %4329 = vmatprep.subr.bf16.mxu1 %v4965_v38 }
  0xd0   : > { %4298 = vmatmul.mubr.bf16.gmra.mrb[8].mxu1 %v5367_v39 }
  0xd1   : > { %4506 = vmatmul.mubr.bf16.gmra.mrb[24].mxu0 %v5279_v32  ;;  %4301 = vmatprep.mubr.bf16.mxu1 %v5369_v40  ;;  %v2600_v32 = vpack.c.bf16 %v2584_v43, %v2583_v42  ;;  %v2938_v42 = vld [vmem:[#allocation2 + $0xa5] sm:$0xff]  ;;  %v2939_v43 = vld [vmem:[#allocation2 + $0xad] sm:$0xff] }
  0xd2   : > { %4509 = vmatprep.mubr.bf16.mxu0 %v5289_v44  ;;  %4330 = vmatpush3.bf16.msra.mxu1 %v4965_v38  ;;  %v4971_v44 = vld [vmem:[%s5555_s1 + $0xf8] sm:$0xff]   ;;  %v2962_v49 = vpack.c.bf16 %v2939_v43, %v2938_v42  ;;  %v3308_v42 = vld [vmem:[#allocation2 + $0xae] sm:$0xff] }
  0xd3   : > { %4331 = vmatprep.subr.bf16.mxu1 %v4967_v5  ;;  %v1107_v38 = vld [vmem:[#allocation2 + $0xf2] sm:$0xff] }
  0xd6   : > { %4332 = vmatpush3.bf16.msra.mxu1 %v4967_v5  ;;  %v1108_v5 = vld [vmem:[#allocation2 + $0xfa] sm:$0xff] }
  0xd7   : > { %4333 = vmatprep.subr.bf16.mxu1 %v4969_v51  ;;  %v5433_v46 = vpack.c.bf16 %v1108_v5, %v1107_v38  ;;  %v1477_v38 = vld [vmem:[#allocation2 + $0x10a] sm:$0xff]  ;;  %v3305_v5 = vld [vmem:[#allocation2 + $0x96] sm:$0xff] }
  0xd8   : > { %4302 = vmatmul.mubr.bf16.gmra.mrb[12].mxu1 %v5381_v52 }
  0xd9   : > { %4510 = vmatmul.mubr.bf16.gmra.mrb[28].mxu0 %v2600_v32  ;;  %4305 = vmatprep.mubr.bf16.mxu1 %v5383_v53  ;;  %v2940_v32 = vld [vmem:[#allocation2 + $0xb5] sm:$0xff] }
  0xda   : > { %4529 = vmatprep.mubr.bf16.mxu0 %v2954_v54  ;;  %4334 = vmatpush3.bf16.msra.mxu1 %v4969_v51  ;;  %v4976_v51 = vld [vmem:[%s5555_s1 + $0x238] sm:$0xff]  }
  0xdb   : > { %4335 = vmatprep.subr.bf16.mxu1 %v4971_v44  ;;  %v2941_v54 = vld [vmem:[#allocation2 + $0xbd] sm:$0xff] }
  0xdc   : > { %v2963_v56 = vpack.c.bf16 %v2941_v54, %v2940_v32  ;;  %v3309_v32 = vld [vmem:[#allocation2 + $0xb6] sm:$0xff] }
  0xdd   : > { %v1835_v54 = vld [vmem:[#allocation2 + $0xb3] sm:$0xff] }
  0xde   : > { %4336 = vmatpush3.bf16.msra.mxu1 %v4971_v44  ;;  %v2942_v44 = vld [vmem:[#allocation2 + $0xc5] sm:$0xff] }
  0xdf   : > { %4609 = vmatprep.subr.bf16.mxu1 %v5400_v3  ;;  %v2964_v6 = vpack.c.bf16 %v2943_v55, %v2942_v44  ;;  %v1836_v44 = vld [vmem:[#allocation2 + $0xbb] sm:$0xff]  ;;  %v3311_v55 = vld [vmem:[#allocation2 + $0xc6] sm:$0xff] }
  0xe0   : > { %4306 = vmatmul.mubr.bf16.gmra.mrb[16].mxu1 %v5390_v1 }
  0xe1   : > { %4530 = vmatmul.mubr.bf16.vlgmr.msra.gmra.mrb[0].mxu0 %v2955_v8  ;;  %4309 = vmatprep.mubr.bf16.mxu1 %v5392_v20  ;;  %v2966_v8 = vpack.c.bf16 %v2947_v61, %v2946_v59  ;;  %v1837_v59 = vld [vmem:[#allocation2 + $0xc3] sm:$0xff]  ;;  %v1838_v61 = vld [vmem:[#allocation2 + $0xcb] sm:$0xff] }
  0xe2   : > { %4562 = vmatpush3.bf16.msra.mxu0 %v5335_v21  ;;  %4533 = vmatprep.mubr.bf16.mxu0 %v2956_v60  ;;  %v2932_v21 = vld [vmem:[#allocation2 + $0x75] sm:$0xff]  ;;  %v2949_v60 = vld [vmem:[#allocation2 + $0xfd] sm:$0xff] }
  0xe3   : > { %4563 = vmatprep.subr.bf16.mxu0 %v4968_v2  ;;  %v2959_v15 = vpack.c.bf16 %v2933_v50, %v2932_v21  ;;  %v3299_v50 = vld [vmem:[#allocation2 + $0x66] sm:$0xff] }
  0xe4   : > { %v3327_v26 = vpack.c.bf16 %v3300_v62, %v3299_v50 }
  0xe6   : > { %4564 = vmatpush3.bf16.msra.mxu0 %v4968_v2  ;;  %v2950_v2 = vld [vmem:[#allocation2 + $0x105] sm:$0xff] }
  0xe7   : > { %4565 = vmatprep.subr.bf16.mxu0 %v4970_v13 }
  0xe8   : > { %4310 = vmatmul.mubr.bf16.gmra.mrb[20].mxu1 %v5409_v14 }
  0xe9   : > { %4534 = vmatmul.mubr.bf16.gmra.mrb[4].mxu0 %v2957_v16  ;;  %4313 = vmatprep.mubr.bf16.mxu1 %v5411_v36  ;;  %v3294_v16 = vld [vmem:[#allocation2 + $0x3e] sm:$0xff] }
  0xea   : > { %4537 = vmatprep.mubr.bf16.mxu0 %v2958_v48  ;;  %4566 = vmatpush3.bf16.msra.mxu0 %v4970_v13  ;;  %v3323_v13 = vpack.c.bf16 %v3292_v10, %v3291_v34  ;;  %v3295_v48 = vld [vmem:[#allocation2 + $0x46] sm:$0xff]  ;;  %v3318_v34 = vld [vmem:[#allocation2 + $0xfe] sm:$0xff]  ;;  %v1843_v10 = vld [vmem:[#allocation2 + $0xf3] sm:$0xff] }
  0xeb   : > { %4567 = vmatprep.subr.bf16.mxu0 %v4972_v17 }
  0xee   : > { %4568 = vmatpush3.bf16.msra.mxu0 %v4972_v17  ;;  %v3296_v17 = vld [vmem:[#allocation2 + $0x4e] sm:$0xff] }
  0xef   : > { %4569 = vmatprep.subr.bf16.mxu0 %v4973_v28  ;;  %v3325_v21 = vpack.c.bf16 %v3296_v17, %v3295_v48  ;;  %v1845_v17 = vld [vmem:[#allocation2 + $0x103] sm:$0xff] }
  0xf0   : > { %4314 = vmatmul.mubr.bf16.gmra.mrb[24].mxu1 %v5421_v0 }
  0xf1   : > { %4538 = vmatmul.mubr.bf16.gmra.mrb[8].mxu0 %v2959_v15  ;;  %4317 = vmatprep.mubr.bf16.mxu1 %v5423_v33  ;;  %v3303_v15 = vld [vmem:[#allocation2 + $0x86] sm:$0xff] }
  0xf2   : > { %4541 = vmatprep.mubr.bf16.mxu0 %v2960_v35  ;;  %4570 = vmatpush3.bf16.msra.mxu0 %v4973_v28  ;;  %v3302_v28 = vld [vmem:[#allocation2 + $0x7e] sm:$0xff] }
  0xf3   : > { %4571 = vmatprep.subr.bf16.mxu0 %v4974_v37  ;;  %v3328_v35 = vpack.c.bf16 %v3302_v28, %v3301_v27 }
  0xf6   : > { %4572 = vmatpush3.bf16.msra.mxu0 %v4974_v37 }
  0xf7   : > { %4573 = vmatprep.subr.bf16.mxu0 %v4975_v45 }
  0xf8   : > { %4318 = vmatmul.mubr.bf16.gmra.mrb[28].mxu1 %v5433_v46 }
  0xf9   : > { %4542 = vmatmul.mubr.bf16.gmra.mrb[12].mxu0 %v2961_v47  ;;  %4337 = vmatprep.mubr.bf16.mxu1 %v5337_v23  ;;  %v2945_v23 = vld [vmem:[#allocation2 + $0xdd] sm:$0xff]  ;;  %v1855_v47 = vpack.c.bf16 %v1832_v41, %v1831_v30 }
  0xfa   : > { %4545 = vmatprep.mubr.bf16.mxu0 %v2962_v49  ;;  %4574 = vmatpush3.bf16.msra.mxu0 %v4975_v45  ;;  %v2965_v63 = vpack.c.bf16 %v2945_v23, %v2944_v57  ;;  %v1857_v23 = vpack.c.bf16 %v1836_v44, %v1835_v54 }
  0xfb   : > { %4575 = vmatprep.subr.bf16.mxu0 %v4976_v51 }
  0xfe   : > { %4576 = vmatpush3.bf16.msra.mxu0 %v4976_v51  ;;  %v1834_v51 = vld [vmem:[#allocation2 + $0xab] sm:$0xff] }
 0x100   : > { %4338 = vmatmul.mubr.bf16.vlgmr.msra.gmra.mrb[0].mxu1 %v5339_v24  ;;  %v4979_v24 = vld [vmem:[%s5555_s1 + $0x110] sm:$0xff]  }
 0x101   : > { %4546 = vmatmul.mubr.bf16.gmra.mrb[16].mxu0 %v2963_v56  ;;  %4617 = vmatpush3.bf16.msra.mxu1 %v5400_v3  ;;  %v2951_v3 = vld [vmem:[#allocation2 + $0x10d] sm:$0xff] }
 0x102   : > { %4341 = vmatprep.mubr.bf16.mxu1 %v5353_v29  ;;  %4549 = vmatprep.mubr.bf16.mxu0 %v2964_v6  ;;  %v2948_v29 = vld [vmem:[#allocation2 + $0xf5] sm:$0xff]  ;;  %v2968_v9 = vpack.c.bf16 %v2951_v3, %v2950_v2  ;;  %v1858_v3 = vpack.c.bf16 %v1838_v61, %v1837_v59 }
 0x103   : > { %4610 = vmatprep.subr.bf16.mxu1 %v4978_v58  ;;  %v2967_v7 = vpack.c.bf16 %v2949_v60, %v2948_v29  ;;  %v3312_v56 = vld [vmem:[#allocation2 + $0xce] sm:$0xff]  ;;  %v1840_v29 = vld [vmem:[#allocation2 + $0xdb] sm:$0xff]  ;;  %v3315_v60 = vld [vmem:[#allocation2 + $0xe6] sm:$0xff] }
 0x104   : > { %v3316_v2 = vld [vmem:[#allocation2 + $0xee] sm:$0xff] }
 0x105   : > { %4618 = vmatpush3.bf16.msra.mxu1 %v4978_v58  ;;  %v3333_v58 = vpack.c.bf16 %v3312_v56, %v3311_v55 }
 0x106   : > { %4611 = vmatprep.subr.bf16.mxu1 %v4979_v24 }
 0x108   : > { %4342 = vmatmul.mubr.bf16.gmra.mrb[4].mxu1 %v5355_v31  ;;  %v4981_v31 = vld [vmem:[%s5555_s1 + $0x120] sm:$0xff]  }
 0x109   : > { %4550 = vmatmul.mubr.bf16.gmra.mrb[20].mxu0 %v2965_v63  ;;  %4345 = vmatprep.mubr.bf16.mxu1 %v5367_v39  ;;  %v2952_v39 = vld [vmem:[#allocation2 + $0x115] sm:$0xff] }
 0x10a   : > { %4553 = vmatprep.mubr.bf16.mxu0 %v2966_v8  ;;  %4619 = vmatpush3.bf16.msra.mxu1 %v4979_v24  ;;  %v2969_v12 = vpack.c.bf16 %v2953_v22, %v2952_v39  ;;  %v3313_v63 = vld [vmem:[#allocation2 + $0xd6] sm:$0xff]  ;;  %v3314_v8 = vld [vmem:[#allocation2 + $0xde] sm:$0xff]  ;;  %v1842_v39 = vld [vmem:[#allocation2 + $0xeb] sm:$0xff] }
 0x10b   : > { %4612 = vmatprep.subr.bf16.mxu1 %v4980_v4  ;;  %v1839_v24 = vld [vmem:[#allocation2 + $0xd3] sm:$0xff] }
 0x10c   : > { %v3317_v22 = vld [vmem:[#allocation2 + $0xf6] sm:$0xff] }
 0x10e   : > { %4620 = vmatpush3.bf16.msra.mxu1 %v4980_v4  ;;  %v3334_v4 = vpack.c.bf16 %v3314_v8, %v3313_v63 }
 0x10f   : > { %4613 = vmatprep.subr.bf16.mxu1 %v4981_v31 }
 0x110   : > { %4346 = vmatmul.mubr.bf16.gmra.mrb[8].mxu1 %v5369_v40  ;;  %v4983_v40 = vld [vmem:[%s5555_s1 + $0x130] sm:$0xff]  }
 0x111   : > { %4554 = vmatmul.mubr.bf16.gmra.mrb[24].mxu0 %v2967_v7  ;;  %4349 = vmatprep.mubr.bf16.mxu1 %v5381_v52  ;;  %v3293_v52 = vld [vmem:[#allocation2 + $0x36] sm:$0xff]  ;;  %v1859_v7 = vpack.c.bf16 %v1840_v29, %v1839_v24 }
 0x112   : > { %4557 = vmatprep.mubr.bf16.mxu0 %v2968_v9  ;;  %4621 = vmatpush3.bf16.msra.mxu1 %v4981_v31  ;;  %v3324_v19 = vpack.c.bf16 %v3294_v16, %v3293_v52  ;;  %v3335_v9 = vpack.c.bf16 %v3316_v2, %v3315_v60  ;;  %v1841_v31 = vld [vmem:[#allocation2 + $0xe3] sm:$0xff]  ;;  %v3336_v52 = vpack.c.bf16 %v3318_v34, %v3317_v22 }
 0x113   : > { %4614 = vmatprep.subr.bf16.mxu1 %v4982_v11 }
 0x116   : > { %4622 = vmatpush3.bf16.msra.mxu1 %v4982_v11  ;;  %v1844_v11 = vld [vmem:[#allocation2 + $0xfb] sm:$0xff] }
 0x117   : > { %4615 = vmatprep.subr.bf16.mxu1 %v4983_v40  ;;  %v1861_v16 = vpack.c.bf16 %v1844_v11, %v1843_v10 }
 0x118   : > { %4350 = vmatmul.mubr.bf16.gmra.mrb[12].mxu1 %v5383_v53  ;;  %v3297_v53 = vld [vmem:[#allocation2 + $0x56] sm:$0xff] }
 0x119   : > { %4558 = vmatmul.mubr.bf16.gmra.mrb[28].mxu0 %v2969_v12  ;;  %4353 = vmatprep.mubr.bf16.mxu1 %v5390_v1  ;;  %v3298_v1 = vld [vmem:[#allocation2 + $0x5e] sm:$0xff]  ;;  %v3319_v12 = vld [vmem:[#allocation2 + $0x106] sm:$0xff] }
 0x11a   : > { %4577 = vmatprep.mubr.bf16.mxu0 %v3323_v13  ;;  %4623 = vmatpush3.bf16.msra.mxu1 %v4983_v40  ;;  %v3326_v25 = vpack.c.bf16 %v3298_v1, %v3297_v53  ;;  %v3320_v13 = vld [vmem:[#allocation2 + $0x10e] sm:$0xff]  ;;  %v1860_v40 = vpack.c.bf16 %v1842_v39, %v1841_v31 }
 0x11b   : > { %4616 = vmatprep.subr.bf16.mxu1 %v4984_v18  ;;  %v3337_v48 = vpack.c.bf16 %v3320_v13, %v3319_v12 }
 0x11e   : > { %4624 = vmatpush3.bf16.msra.mxu1 %v4984_v18  ;;  %v1846_v18 = vld [vmem:[#allocation2 + $0x10b] sm:$0xff] }
 0x11f   : > { %v1862_v53 = vpack.c.bf16 %v1846_v18, %v1845_v17 }
 0x120   : > { %4354 = vmatmul.mubr.bf16.gmra.mrb[16].mxu1 %v5392_v20  ;;  %v3304_v20 = vld [vmem:[#allocation2 + $0x8e] sm:$0xff] }
 0x121   : > { %4578 = vmatmul.mubr.bf16.vlgmr.msra.gmra.mrb[0].mxu0 %v3324_v19  ;;  %4357 = vmatprep.mubr.bf16.mxu1 %v5409_v14  ;;  %v3329_v37 = vpack.c.bf16 %v3304_v20, %v3303_v15  ;;  %v1476_v14 = vld [vmem:[#allocation2 + $0x102] sm:$0xff]  ;;  %v3321_v19 = vld [vmem:[#allocation2 + $0x116] sm:$0xff] }
 0x122   : > { %4581 = vmatprep.mubr.bf16.mxu0 %v3325_v21  ;;  %v1493_v43 = vpack.c.bf16 %v1477_v38, %v1476_v14  ;;  %v3322_v21 = vld [vmem:[#allocation2 + $0x11e] sm:$0xff] }
 0x123   : > { %v3338_v1 = vpack.c.bf16 %v3322_v21, %v3321_v19 }
 0x128   : > { %4358 = vmatmul.mubr.bf16.gmra.mrb[20].mxu1 %v5411_v36  ;;  %v3306_v36 = vld [vmem:[#allocation2 + $0x9e] sm:$0xff] }
 0x129   : > { %4582 = vmatmul.mubr.bf16.gmra.mrb[4].mxu0 %v3326_v25  ;;  %4361 = vmatprep.mubr.bf16.mxu1 %v5421_v0  ;;  %v3307_v0 = vld [vmem:[#allocation2 + $0xa6] sm:$0xff]  ;;  %v3330_v45 = vpack.c.bf16 %v3306_v36, %v3305_v5 }
 0x12a   : > { %4585 = vmatprep.mubr.bf16.mxu0 %v3327_v26  ;;  %v3331_v49 = vpack.c.bf16 %v3308_v42, %v3307_v0  ;;  %v5479_v42 = vld [vmem:[%s5556_s2] ss:$0 sm:$0xff] }
 0x130   : > { %4362 = vmatmul.mubr.bf16.gmra.mrb[24].mxu1 %v5423_v33  ;;  %v1833_v33 = vld [vmem:[#allocation2 + $0xa3] sm:$0xff] }
 0x131   : > { %4586 = vmatmul.mubr.bf16.gmra.mrb[8].mxu0 %v3328_v35  ;;  %4365 = vmatprep.mubr.bf16.mxu1 %v5433_v46  ;;  %v3310_v46 = vld [vmem:[#allocation2 + $0xbe] sm:$0xff]  ;;  %v1856_v6 = vpack.c.bf16 %v1834_v51, %v1833_v33 }
 0x132   : > { %4589 = vmatprep.mubr.bf16.mxu0 %v3329_v37  ;;  %v3332_v57 = vpack.c.bf16 %v3310_v46, %v3309_v32 }
 0x138   : > { %4366 = vmatmul.mubr.bf16.gmra.mrb[28].mxu1 %v1493_v43 }
 0x139   : > { %4590 = vmatmul.mubr.bf16.gmra.mrb[12].mxu0 %v3330_v45  ;;  %4401 = vmatprep.mubr.bf16.mxu1 %v1855_v47 }
 0x13a   : > { %4593 = vmatprep.mubr.bf16.mxu0 %v3331_v49 }
 0x140   : > { %4402 = vmatmul.mubr.bf16.vlgmr.msra.gmra.mrb[16].mxu1 %v1856_v6 }
 0x141   : > { %4594 = vmatmul.mubr.bf16.gmra.mrb[16].mxu0 %v3332_v57  ;;  %4405 = vmatprep.mubr.bf16.mxu1 %v1857_v23 }
 0x142   : > { %4597 = vmatprep.mubr.bf16.mxu0 %v3333_v58 }
 0x148   : > { %4406 = vmatmul.mubr.bf16.gmra.mrb[20].mxu1 %v1858_v3 }
 0x149   : > { %4598 = vmatmul.mubr.bf16.gmra.mrb[20].mxu0 %v3334_v4  ;;  %4409 = vmatprep.mubr.bf16.mxu1 %v1859_v7 }
 0x14a   : > { %4601 = vmatprep.mubr.bf16.mxu0 %v3335_v9 }
 0x150   : > { %4410 = vmatmul.mubr.bf16.gmra.mrb[24].mxu1 %v1860_v40 }
 0x151   : > { %4602 = vmatmul.mubr.bf16.gmra.mrb[24].mxu0 %v3336_v52  ;;  %4413 = vmatprep.mubr.bf16.mxu1 %v1861_v16 }
 0x152   : > { %4605 = vmatprep.mubr.bf16.mxu0 %v3337_v48 }
 0x158   : > { %4414 = vmatmul.mubr.bf16.gmra.mrb[28].mxu1 %v1862_v53 }
 0x159   : > { %4606 = vmatmul.mubr.bf16.gmra.mrb[28].mxu0 %v3338_v1 }
 0x1d3   : > { %v4339_v50 = vpop.f32.mrb[0].mxu1 }
 0x1d4   : > { %v1624_v62 = vpop.f32.mrb[1].mxu1 }
 0x1d5   : > { %v4340_v25 = vpop.f32.mrb[2].mxu1 }
 0x1d6   : > { %v1627_v26 = vpop.f32.mrb[3].mxu1 }
 0x1db   : > { %v4343_v27 = vpop.f32.mrb[4].mxu1 }
 0x1dc   : > { %v1640_v28 = vpop.f32.mrb[5].mxu1 }
 0x1dd   : > { %v4344_v15 = vpop.f32.mrb[6].mxu1 }
 0x1de   : > { %v1643_v20 = vpop.f32.mrb[7].mxu1 }
 0x1e3   : > { %v4347_v35 = vpop.f32.mrb[8].mxu1 }
 0x1e4   : > { %v1656_v37 = vpop.f32.mrb[9].mxu1 }
 0x1e5   : > { %v4348_v14 = vpop.f32.mrb[10].mxu1 }
 0x1e6   : > { %v1659_v38 = vpop.f32.mrb[11].mxu1 }
 0x1eb   : > { %v4351_v5 = vpop.f32.mrb[12].mxu1 }
 0x1ec   : > { %v1672_v36 = vpop.f32.mrb[13].mxu1 }
 0x1ed   : > { %v4352_v30 = vpop.f32.mrb[14].mxu1 }
 0x1ee   : > { %v1675_v41 = vpop.f32.mrb[15].mxu1 }
 0x1f4   : > { %v4579_v0 = vpop.f32.mrb[0].mxu0 }
 0x1f5   : > { %v4625_v43 = vadd.f32 %v4579_v0, %v4339_v50  ;;  %v3469_v45 = vpop.f32.mrb[1].mxu0 }
 0x1f6   : > { %v4626_v47 = vadd.f32 %v3469_v45, %v1624_v62  ;;  %v4580_v49 = vpop.f32.mrb[2].mxu0 }
 0x1f7   : > { %v3701_v33 = vadd.f32 %v4625_v43, %v5479_v42  ;;  %v4627_v51 = vadd.f32 %v4580_v49, %v4340_v25  ;;  %v3472_v32 = vpop.f32.mrb[3].mxu0 }
 0x1f8   : > { %v3699_v46 = vadd.f32 %v4626_v47, %v5479_v42  ;;  %v4628_v54 = vadd.f32 %v3472_v32, %v1627_v26 }
 0x1f9   : > { %3733 = vst [vmem:[%s5069_s24 + $0x10] sm:$0xff] %v3701_v33  ;;  %v3702_v44 = vadd.f32 %v4627_v51, %v5479_v42 }
 0x1fa   : > { %3731 = vst [vmem:[%s5069_s24] sm:$0xff] %v3699_v46  ;;  %v3700_v55 = vadd.f32 %v4628_v54, %v5479_v42 }
 0x1fb   : > { %3734 = vst [vmem:[%s5069_s24 + $0x18] sm:$0xff] %v3702_v44 }
 0x1fc   : > { %3732 = vst [vmem:[%s5069_s24 + $0x8] sm:$0xff] %v3700_v55  ;;  %v4583_v56 = vpop.f32.mrb[4].mxu0 }
 0x1fd   : > { %v4629_v6 = vadd.f32 %v4583_v56, %v4343_v27  ;;  %v3485_v57 = vpop.f32.mrb[5].mxu0 }
 0x1fe   : > { %v4630_v23 = vadd.f32 %v3485_v57, %v1640_v28  ;;  %v4584_v58 = vpop.f32.mrb[6].mxu0 }
 0x1ff   : > { %v3705_v59 = vadd.f32 %v4629_v6, %v5479_v42  ;;  %v4631_v61 = vadd.f32 %v4584_v58, %v4344_v15  ;;  %v3488_v63 = vpop.f32.mrb[7].mxu0 }
 0x200   : > { %v3703_v8 = vadd.f32 %v4630_v23, %v5479_v42  ;;  %v4632_v24 = vadd.f32 %v3488_v63, %v1643_v20 }
 0x201   : > { %3737 = vst [vmem:[%s5069_s24 + $0x30] sm:$0xff] %v3705_v59  ;;  %v3706_v29 = vadd.f32 %v4631_v61, %v5479_v42 }
 0x202   : > { %3735 = vst [vmem:[%s5069_s24 + $0x20] sm:$0xff] %v3703_v8  ;;  %v3704_v60 = vadd.f32 %v4632_v24, %v5479_v42 }
 0x203   : > { %3738 = vst [vmem:[%s5069_s24 + $0x38] sm:$0xff] %v3706_v29 }
 0x204   : > { %3736 = vst [vmem:[%s5069_s24 + $0x28] sm:$0xff] %v3704_v60  ;;  %v4587_v2 = vpop.f32.mrb[8].mxu0 }
 0x205   : > { %v4633_v3 = vadd.f32 %v4587_v2, %v4347_v35  ;;  %v3501_v4 = vpop.f32.mrb[9].mxu0 }
 0x206   : > { %v4634_v7 = vadd.f32 %v3501_v4, %v1656_v37  ;;  %v4588_v9 = vpop.f32.mrb[10].mxu0 }
 0x207   : > { %v3709_v31 = vadd.f32 %v4633_v3, %v5479_v42  ;;  %v4635_v39 = vadd.f32 %v4588_v9, %v4348_v14  ;;  %v3504_v22 = vpop.f32.mrb[11].mxu0 }
 0x208   : > { %v3707_v34 = vadd.f32 %v4634_v7, %v5479_v42  ;;  %v4636_v10 = vadd.f32 %v3504_v22, %v1659_v38 }
 0x209   : > { %3741 = vst [vmem:[%s5069_s24 + $0x50] sm:$0xff] %v3709_v31  ;;  %v3710_v11 = vadd.f32 %v4635_v39, %v5479_v42 }
 0x20a   : > { %3739 = vst [vmem:[%s5069_s24 + $0x40] sm:$0xff] %v3707_v34  ;;  %v3708_v12 = vadd.f32 %v4636_v10, %v5479_v42 }
 0x20b   : > { %3742 = vst [vmem:[%s5069_s24 + $0x58] sm:$0xff] %v3710_v11 }
 0x20c   : > { %3740 = vst [vmem:[%s5069_s24 + $0x48] sm:$0xff] %v3708_v12  ;;  %v4591_v13 = vpop.f32.mrb[12].mxu0 }
 0x20d   : > { %v4637_v40 = vadd.f32 %v4591_v13, %v4351_v5  ;;  %v3517_v52 = vpop.f32.mrb[13].mxu0 }
 0x20e   : > { %v4638_v16 = vadd.f32 %v3517_v52, %v1672_v36  ;;  %v4592_v48 = vpop.f32.mrb[14].mxu0 }
 0x20f   : > { %v3713_v17 = vadd.f32 %v4637_v40, %v5479_v42  ;;  %v4639_v18 = vadd.f32 %v4592_v48, %v4352_v30  ;;  %v3520_v19 = vpop.f32.mrb[15].mxu0 }
 0x210   : > { %v3711_v21 = vadd.f32 %v4638_v16, %v5479_v42  ;;  %v4640_v53 = vadd.f32 %v3520_v19, %v1675_v41 }
 0x211   : > { %3745 = vst [vmem:[%s5069_s24 + $0x70] sm:$0xff] %v3713_v17  ;;  %v3714_v1 = vadd.f32 %v4639_v18, %v5479_v42 }
 0x212   : > { %3743 = vst [vmem:[%s5069_s24 + $0x60] sm:$0xff] %v3711_v21  ;;  %v3712_v50 = vadd.f32 %v4640_v53, %v5479_v42 }
 0x213   : > { %3746 = vst [vmem:[%s5069_s24 + $0x78] sm:$0xff] %v3714_v1  ;;  %v4403_v62 = vpop.f32.mrb[16].mxu1 }
 0x214   : > { %3744 = vst [vmem:[%s5069_s24 + $0x68] sm:$0xff] %v3712_v50  ;;  %v4595_v25 = vpop.f32.mrb[16].mxu0  ;;  %v2057_v26 = vpop.f32.mrb[17].mxu1 }
 0x215   : > { %v4641_v27 = vadd.f32 %v4595_v25, %v4403_v62  ;;  %v3533_v28 = vpop.f32.mrb[17].mxu0  ;;  %v4404_v15 = vpop.f32.mrb[18].mxu1 }
 0x216   : > { %v4642_v20 = vadd.f32 %v3533_v28, %v2057_v26  ;;  %v4596_v35 = vpop.f32.mrb[18].mxu0  ;;  %v2060_v37 = vpop.f32.mrb[19].mxu1 }
 0x217   : > { %v3717_v14 = vadd.f32 %v4641_v27, %v5479_v42  ;;  %v4643_v38 = vadd.f32 %v4596_v35, %v4404_v15  ;;  %v3536_v5 = vpop.f32.mrb[19].mxu0 }
 0x218   : > { %v3715_v36 = vadd.f32 %v4642_v20, %v5479_v42  ;;  %v4644_v30 = vadd.f32 %v3536_v5, %v2060_v37 }
 0x219   : > { %3749 = vst [vmem:[%s5069_s24 + $0x90] sm:$0xff] %v3717_v14  ;;  %v3718_v41 = vadd.f32 %v4643_v38, %v5479_v42 }
 0x21a   : > { %3747 = vst [vmem:[%s5069_s24 + $0x80] sm:$0xff] %v3715_v36  ;;  %v3716_v0 = vadd.f32 %v4644_v30, %v5479_v42 }
 0x21b   : > { %3750 = vst [vmem:[%s5069_s24 + $0x98] sm:$0xff] %v3718_v41  ;;  %v4407_v43 = vpop.f32.mrb[20].mxu1 }
 0x21c   : > { %3748 = vst [vmem:[%s5069_s24 + $0x88] sm:$0xff] %v3716_v0  ;;  %v4599_v45 = vpop.f32.mrb[20].mxu0  ;;  %v2073_v47 = vpop.f32.mrb[21].mxu1 }
 0x21d   : > { %v4645_v49 = vadd.f32 %v4599_v45, %v4407_v43  ;;  %v3549_v33 = vpop.f32.mrb[21].mxu0  ;;  %v4408_v51 = vpop.f32.mrb[22].mxu1 }
 0x21e   : > { %v4646_v32 = vadd.f32 %v3549_v33, %v2073_v47  ;;  %v4600_v46 = vpop.f32.mrb[22].mxu0  ;;  %v2076_v54 = vpop.f32.mrb[23].mxu1 }
 0x21f   : > { %v3721_v44 = vadd.f32 %v4645_v49, %v5479_v42  ;;  %v4647_v55 = vadd.f32 %v4600_v46, %v4408_v51  ;;  %v3552_v56 = vpop.f32.mrb[23].mxu0 }
 0x220   : > { %v3719_v6 = vadd.f32 %v4646_v32, %v5479_v42  ;;  %v4648_v57 = vadd.f32 %v3552_v56, %v2076_v54 }
 0x221   : > { %3753 = vst [vmem:[%s5069_s24 + $0xb0] sm:$0xff] %v3721_v44  ;;  %v3722_v23 = vadd.f32 %v4647_v55, %v5479_v42 }
 0x222   : > { %3751 = vst [vmem:[%s5069_s24 + $0xa0] sm:$0xff] %v3719_v6  ;;  %v3720_v58 = vadd.f32 %v4648_v57, %v5479_v42 }
 0x223   : > { %3754 = vst [vmem:[%s5069_s24 + $0xb8] sm:$0xff] %v3722_v23  ;;  %v4411_v59 = vpop.f32.mrb[24].mxu1 }
 0x224   : > { %3752 = vst [vmem:[%s5069_s24 + $0xa8] sm:$0xff] %v3720_v58  ;;  %v4603_v61 = vpop.f32.mrb[24].mxu0  ;;  %v2089_v63 = vpop.f32.mrb[25].mxu1 }
 0x225   : > { %v4649_v8 = vadd.f32 %v4603_v61, %v4411_v59  ;;  %v3565_v24 = vpop.f32.mrb[25].mxu0  ;;  %v4412_v29 = vpop.f32.mrb[26].mxu1 }
 0x226   : > { %v4650_v60 = vadd.f32 %v3565_v24, %v2089_v63  ;;  %v4604_v2 = vpop.f32.mrb[26].mxu0  ;;  %v2092_v3 = vpop.f32.mrb[27].mxu1 }
 0x227   : > { %v3725_v4 = vadd.f32 %v4649_v8, %v5479_v42  ;;  %v4651_v7 = vadd.f32 %v4604_v2, %v4412_v29  ;;  %v3568_v9 = vpop.f32.mrb[27].mxu0 }
 0x228   : > { %v3723_v31 = vadd.f32 %v4650_v60, %v5479_v42  ;;  %v4652_v39 = vadd.f32 %v3568_v9, %v2092_v3 }
 0x229   : > { %3757 = vst [vmem:[%s5069_s24 + $0xd0] sm:$0xff] %v3725_v4  ;;  %v3726_v22 = vadd.f32 %v4651_v7, %v5479_v42 }
 0x22a   : > { %3755 = vst [vmem:[%s5069_s24 + $0xc0] sm:$0xff] %v3723_v31  ;;  %v3724_v34 = vadd.f32 %v4652_v39, %v5479_v42 }
 0x22b   : > { %3758 = vst [vmem:[%s5069_s24 + $0xd8] sm:$0xff] %v3726_v22  ;;  %v4415_v10 = vpop.f32.mrb[28].mxu1 }
 0x22c   : > { %3756 = vst [vmem:[%s5069_s24 + $0xc8] sm:$0xff] %v3724_v34  ;;  %v4607_v11 = vpop.f32.mrb[28].mxu0  ;;  %v2105_v12 = vpop.f32.mrb[29].mxu1 }
 0x22d   : > { %v4653_v13 = vadd.f32 %v4607_v11, %v4415_v10  ;;  %v3581_v40 = vpop.f32.mrb[29].mxu0  ;;  %v4416_v52 = vpop.f32.mrb[30].mxu1 }
 0x22e   : > { %v4654_v16 = vadd.f32 %v3581_v40, %v2105_v12  ;;  %v4608_v48 = vpop.f32.mrb[30].mxu0  ;;  %v2108_v17 = vpop.f32.mrb[31].mxu1 }
 0x22f   : > { %v3729_v18 = vadd.f32 %v4653_v13, %v5479_v42  ;;  %v4655_v19 = vadd.f32 %v4608_v48, %v4416_v52  ;;  %v3584_v21 = vpop.f32.mrb[31].mxu0 }
 0x230   : > { %v3727_v53 = vadd.f32 %v4654_v16, %v5479_v42  ;;  %v4656_v1 = vadd.f32 %v3584_v21, %v2108_v17 }
 0x231   : > { %3761 = vst [vmem:[%s5069_s24 + $0xf0] sm:$0xff] %v3729_v18  ;;  %v3730_v50 = vadd.f32 %v4655_v19, %v5479_v42 }
 0x232   : > { %3759 = vst [vmem:[%s5069_s24 + $0xe0] sm:$0xff] %v3727_v53  ;;  %v3728_v62 = vadd.f32 %v4656_v1, %v5479_v42 }
 0x233   : > { %3762 = vst [vmem:[%s5069_s24 + $0xf8] sm:$0xff] %v3730_v50 }
 0x234   : > { %3760 = vst [vmem:[%s5069_s24 + $0xe8] sm:$0xff] %v3728_v62 }
 0x235 PF: > { %s13_s14 = sadd.s32 1, %s5009_s14   ;;  %s5558_s12 = smov %s5005_s13 }
 0x236   : > { %p10_p5 = scmp.ge.s32.totalorder %s13_s14, 5   ;;  %s5559_s13 = smov %s5561_s15 }
 0x238   :  { %12 = sbr.rel (!%p10_p5) target bundleno = 2 (0x2), region = 113 }
 0x23f   :  { %3791 = vsyncmov [#allocation4] }
 0x242   :  { %s3792_s26 = vpop.sfrf %3791 }
 0x243   :  { %p3960_p6 = scmp.ne.s32.totalorder %s3792_s26, 0 }
 0x245   :  { %3796 = shalt.err (%p3960_p6)  }

// kernel: wide_basic_forward.13
= control target key start
LH: loop header
LB: loop body
LE: loop exit
PB: predicated region body
PF: predicated region fallthrough
CT: control target
= control target key end

     0   :  { %s1297_s15 = smov 0   ;;  %s1299_s16 = smov 0   ;;  %s1535_s0 = inlined_call_operand.vmem [shape: bf16[128,1280], index: 0, kind: input, shape index: {}]   ;;  %s1536_s1 = inlined_call_operand.vmem [shape: bf16[1280,128], index: 1, kind: input, shape index: {}]   ;;  %s1537_s2 = inlined_call_operand.vmem [shape: f32[1,128], index: 2, kind: input, shape index: {}]   ;;  %s1538_s3 = inlined_call_operand.vmem [shape: f32[128,128], index: 3, kind: input, shape index: {}]   ;;  %s1539_s4 = inlined_call_operand.vmem [shape: f32[128,128], index: 4, kind: output, shape index: {}]  }
   0x1   :  { %s1301_s17 = smov 0   ;;  %s1303_s18 = smov 0  }
   0x2   :  { %s1305_s19 = smov 0  }
   0x3 LB: > { %s26_s20 = sadd.s32 1, %s1265_s18  ;;  %p49_p1 = scmp.ne.s32.totalorder %s1257_s16, %s1253_s15  ;;  %s1269_s19 = sphi %s1305_s19, %s14_s19   ;;  %s1265_s18 = sphi %s1303_s18, %s1543_s18   ;;  %s1261_s17 = sphi %s1301_s17, %s1542_s17   ;;  %s1257_s16 = sphi %s1299_s16, %s1541_s16   ;;  %s1253_s15 = sphi %s1297_s15, %s1540_s15  }
   0x4   : > { %p27_p0 = scmp.ge.s32.totalorder %s26_s20, 5  ;;  %p50_p2 = scmp.eq.s32.totalorder %s1269_s19, 0 }
   0x5   : > { %s42_s22 = sadd.s32 1, %s1257_s16  ;;  %p1022_p5 = scmp.ge.s32.totalorder %s1269_s19, 5 }
   0x6   : > { %s1545_s20 = smov (%p27_p0, %s26_s20), 0  ;;  %p51_p3 = por %p50_p2, %p49_p1 }
   0x7   : > { %s38_s21 = ssub.s32 %s1265_s18, %s1545_s20  ;;  %203 = sbr.rel (%p1022_p5) target bundleno = 26 (0x1a), region = 24 }
   0x8   : > { %p40_p4 = scmp.eq.s32.totalorder %s38_s21, 0 }
   0xa   : > { %s1332_s23 = scalar_select %p40_p4, %s1257_s16, %s42_s22  }
   0xe   : > { %206 = sbr.rel (!%p51_p3) target bundleno = 26 (0x1a), region = 28  ;;  %s208_s24 = sand.u32 (%p51_p3), 1, %s1257_s16  }
   0xf   : > { %s1069_s25 = sshll.u32 (%p51_p3), %s1265_s18, 3  ;;  %s1023_s26 = sshll.u32 (%p51_p3), %s208_s24, 7 }
  0x10   : > { %s1340_s29 = scalar_lea.vmem (%p51_p3), %s1535_s0, %s1069_s25  ;;  %s210_s30 = scalar_lea.vmem (%p51_p3), [#allocation3], %s1023_s26 }
  0x11   : > { %v274_v0 = vld [vmem:[%s1340_s29] sm:$0xff] (%p51_p3)  ;;  %v276_v1 = vld [vmem:[%s1340_s29 + $0x28] sm:$0xff] (%p51_p3)  ;;  %v278_v2 = vld [vmem:[%s1340_s29 + $0x50] sm:$0xff] (%p51_p3) }
  0x12   : > { %275 = vst [vmem:[%s210_s30] sm:$0xff] (%p51_p3), %v274_v0  ;;  %277 = vst [vmem:[%s210_s30 + $0x8] sm:$0xff] (%p51_p3), %v276_v1  ;;  %v280_v3 = vld [vmem:[%s1340_s29 + $0x78] sm:$0xff] (%p51_p3)  ;;  %v282_v4 = vld [vmem:[%s1340_s29 + $0xa0] sm:$0xff] (%p51_p3) }
  0x13   : > { %279 = vst [vmem:[%s210_s30 + $0x10] sm:$0xff] (%p51_p3), %v278_v2  ;;  %v284_v5 = vld [vmem:[%s1340_s29 + $0xc8] sm:$0xff] (%p51_p3)  ;;  %281 = vst [vmem:[%s210_s30 + $0x18] sm:$0xff] (%p51_p3), %v280_v3  ;;  %v286_v6 = vld [vmem:[%s1340_s29 + $0xf0] sm:$0xff] (%p51_p3) }
  0x14   : > { %283 = vst [vmem:[%s210_s30 + $0x20] sm:$0xff] (%p51_p3), %v282_v4  ;;  %285 = vst [vmem:[%s210_s30 + $0x28] sm:$0xff] (%p51_p3), %v284_v5  ;;  %v288_v7 = vld [vmem:[%s1340_s29 + $0x118] sm:$0xff] (%p51_p3)  ;;  %v290_v8 = vld [vmem:[%s1340_s29 + $0x140] sm:$0xff] (%p51_p3) }
  0x15   : > { %287 = vst [vmem:[%s210_s30 + $0x30] sm:$0xff] %v286_v6  ;;  %289 = vst [vmem:[%s210_s30 + $0x38] sm:$0xff] %v288_v7  ;;  %v292_v9 = vld [vmem:[%s1340_s29 + $0x168] sm:$0xff]  ;;  %v294_v10 = vld [vmem:[%s1340_s29 + $0x190] sm:$0xff] }
  0x16   : > { %291 = vst [vmem:[%s210_s30 + $0x40] sm:$0xff] %v290_v8  ;;  %v296_v11 = vld [vmem:[%s1340_s29 + $0x1b8] sm:$0xff]  ;;  %293 = vst [vmem:[%s210_s30 + $0x48] sm:$0xff] %v292_v9  ;;  %v298_v12 = vld [vmem:[%s1340_s29 + $0x1e0] sm:$0xff] }
  0x17   : > { %295 = vst [vmem:[%s210_s30 + $0x50] sm:$0xff] %v294_v10  ;;  %297 = vst [vmem:[%s210_s30 + $0x58] sm:$0xff] %v296_v11  ;;  %v300_v13 = vld [vmem:[%s1340_s29 + $0x208] sm:$0xff]  ;;  %v302_v14 = vld [vmem:[%s1340_s29 + $0x230] sm:$0xff] }
  0x18   : > { %299 = vst [vmem:[%s210_s30 + $0x60] sm:$0xff] %v298_v12  ;;  %301 = vst [vmem:[%s210_s30 + $0x68] sm:$0xff] %v300_v13  ;;  %v304_v15 = vld [vmem:[%s1340_s29 + $0x258] sm:$0xff] }
  0x19   : > { %303 = vst [vmem:[%s210_s30 + $0x70] sm:$0xff] %v302_v14  ;;  %305 = vst [vmem:[%s210_s30 + $0x78] sm:$0xff] %v304_v15 }
  0x1a PF: > { %p1026_p6 = scmp.ge.s32.totalorder %s1269_s19, 1  ;;  %p322_p7 = scmp.lt.s32.totalorder %s1269_s19, 6 }
  0x1c   : > { %p323_p8 = pnand %p1026_p6, %p322_p7 }
  0x1d   : > { %s329_s5 = sand.u32 (!%p323_p8), 1, %s1253_s15   ;;  %s1028_s6 = sshll.u32 (!%p323_p8), %s1261_s17, 5 }
  0x1e   : > { %326 = sbr.rel (%p323_p8) target bundleno = 337 (0x151), region = 70  ;;  %s1027_s7 = sshll.u32 (!%p323_p8), %s329_s5, 7 }
  0x1f   : > { %p379_p9 = scmp.lt.s32.totalorder (!%p323_p8), %s1028_s6, 159  ;;  %s1367_s12 = scalar_lea.vmem (!%p323_p8), [#allocation3], %s1027_s7 }
  0x20   : > { %p1030_p10 = scmp.ne.s32.totalorder (!%p323_p8), %s1261_s17, 0 }
  0x25   : > { %s1547_s6 = smov (!%p379_p9, %s1028_s6), 159  ;;  %412 = sbr.rel (%p1030_p10) target bundleno = 47 (0x2f), region = 78 }
  0x26   : > { %s1029_s8 = sshll.u32 %s1547_s6, 2  ;;  %v1271_v16 = vmov (!%p1030_p10), 0.0  }
  0x27   : > { %s1365_s11 = scalar_lea.vmem %s1536_s1, %s1029_s8  ;;  %413 = vst [vmem:[#allocation2] sm:$0xff] (!%p1030_p10), %v1271_v16  ;;  %414 = vst [vmem:[#allocation2 + $0x8] sm:$0xff] (!%p1030_p10), %v1271_v16 }
  0x28   : > { %415 = vst [vmem:[#allocation2 + $0x10] sm:$0xff] (!%p1030_p10), %v1271_v16  ;;  %416 = vst [vmem:[#allocation2 + $0x18] sm:$0xff] (!%p1030_p10), %v1271_v16 }
  0x29   : > { %417 = vst [vmem:[#allocation2 + $0x20] sm:$0xff] (!%p1030_p10), %v1271_v16  ;;  %418 = vst [vmem:[#allocation2 + $0x28] sm:$0xff] (!%p1030_p10), %v1271_v16 }
  0x2a   : > { %419 = vst [vmem:[#allocation2 + $0x30] sm:$0xff] (!%p1030_p10), %v1271_v16  ;;  %420 = vst [vmem:[#allocation2 + $0x38] sm:$0xff] (!%p1030_p10), %v1271_v16 }
  0x2b   : > { %421 = vst [vmem:[#allocation2 + $0x40] sm:$0xff] (!%p1030_p10), %v1271_v16  ;;  %422 = vst [vmem:[#allocation2 + $0x48] sm:$0xff] (!%p1030_p10), %v1271_v16 }
  0x2c   : > { %423 = vst [vmem:[#allocation2 + $0x50] sm:$0xff] %v1271_v16  ;;  %424 = vst [vmem:[#allocation2 + $0x58] sm:$0xff] %v1271_v16 }
  0x2d   : > { %425 = vst [vmem:[#allocation2 + $0x60] sm:$0xff] %v1271_v16  ;;  %426 = vst [vmem:[#allocation2 + $0x68] sm:$0xff] %v1271_v16 }
  0x2e   : > { %427 = vst [vmem:[#allocation2 + $0x70] sm:$0xff] %v1271_v16  ;;  %428 = vst [vmem:[#allocation2 + $0x78] sm:$0xff] %v1271_v16 }
  0x2f PF: > { %v1191_v17 = vld [vmem:[%s1365_s11 + $0x40] sm:$0xff]   ;;  %v1193_v19 = vld [vmem:[%s1365_s11 + $0x48] sm:$0xff]   ;;  %v1195_v21 = vld [vmem:[%s1365_s11 + $0x50] sm:$0xff]   ;;  %p1063_p11 = scmp.ne.s32.totalorder %s1261_s17, 4 }
  0x30   : > { %v1192_v18 = vld [vmem:[%s1365_s11] sm:$0xff]   ;;  %1070 = vmatprep.subr.bf16.mxu0 %v1191_v17  ;;  %1134 = vmatprep.subr.bf16.mxu1 %v1191_v17  ;;  %v1194_v20 = vld [vmem:[%s1365_s11 + $0x8] sm:$0xff]   ;;  %v1196_v22 = vld [vmem:[%s1365_s11 + $0x10] sm:$0xff]  }
  0x31   : > { %1071 = vmatpush3.bf16.msra.mxu0 %v1192_v18  ;;  %1142 = vmatpush3.bf16.msra.mxu1 %v1192_v18  ;;  %v1197_v23 = vld [vmem:[%s1365_s11 + $0x58] sm:$0xff]   ;;  %v1199_v25 = vld [vmem:[%s1365_s11 + $0x60] sm:$0xff]   ;;  %v1201_v27 = vld [vmem:[%s1365_s11 + $0x68] sm:$0xff]  }
  0x32   : > { %1072 = vmatprep.subr.bf16.mxu0 %v1193_v19  ;;  %1135 = vmatprep.subr.bf16.mxu1 %v1193_v19  ;;  %v1198_v24 = vld [vmem:[%s1365_s11 + $0x18] sm:$0xff]   ;;  %v1200_v26 = vld [vmem:[%s1365_s11 + $0x20] sm:$0xff]   ;;  %v1202_v30 = vld [vmem:[%s1365_s11 + $0x28] sm:$0xff]  }
  0x33   : > { %v1209_v28 = vld [vmem:[%s1367_s12 + $0x4] ss:$8 sps:$4 sm:$0xff]   ;;  %v1203_v31 = vld [vmem:[%s1365_s11 + $0x70] sm:$0xff]   ;;  %v1205_v33 = vld [vmem:[%s1365_s11 + $0x78] sm:$0xff]  }
  0x34   : > { %v1212_v29 = vld [vmem:[%s1367_s12 + $0x44] ss:$8 sps:$4 sm:$0xff]   ;;  %701 = vmatprep.mubr.bf16.mxu0 %v1209_v28  ;;  %v1204_v32 = vld [vmem:[%s1365_s11 + $0x30] sm:$0xff]   ;;  %v1206_v34 = vld [vmem:[%s1365_s11 + $0x38] sm:$0xff]  }
  0x35   : > { %1073 = vmatpush3.bf16.msra.mxu0 %v1194_v20  ;;  %1143 = vmatpush3.bf16.msra.mxu1 %v1194_v20  ;;  %v1207_v35 = vld [vmem:[%s1367_s12] ss:$8 sps:$4 sm:$0xff]   ;;  %v1213_v37 = vld [vmem:[%s1367_s12 + $0x14] ss:$8 sps:$4 sm:$0xff]   ;;  %v1217_v39 = vld [vmem:[%s1367_s12 + $0x10] ss:$8 sps:$4 sm:$0xff]  }
  0x36   : > { %1074 = vmatprep.subr.bf16.mxu0 %v1195_v21  ;;  %1136 = vmatprep.subr.bf16.mxu1 %v1195_v21  ;;  %v1210_v36 = vld [vmem:[%s1367_s12 + $0x40] ss:$8 sps:$4 sm:$0xff]   ;;  %v1215_v38 = vld [vmem:[%s1367_s12 + $0x54] ss:$8 sps:$4 sm:$0xff]   ;;  %v1218_v40 = vld [vmem:[%s1367_s12 + $0x50] ss:$8 sps:$4 sm:$0xff]  }
  0x37   : > { %733 = vmatprep.mubr.bf16.mxu1 %v1212_v29  ;;  %v1219_v41 = vld [vmem:[%s1367_s12 + $0x24] ss:$8 sps:$4 sm:$0xff]   ;;  %v1223_v43 = vld [vmem:[%s1367_s12 + $0x20] ss:$8 sps:$4 sm:$0xff]   ;;  %v1225_v45 = vld [vmem:[%s1367_s12 + $0x34] ss:$8 sps:$4 sm:$0xff]  }
  0x38   : > { %v1221_v42 = vld [vmem:[%s1367_s12 + $0x64] ss:$8 sps:$4 sm:$0xff]   ;;  %v1224_v44 = vld [vmem:[%s1367_s12 + $0x60] ss:$8 sps:$4 sm:$0xff]   ;;  %v1227_v46 = vld [vmem:[%s1367_s12 + $0x74] ss:$8 sps:$4 sm:$0xff]  }
  0x39   : > { %1075 = vmatpush3.bf16.msra.mxu0 %v1196_v22  ;;  %1144 = vmatpush3.bf16.msra.mxu1 %v1196_v22  ;;  %v1229_v47 = vld [vmem:[%s1367_s12 + $0x30] ss:$8 sps:$4 sm:$0xff]   ;;  %v429_v51 = vld [vmem:[#allocation2] sm:$0xff]  ;;  %v430_v59 = vld [vmem:[#allocation2 + $0x8] sm:$0xff] }
  0x3a   : > { %1076 = vmatprep.subr.bf16.mxu0 %v1197_v23  ;;  %1137 = vmatprep.subr.bf16.mxu1 %v1197_v23  ;;  %v1230_v48 = vld [vmem:[%s1367_s12 + $0x70] ss:$8 sps:$4 sm:$0xff]   ;;  %v437_v53 = vld [vmem:[#allocation2 + $0x40] sm:$0xff]  ;;  %v438_v61 = vld [vmem:[#allocation2 + $0x48] sm:$0xff] }
  0x3b   : > { %v431_v7 = vld [vmem:[#allocation2 + $0x10] sm:$0xff]  ;;  %v432_v15 = vld [vmem:[#allocation2 + $0x18] sm:$0xff]  ;;  %v441_v29 = vld [vmem:[#allocation2 + $0x60] sm:$0xff] }
  0x3c   : > { %v439_v9 = vld [vmem:[#allocation2 + $0x50] sm:$0xff]  ;;  %v440_v17 = vld [vmem:[#allocation2 + $0x58] sm:$0xff] }
  0x3d   : > { %1077 = vmatpush3.bf16.msra.mxu0 %v1198_v24  ;;  %1145 = vmatpush3.bf16.msra.mxu1 %v1198_v24 }
  0x3e   : > { %1078 = vmatprep.subr.bf16.mxu0 %v1199_v25  ;;  %1138 = vmatprep.subr.bf16.mxu1 %v1199_v25 }
  0x41   : > { %1079 = vmatpush3.bf16.msra.mxu0 %v1200_v26  ;;  %1146 = vmatpush3.bf16.msra.mxu1 %v1200_v26 }
  0x42   : > { %1080 = vmatprep.subr.bf16.mxu0 %v1201_v27  ;;  %1139 = vmatprep.subr.bf16.mxu1 %v1201_v27  ;;  %v433_v27 = vld [vmem:[#allocation2 + $0x20] sm:$0xff] }
  0x45   : > { %1081 = vmatpush3.bf16.msra.mxu0 %v1202_v30  ;;  %1147 = vmatpush3.bf16.msra.mxu1 %v1202_v30 }
  0x46   : > { %1082 = vmatprep.subr.bf16.mxu0 %v1203_v31  ;;  %1140 = vmatprep.subr.bf16.mxu1 %v1203_v31 }
  0x49   : > { %1083 = vmatpush3.bf16.msra.mxu0 %v1204_v32  ;;  %1148 = vmatpush3.bf16.msra.mxu1 %v1204_v32 }
  0x4a   : > { %1084 = vmatprep.subr.bf16.mxu0 %v1205_v33  ;;  %1141 = vmatprep.subr.bf16.mxu1 %v1205_v33 }
  0x4d   : > { %1085 = vmatpush3.bf16.msra.mxu0 %v1206_v34  ;;  %1149 = vmatpush3.bf16.msra.mxu1 %v1206_v34 }
  0x50   : > { %702 = vmatmul.mubr.bf16.vlgmr.msra.gmra.mrb[0].mxu0 %v1207_v35  ;;  %734 = vmatmul.mubr.bf16.vlgmr.msra.gmra.mrb[0].mxu1 %v1210_v36  ;;  %v434_v35 = vld [vmem:[#allocation2 + $0x28] sm:$0xff] }
  0x51   : > { %709 = vmatprep.mubr.bf16.mxu0 %v1213_v37  ;;  %741 = vmatprep.mubr.bf16.mxu1 %v1215_v38  ;;  %v442_v37 = vld [vmem:[#allocation2 + $0x68] sm:$0xff] }
  0x58   : > { %710 = vmatmul.mubr.bf16.gmra.mrb[4].mxu0 %v1217_v39  ;;  %742 = vmatmul.mubr.bf16.gmra.mrb[4].mxu1 %v1218_v40 }
  0x59   : > { %717 = vmatprep.mubr.bf16.mxu0 %v1219_v41  ;;  %749 = vmatprep.mubr.bf16.mxu1 %v1221_v42 }
  0x60   : > { %718 = vmatmul.mubr.bf16.gmra.mrb[8].mxu0 %v1223_v43  ;;  %750 = vmatmul.mubr.bf16.gmra.mrb[8].mxu1 %v1224_v44 }
  0x61   : > { %725 = vmatprep.mubr.bf16.mxu0 %v1225_v45  ;;  %757 = vmatprep.mubr.bf16.mxu1 %v1227_v46 }
  0x68   : > { %726 = vmatmul.mubr.bf16.gmra.mrb[12].mxu0 %v1229_v47  ;;  %758 = vmatmul.mubr.bf16.gmra.mrb[12].mxu1 %v1230_v48  ;;  %v435_v47 = vld [vmem:[#allocation2 + $0x30] sm:$0xff] }
 0x123   : > { %v1086_v49 = vpop.f32.mrb[0].mxu0  ;;  %v1110_v50 = vpop.f32.mrb[0].mxu1 }
 0x124   : > { %v1087_v52 = vpop.f32.mrb[1].mxu0  ;;  %v1111_v54 = vpop.f32.mrb[1].mxu1 }
 0x125   : > { %v1088_v55 = vadd.f32 %v1087_v52, %v1086_v49  ;;  %v1112_v56 = vadd.f32 %v1111_v54, %v1110_v50  ;;  %v1089_v57 = vpop.f32.mrb[2].mxu0  ;;  %v1113_v58 = vpop.f32.mrb[2].mxu1  ;;  %v443_v49 = vld [vmem:[#allocation2 + $0x70] sm:$0xff] }
 0x126   : > { %v1090_v60 = vpop.f32.mrb[3].mxu0  ;;  %v1114_v62 = vpop.f32.mrb[3].mxu1 }
 0x127   : > { %v766_v63 = vadd.f32 %v1088_v55, %v429_v51  ;;  %v774_v0 = vadd.f32 %v1112_v56, %v437_v53  ;;  %v1091_v1 = vadd.f32 %v1090_v60, %v1089_v57  ;;  %v1115_v2 = vadd.f32 %v1114_v62, %v1113_v58  ;;  %v436_v55 = vld [vmem:[#allocation2 + $0x38] sm:$0xff] }
 0x128   : > { %v444_v57 = vld [vmem:[#allocation2 + $0x78] sm:$0xff] }
 0x129   : > { %782 = vst [vmem:[#allocation2] sm:$0xff] %v766_v63  ;;  %790 = vst [vmem:[#allocation2 + $0x40] sm:$0xff] %v774_v0  ;;  %v767_v3 = vadd.f32 %v1091_v1, %v430_v59  ;;  %v775_v4 = vadd.f32 %v1115_v2, %v438_v61  ;;  %v1406_v2 = vld [vmem:[%s1537_s2] ss:$0 sm:$0xff] (!%p1063_p11) }
 0x12b   : > { %783 = vst [vmem:[#allocation2 + $0x8] sm:$0xff] %v767_v3  ;;  %791 = vst [vmem:[#allocation2 + $0x48] sm:$0xff] %v775_v4  ;;  %v1092_v5 = vpop.f32.mrb[4].mxu0  ;;  %v1116_v6 = vpop.f32.mrb[4].mxu1  ;;  %v841_v3 = vld [vmem:[%s1538_s3] sm:$0xff] (!%p1063_p11) }
 0x12c   : > { %v1093_v8 = vpop.f32.mrb[5].mxu0  ;;  %v1117_v10 = vpop.f32.mrb[5].mxu1 }
 0x12d   : > { %v1094_v11 = vadd.f32 %v1093_v8, %v1092_v5  ;;  %v1118_v12 = vadd.f32 %v1117_v10, %v1116_v6  ;;  %v1095_v13 = vpop.f32.mrb[6].mxu0  ;;  %v1119_v14 = vpop.f32.mrb[6].mxu1  ;;  %v842_v6 = vld [vmem:[%s1538_s3 + $0x8] sm:$0xff] (!%p1063_p11)  ;;  %v843_v10 = vld [vmem:[%s1538_s3 + $0x10] sm:$0xff] (!%p1063_p11) }
 0x12e   : > { %v1096_v16 = vpop.f32.mrb[7].mxu0  ;;  %v1120_v18 = vpop.f32.mrb[7].mxu1 }
 0x12f   : > { %v768_v19 = vadd.f32 %v1094_v11, %v431_v7  ;;  %v776_v20 = vadd.f32 %v1118_v12, %v439_v9  ;;  %v1097_v21 = vadd.f32 %v1096_v16, %v1095_v13  ;;  %v1121_v22 = vadd.f32 %v1120_v18, %v1119_v14  ;;  %v844_v12 = vld [vmem:[%s1538_s3 + $0x18] sm:$0xff] (!%p1063_p11)  ;;  %v845_v16 = vld [vmem:[%s1538_s3 + $0x20] sm:$0xff] (!%p1063_p11) }
 0x130   : > { %v802_v1 = vld [vmem:[#allocation2] sm:$0xff] (!%p1063_p11) }
 0x131   : > { %784 = vst [vmem:[#allocation2 + $0x10] sm:$0xff] %v768_v19  ;;  %792 = vst [vmem:[#allocation2 + $0x50] sm:$0xff] %v776_v20  ;;  %v769_v23 = vadd.f32 %v1097_v21, %v432_v15  ;;  %v777_v24 = vadd.f32 %v1121_v22, %v440_v17  ;;  %v825_v4 = vadd.f32 (!%p1063_p11), %v1406_v2, %v802_v1  ;;  %v846_v22 = vld [vmem:[%s1538_s3 + $0x28] sm:$0xff] (!%p1063_p11) }
 0x132   : > { %v803_v5 = vld [vmem:[#allocation2 + $0x8] sm:$0xff] (!%p1063_p11) }
 0x133   : > { %785 = vst [vmem:[#allocation2 + $0x18] sm:$0xff] %v769_v23  ;;  %793 = vst [vmem:[#allocation2 + $0x58] sm:$0xff] %v777_v24  ;;  %v1098_v25 = vpop.f32.mrb[8].mxu0  ;;  %v1122_v26 = vpop.f32.mrb[8].mxu1  ;;  %v826_v8 = vadd.f32 (!%p1063_p11), %v1406_v2, %v803_v5  ;;  %v857_v13 = vadd.f32 (!%p1063_p11), %v841_v3, %v825_v4  ;;  %v847_v24 = vld [vmem:[%s1538_s3 + $0x30] sm:$0xff] (!%p1063_p11) }
 0x134   : > { %v1099_v28 = vpop.f32.mrb[9].mxu0  ;;  %v1123_v30 = vpop.f32.mrb[9].mxu1 }
 0x135   : > { %v1100_v31 = vadd.f32 %v1099_v28, %v1098_v25  ;;  %v1124_v32 = vadd.f32 %v1123_v30, %v1122_v26  ;;  %v1101_v33 = vpop.f32.mrb[10].mxu0  ;;  %v1125_v34 = vpop.f32.mrb[10].mxu1  ;;  %v858_v18 = vadd.f32 (!%p1063_p11), %v842_v6, %v826_v8  ;;  %873 = vst [vmem:[%s1539_s4] sm:$0xff] (!%p1063_p11), %v857_v13  ;;  %v848_v28 = vld [vmem:[%s1538_s3 + $0x38] sm:$0xff] (!%p1063_p11) }
 0x136   : > { %v1102_v36 = vpop.f32.mrb[11].mxu0  ;;  %v1126_v38 = vpop.f32.mrb[11].mxu1 }
 0x137   : > { %v770_v39 = vadd.f32 %v1100_v31, %v433_v27  ;;  %v778_v40 = vadd.f32 %v1124_v32, %v441_v29  ;;  %v1103_v41 = vadd.f32 %v1102_v36, %v1101_v33  ;;  %v1127_v42 = vadd.f32 %v1126_v38, %v1125_v34  ;;  %v810_v29 = vld [vmem:[#allocation2 + $0x40] sm:$0xff] (!%p1063_p11)  ;;  %874 = vst [vmem:[%s1539_s4 + $0x8] sm:$0xff] (!%p1063_p11), %v858_v18  ;;  %v850_v36 = vld [vmem:[%s1538_s3 + $0x48] sm:$0xff] (!%p1063_p11) }
 0x138   : > { %v804_v7 = vld [vmem:[#allocation2 + $0x10] sm:$0xff] (!%p1063_p11)  ;;  %v833_v33 = vadd.f32 (!%p1063_p11), %v1406_v2, %v810_v29  ;;  %v849_v34 = vld [vmem:[%s1538_s3 + $0x40] sm:$0xff] (!%p1063_p11) }
 0x139   : > { %786 = vst [vmem:[#allocation2 + $0x20] sm:$0xff] %v770_v39  ;;  %794 = vst [vmem:[#allocation2 + $0x60] sm:$0xff] %v778_v40  ;;  %v771_v43 = vadd.f32 %v1103_v41, %v434_v35  ;;  %v779_v44 = vadd.f32 %v1127_v42, %v442_v37  ;;  %v827_v9 = vadd.f32 (!%p1063_p11), %v1406_v2, %v804_v7  ;;  %v811_v35 = vld [vmem:[#allocation2 + $0x48] sm:$0xff] (!%p1063_p11)  ;;  %v812_v39 = vld [vmem:[#allocation2 + $0x50] sm:$0xff] (!%p1063_p11) }
 0x13a   : > { %v805_v11 = vld [vmem:[#allocation2 + $0x18] sm:$0xff] (!%p1063_p11)  ;;  %v834_v38 = vadd.f32 (!%p1063_p11), %v1406_v2, %v811_v35  ;;  %v851_v40 = vld [vmem:[%s1538_s3 + $0x50] sm:$0xff] (!%p1063_p11) }
 0x13b   : > { %787 = vst [vmem:[#allocation2 + $0x28] sm:$0xff] %v771_v43  ;;  %795 = vst [vmem:[#allocation2 + $0x68] sm:$0xff] %v779_v44  ;;  %v1104_v45 = vpop.f32.mrb[12].mxu0  ;;  %v1128_v46 = vpop.f32.mrb[12].mxu1  ;;  %v828_v14 = vadd.f32 (!%p1063_p11), %v1406_v2, %v805_v11  ;;  %v859_v19 = vadd.f32 (!%p1063_p11), %v843_v10, %v827_v9  ;;  %v813_v41 = vld [vmem:[#allocation2 + $0x58] sm:$0xff] (!%p1063_p11)  ;;  %v865_v43 = vadd.f32 (!%p1063_p11), %v849_v34, %v833_v33 }
 0x13c   : > { %v1105_v48 = vpop.f32.mrb[13].mxu0  ;;  %v1129_v50 = vpop.f32.mrb[13].mxu1  ;;  %v835_v44 = vadd.f32 (!%p1063_p11), %v1406_v2, %v812_v39 }
 0x13d   : > { %v1106_v51 = vadd.f32 %v1105_v48, %v1104_v45  ;;  %v1130_v52 = vadd.f32 %v1129_v50, %v1128_v46  ;;  %v1107_v53 = vpop.f32.mrb[14].mxu0  ;;  %v1131_v54 = vpop.f32.mrb[14].mxu1  ;;  %801 = sbr.rel (%p1063_p11) target bundleno = 337 (0x151), region = 82  ;;  %v860_v25 = vadd.f32 (!%p1063_p11), %v844_v12, %v828_v14  ;;  %875 = vst [vmem:[%s1539_s4 + $0x10] sm:$0xff] (!%p1063_p11), %v859_v19  ;;  %v836_v45 = vadd.f32 (!%p1063_p11), %v1406_v2, %v813_v41  ;;  %v852_v46 = vld [vmem:[%s1538_s3 + $0x58] sm:$0xff] (!%p1063_p11)  ;;  %v853_v48 = vld [vmem:[%s1538_s3 + $0x60] sm:$0xff] (!%p1063_p11) }
 0x13e   : > { %v1108_v56 = vpop.f32.mrb[15].mxu0  ;;  %v1132_v58 = vpop.f32.mrb[15].mxu1  ;;  %881 = vst [vmem:[%s1539_s4 + $0x40] sm:$0xff] (!%p1063_p11), %v865_v43 }
 0x13f   : > { %v772_v59 = vadd.f32 %v1106_v51, %v435_v47  ;;  %v780_v60 = vadd.f32 %v1130_v52, %v443_v49  ;;  %v1109_v61 = vadd.f32 %v1108_v56, %v1107_v53  ;;  %v1133_v62 = vadd.f32 %v1132_v58, %v1131_v54  ;;  %876 = vst [vmem:[%s1539_s4 + $0x18] sm:$0xff] (!%p1063_p11), %v860_v25  ;;  %v854_v52 = vld [vmem:[%s1538_s3 + $0x68] sm:$0xff] (!%p1063_p11)  ;;  %v855_v58 = vld [vmem:[%s1538_s3 + $0x70] sm:$0xff] (!%p1063_p11) }
 0x140   : > { %v806_v15 = vld [vmem:[#allocation2 + $0x20] sm:$0xff] (!%p1063_p11)  ;;  %v866_v49 = vadd.f32 (!%p1063_p11), %v850_v36, %v834_v38  ;;  %v867_v54 = vadd.f32 (!%p1063_p11), %v851_v40, %v835_v44 }
 0x141   : > { %788 = vst [vmem:[#allocation2 + $0x30] sm:$0xff] %v772_v59  ;;  %796 = vst [vmem:[#allocation2 + $0x70] sm:$0xff] %v780_v60  ;;  %v773_v63 = vadd.f32 %v1109_v61, %v436_v55  ;;  %v781_v0 = vadd.f32 %v1133_v62, %v444_v57  ;;  %v829_v20 = vadd.f32 (!%p1063_p11), %v1406_v2, %v806_v15  ;;  %v814_v47 = vld [vmem:[#allocation2 + $0x60] sm:$0xff] (!%p1063_p11)  ;;  %v856_v60 = vld [vmem:[%s1538_s3 + $0x78] sm:$0xff] (!%p1063_p11) }
 0x142   : > { %v807_v17 = vld [vmem:[#allocation2 + $0x28] sm:$0xff] (!%p1063_p11)  ;;  %v837_v50 = vadd.f32 (!%p1063_p11), %v1406_v2, %v814_v47  ;;  %v868_v55 = vadd.f32 (!%p1063_p11), %v852_v46, %v836_v45  ;;  %882 = vst [vmem:[%s1539_s4 + $0x48] sm:$0xff] (!%p1063_p11), %v866_v49  ;;  %883 = vst [vmem:[%s1539_s4 + $0x50] sm:$0xff] (!%p1063_p11), %v867_v54 }
 0x143   : > { %789 = vst [vmem:[#allocation2 + $0x38] sm:$0xff] %v773_v63  ;;  %797 = vst [vmem:[#allocation2 + $0x78] sm:$0xff] %v781_v0  ;;  %v830_v21 = vadd.f32 (!%p1063_p11), %v1406_v2, %v807_v17  ;;  %v861_v30 = vadd.f32 (!%p1063_p11), %v845_v16, %v829_v20  ;;  %v815_v51 = vld [vmem:[#allocation2 + $0x68] sm:$0xff] (!%p1063_p11) }
 0x144   : > { %v838_v56 = vadd.f32 %v1406_v2, %v815_v51  ;;  %v869_v61 = vadd.f32 %v853_v48, %v837_v50  ;;  %884 = vst [vmem:[%s1539_s4 + $0x58] sm:$0xff] %v868_v55 }
 0x145   : > { %v862_v31 = vadd.f32 %v846_v22, %v830_v21  ;;  %877 = vst [vmem:[%s1539_s4 + $0x20] sm:$0xff] %v861_v30 }
 0x146   : > { %v870_v63 = vadd.f32 %v854_v52, %v838_v56  ;;  %885 = vst [vmem:[%s1539_s4 + $0x60] sm:$0xff] %v869_v61 }
 0x147   : > { %878 = vst [vmem:[%s1539_s4 + $0x28] sm:$0xff] %v862_v31 }
 0x148   : > { %v808_v23 = vld [vmem:[#allocation2 + $0x30] sm:$0xff]  ;;  %886 = vst [vmem:[%s1539_s4 + $0x68] sm:$0xff] %v870_v63 }
 0x149   : > { %v831_v26 = vadd.f32 %v1406_v2, %v808_v23  ;;  %v816_v53 = vld [vmem:[#allocation2 + $0x70] sm:$0xff] }
 0x14a   : > { %v809_v27 = vld [vmem:[#allocation2 + $0x38] sm:$0xff]  ;;  %v839_v57 = vadd.f32 %v1406_v2, %v816_v53 }
 0x14b   : > { %v832_v32 = vadd.f32 %v1406_v2, %v809_v27  ;;  %v863_v37 = vadd.f32 %v847_v24, %v831_v26  ;;  %v817_v59 = vld [vmem:[#allocation2 + $0x78] sm:$0xff] }
 0x14c   : > { %v840_v62 = vadd.f32 %v1406_v2, %v817_v59  ;;  %v871_v0 = vadd.f32 %v855_v58, %v839_v57 }
 0x14d   : > { %v864_v42 = vadd.f32 %v848_v28, %v832_v32  ;;  %879 = vst [vmem:[%s1539_s4 + $0x30] sm:$0xff] %v863_v37 }
 0x14e   : > { %v872_v1 = vadd.f32 %v856_v60, %v840_v62  ;;  %887 = vst [vmem:[%s1539_s4 + $0x70] sm:$0xff] %v871_v0 }
 0x14f   : > { %880 = vst [vmem:[%s1539_s4 + $0x38] sm:$0xff] %v864_v42 }
 0x150   : > { %888 = vst [vmem:[%s1539_s4 + $0x78] sm:$0xff] %v872_v1 }
 0x151 PF: > { %s14_s19 = sadd.s32 1, %s1269_s19   ;;  %s1540_s15 = smov %s1257_s16 }
 0x152   : > { %p11_p12 = scmp.ge.s32.totalorder %s14_s19, 7   ;;  %s1541_s16 = smov %s1332_s23 }
 0x153   : > { %s1542_s17 = smov %s1265_s18  ;;  %s1543_s18 = smov %s1545_s20 }
 0x154   :  { %13 = sbr.rel (!%p11_p12) target bundleno = 3 (0x3), region = 126 }

</bundles_post_ra>
